<compile_context>
chip_gen: v7x
topology: tpu7x:2x2x1
jax: 0.10.0
libtpu: 0.0.40
codegen_flags: <defaults>
</compile_context>

<pallas_src>
import jax
import jax.numpy as jnp
from jax.experimental import pallas as pl
from jax.experimental.pallas import tpu as pltpu

# ----------------------------------------------------------------------------
# KAN spline configuration (spline_points=5, spline_degree=3)
# ----------------------------------------------------------------------------
SPLINE_POINTS = 5
SPLINE_DEGREE = 3
NUM_BASIS = SPLINE_POINTS + SPLINE_DEGREE            # 8 basis functions
_H = 2.0 / SPLINE_POINTS                             # uniform knot spacing
GRID = tuple(
    -1.0 - SPLINE_DEGREE * _H + i * _H
    for i in range(SPLINE_POINTS + 2 * SPLINE_DEGREE + 1)
)                                                    # 12 knots, static floats
_N_KNOTS = len(GRID)

FEAT_DTYPE = jnp.bfloat16    # Phi slab / packed conv weights (f32 accumulation)
_MARGIN = 128                # lane margin around the feature slab (>= W+3 halo)
_SPLINE_SUBTILE = 256        # lane sub-tile for the Cox-de Boor working set


def _round_up(x, m):
    return ((x + m - 1) // m) * m


# ----------------------------------------------------------------------------
# Fused KAN-conv kernel: per-activation feature expansion + 9 shifted MXU dots
# ----------------------------------------------------------------------------
def _make_conv_kernel(c_in, c_out, f_total, tm, w_img, feat_dtype):
    cb = min(8, c_in)
    assert c_in % cb == 0
    n_chunks = c_in // cb                      # 1 for both conv layers here
    tl = min(_SPLINE_SUBTILE, tm)
    assert tm % tl == 0
    tlo = 512 if tm % 512 == 0 else 256        # output sub-tile for the dots
    assert tm % tlo == 0
    # tap offsets in the flattened padded-image grid, order t = kh*3 + kw
    offs = [(kh - 1) * (w_img + 2) + (kw - 1)
            for kh in range(3) for kw in range(3)]
    assert max(abs(o) for o in offs) < _MARGIN
    g = GRID

    def kernel(x_ref, w_ref, o_ref, feat_ref):
        # Margin lanes only feed taps of discarded (padding-ring / pad-image)
        # output lanes; zero them so stale VMEM never produces non-finite data.
        zeros = jnp.zeros((f_total, _MARGIN), feat_dtype)
        feat_ref[:, 0:_MARGIN] = zeros
        feat_ref[:, _MARGIN + tm:_MARGIN + tm + _MARGIN] = zeros

        # ---- Phase 1: per-activation feature expansion (once, de-duplicated)
        for s in range(tm // tl):
            l0 = s * tl
            for c in range(n_chunks):
                r0 = c * cb
                xc = x_ref[r0:r0 + cb, l0:l0 + tl]             # [cb, tl] f32

                # u_j = x - g[j]; uniform knots -> both Cox-de Boor
                # denominators equal d*_H and are folded into the weights.
                u = [xc - g[j] for j in range(_N_KNOTS)]

                # Degree-0 indicators via (x>=g[i]) - (x>=g[i+1]) differences.
                ge = (u[0] >= 0.0).astype(jnp.float32)
                b = []
                for i in range(_N_KNOTS - 1):                  # 11 indicators
                    ge_n = (u[i + 1] >= 0.0).astype(jnp.float32)
                    b.append(ge - ge_n)
                    ge = ge_n

                # Unnormalized uniform-knot Cox-de Boor, in place (3 ops/upd).
                for d in range(1, SPLINE_DEGREE + 1):
                    for i in range(_N_KNOTS - 1 - d):
                        b[i] = u[i] * b[i] - u[i + d + 1] * b[i + 1]

                # Base branch: SiLU via EUP exp + approx reciprocal.
                silu = xc * pl.reciprocal(1.0 + jnp.exp(-xc), approx=True)

                dst = _MARGIN + l0
                feat_ref[r0:r0 + cb, dst:dst + tl] = silu.astype(feat_dtype)
                for k in range(NUM_BASIS):                     # degree-3 bases
                    row = (k + 1) * c_in + r0
                    feat_ref[row:row + cb, dst:dst + tl] = b[k].astype(feat_dtype)

        # ---- Phase 2: 3x3 conv = 9 lane-shifted dots against the Phi slab.
        for s in range(tm // tlo):
            q0 = s * tlo
            acc = None
            for t, off in enumerate(offs):
                src = _MARGIN + q0 + off
                part = jnp.dot(w_ref[t], feat_ref[:, src:src + tlo],
                               preferred_element_type=jnp.float32)
                acc = part if acc is None else acc + part
            o_ref[:, q0:q0 + tlo] = acc.astype(o_ref.dtype)

    return kernel


def _pack_conv_weights(base_w, spline_w, c_in, c_out):
    """base_w [C_in*9, C_out], spline_w [NUM_BASIS, C_in*9, C_out] (rows in
    unfold order c*9 + kh*3 + kw) -> w_all [9, C_out, (1+NUM_BASIS)*C_in]
    with the uniform-knot normalization 1/(3!*h^3) folded into the spline part
    and column index f*C_in + c matching the kernel's feature-slab rows."""
    spline_scale = 1.0 / (6.0 * _H ** 3)
    bw = base_w.reshape(c_in, 9, c_out)                           # [c, t, co]
    sw = spline_w.reshape(NUM_BASIS, c_in, 9, c_out) * spline_scale
    base_part = jnp.transpose(bw, (1, 2, 0))[:, :, None, :]       # [t, co, 1, c]
    spl_part = jnp.transpose(sw, (2, 3, 0, 1))                    # [t, co, k, c]
    w_all = jnp.concatenate([base_part, spl_part], axis=2)        # [t, co, 9, c]
    return w_all.reshape(9, c_out, (1 + NUM_BASIS) * c_in).astype(FEAT_DTYPE)


def kan_conv2d(x_cbhw, base_w, spline_w, *, target_tile=2048):
    """KANConv2d(k=3, s=1, p=1).  x: [C_in, B, H, W] -> [C_out, B, H, W]."""
    c_in, bsz, h, w = x_cbhw.shape
    p, c_out = base_w.shape
    assert p == c_in * 9
    f_total = (1 + NUM_BASIS) * c_in

    # Zero-pad the spatial ring (padded zeros DO pass through the splines, as
    # with unfold-based KAN convs) and flatten each image to a 256-aligned slab.
    xp = jnp.pad(x_cbhw, ((0, 0), (0, 0), (1, 1), (1, 1)))
    hp, wp = h + 2, w + 2
    s_img = hp * wp
    s_pad = _round_up(s_img, 256)
    xf = xp.reshape(c_in, bsz, s_img)
    if s_pad != s_img:
        xf = jnp.pad(xf, ((0, 0), (0, 0), (0, s_pad - s_img)))

    # Whole images per lane tile; keep grid >= 2 whenever B >= 2 (v7x megacore).
    ipt = max(1, min(target_tile // s_pad, bsz))
    if bsz >= 2:
        ipt = max(1, min(ipt, bsz // 2))
    b_pad = _round_up(bsz, ipt)
    if b_pad != bsz:
        xf = jnp.pad(xf, ((0, 0), (0, b_pad - bsz), (0, 0)))
    m_tot = b_pad * s_pad
    tm = ipt * s_pad
    x_flat = xf.reshape(c_in, m_tot)

    w_all = _pack_conv_weights(base_w, spline_w, c_in, c_out)

    y = pl.pallas_call(
        _make_conv_kernel(c_in, c_out, f_total, tm, w, FEAT_DTYPE),
        out_shape=jax.ShapeDtypeStruct((c_out, m_tot), jnp.float32),
        grid=(m_tot // tm,),
        in_specs=[
            pl.BlockSpec((c_in, tm), lambda i: (0, i)),
            pl.BlockSpec((9, c_out, f_total), lambda i: (0, 0, 0)),
        ],
        out_specs=pl.BlockSpec((c_out, tm), lambda i: (0, i)),
        scratch_shapes=[pltpu.VMEM((f_total, tm + 2 * _MARGIN), FEAT_DTYPE)],
        compiler_params=pltpu.CompilerParams(
            dimension_semantics=("parallel",)),
    )(x_flat, w_all)

    y = y.reshape(c_out, b_pad, s_pad)[:, :bsz, :s_img]
    y = y.reshape(c_out, bsz, hp, wp)
    return y[:, :, 1:h + 1, 1:w + 1]                 # valid output positions


# ----------------------------------------------------------------------------
# Fully-connected head (fc1 -> fc2 fused, lane-dense fc2 output)
# ----------------------------------------------------------------------------
def fc_fused_kernel(x_ref, w1_ref, b1_ref, w2_ref, b2_ref, o_ref):
    """x: [BM, K]; fc1 then fc2, intermediate kept on-chip.  No ReLU: the
    reference forward defines relu3 but never applies it."""
    hid = (jnp.dot(x_ref[...], w1_ref[...], preferred_element_type=jnp.float32)
           + b1_ref[...])
    o_ref[...] = (jnp.dot(hid, w2_ref[...], preferred_element_type=jnp.float32)
                  + b2_ref[...]).astype(o_ref.dtype)


def fc_head(x, w1, b1, w2, b2, *, tile_b=256):
    bsz, k = x.shape
    n1 = w1.shape[1]
    n2 = w2.shape[1]
    n2p = _round_up(n2, 128)                 # lane-dense fc2 stores
    w2p = jnp.pad(w2, ((0, 0), (0, n2p - n2)))
    b2p = jnp.pad(b2, ((0, n2p - n2),))
    if bsz <= tile_b:
        bm, b_pad, xp = bsz, bsz, x
    else:
        bm = tile_b
        b_pad = _round_up(bsz, bm)
        xp = jnp.pad(x, ((0, b_pad - bsz), (0, 0)))

    out = pl.pallas_call(
        fc_fused_kernel,
        out_shape=jax.ShapeDtypeStruct((b_pad, n2p), jnp.float32),
        grid=(b_pad // bm,),
        in_specs=[
            pl.BlockSpec((bm, k), lambda i: (i, 0)),
            pl.BlockSpec((k, n1), lambda i: (0, 0)),
            pl.BlockSpec((1, n1), lambda i: (0, 0)),
            pl.BlockSpec((n1, n2p), lambda i: (0, 0)),
            pl.BlockSpec((1, n2p), lambda i: (0, 0)),
        ],
        out_specs=pl.BlockSpec((bm, n2p), lambda i: (i, 0)),
        compiler_params=pltpu.CompilerParams(
            dimension_semantics=("parallel",)),
    )(xp, w1, b1.reshape(1, n1), w2p, b2p.reshape(1, n2p))
    return out[:bsz, :n2]


# ----------------------------------------------------------------------------
# Glue (plain JAX): max-pooling, params, forward
# ----------------------------------------------------------------------------
def maxpool2x2_cnhw(x):
    """2x2/2 max pool, plain-JAX reshape-based max."""
    c, b, h, w = x.shape
    return jnp.max(x.reshape(c, b, h // 2, 2, w // 2, 2), axis=(3, 5))


def init_params(key):
    ks = jax.random.split(key, 8)
    return {
        "conv1_base_w": 0.1 * jax.random.normal(ks[0], (1 * 9, 8), jnp.float32),
        "conv1_spline_w": 0.1 * jax.random.normal(ks[1], (NUM_BASIS, 1 * 9, 8),
                                                  jnp.float32),
        "conv2_base_w": 0.1 * jax.random.normal(ks[2], (8 * 9, 16), jnp.float32),
        "conv2_spline_w": 0.1 * jax.random.normal(ks[3], (NUM_BASIS, 8 * 9, 16),
                                                  jnp.float32),
        "fc1_w": 0.05 * jax.random.normal(ks[4], (16 * 7 * 7, 128), jnp.float32),
        "fc1_b": 0.05 * jax.random.normal(ks[5], (128,), jnp.float32),
        "fc2_w": 0.05 * jax.random.normal(ks[6], (128, 10), jnp.float32),
        "fc2_b": 0.05 * jax.random.normal(ks[7], (10,), jnp.float32),
    }


@jax.jit
def mnist_ckan_forward(params, x):
    # x: NCHW [B, 1, 28, 28] (same as PyTorch)
    b = x.shape[0]
    x = jnp.transpose(x, (1, 0, 2, 3))                                   # [1,B,28,28]
    x = kan_conv2d(x, params["conv1_base_w"], params["conv1_spline_w"])  # [8,B,28,28]
    x = maxpool2x2_cnhw(x)                                               # [8,B,14,14]
    x = kan_conv2d(x, params["conv2_base_w"], params["conv2_spline_w"])  # [16,B,14,14]
    x = maxpool2x2_cnhw(x)                                               # [16,B,7,7]
    x = jnp.transpose(x, (1, 0, 2, 3)).reshape(b, -1)   # flatten (c,h,w) -> [B,784]
    # relu3 is defined in __init__ but never applied in forward -> skipped
    return fc_head(x, params["fc1_w"], params["fc1_b"],
                   params["fc2_w"], params["fc2_b"])                     # [B,10]


if __name__ == "__main__":
    key = jax.random.PRNGKey(0)
    pkey, xkey = jax.random.split(key)
    params = init_params(pkey)
    # fc1 expects 16*7*7 features -> spatial input must be 28x28 (MNIST).
    x = jax.random.normal(xkey, (2, 1, 28, 28), jnp.float32)
    out = mnist_ckan_forward(params, x)
    out = jax.block_until_ready(out)
    assert out.shape == (2, 10) and out.dtype == jnp.float32
    assert bool(jnp.isfinite(out).all())
    print("KERNEL_OK")
</pallas_src>

<mosaic_0001>
module attributes {stable_mosaic.version = 11 : i64} {
  func.func @kernel(%arg0: i32, %arg1: memref<1x1024xf32, #tpu.memory_space<vmem>>, %arg2: memref<9x8x9xbf16, #tpu.memory_space<vmem>>, %arg3: memref<8x1024xf32, #tpu.memory_space<vmem>>, %arg4: memref<9x1280xbf16, #tpu.memory_space<vmem>>) attributes {dimension_semantics = [#tpu.dimension_semantics<parallel>], iteration_bounds = array<i64: 2>, scalar_prefetch = 0 : i64, scratch_operands = 1 : i64, tpu.core_type = #tpu.core_type<tc>, window_params = [{transform_indices = @transform_0, window_bounds = array<i64: 1, 1024>}, {pipeline_mode = #tpu.pipeline_mode<synchronous>, transform_indices = @transform_1, window_bounds = array<i64: 9, 8, 9>}, {transform_indices = @transform_2, window_bounds = array<i64: 8, 1024>}]} {
    %cst = arith.constant 0.000000e+00 : bf16
    %0 = vector.broadcast %cst : bf16 to vector<9x128xbf16>
    %c0 = arith.constant 0 : index
    %c0_0 = arith.constant 0 : index
    %1 = vector.load %arg4[%c0, %c0_0] : memref<9x1280xbf16, #tpu.memory_space<vmem>>, vector<9x128xbf16>
    tpu.vector_store %arg4[%c0, %c0_0], %0 {strides = array<i32>} : memref<9x1280xbf16, #tpu.memory_space<vmem>>, vector<9x128xbf16>,
    %c0_1 = arith.constant 0 : index
    %c1152 = arith.constant 1152 : index
    %2 = vector.load %arg4[%c0_1, %c1152] : memref<9x1280xbf16, #tpu.memory_space<vmem>>, vector<9x128xbf16>
    tpu.vector_store %arg4[%c0_1, %c1152], %0 {strides = array<i32>} : memref<9x1280xbf16, #tpu.memory_space<vmem>>, vector<9x128xbf16>,
    %c0_2 = arith.constant 0 : index
    %c0_3 = arith.constant 0 : index
    %3 = vector.load %arg1[%c0_2, %c0_3] : memref<1x1024xf32, #tpu.memory_space<vmem>>, vector<1x256xf32>
    %cst_4 = arith.constant -2.200000e+00 : f32
    %4 = vector.broadcast %cst_4 : f32 to vector<1x256xf32>
    %5 = arith.subf %3, %4 : vector<1x256xf32>
    %cst_5 = arith.constant -1.800000e+00 : f32
    %6 = vector.broadcast %cst_5 : f32 to vector<1x256xf32>
    %7 = arith.subf %3, %6 : vector<1x256xf32>
    %cst_6 = arith.constant -1.400000e+00 : f32
    %8 = vector.broadcast %cst_6 : f32 to vector<1x256xf32>
    %9 = arith.subf %3, %8 : vector<1x256xf32>
    %cst_7 = arith.constant -1.000000e+00 : f32
    %10 = vector.broadcast %cst_7 : f32 to vector<1x256xf32>
    %11 = arith.subf %3, %10 : vector<1x256xf32>
    %cst_8 = arith.constant -6.000000e-01 : f32
    %12 = vector.broadcast %cst_8 : f32 to vector<1x256xf32>
    %13 = arith.subf %3, %12 : vector<1x256xf32>
    %cst_9 = arith.constant -2.000000e-01 : f32
    %14 = vector.broadcast %cst_9 : f32 to vector<1x256xf32>
    %15 = arith.subf %3, %14 : vector<1x256xf32>
    %cst_10 = arith.constant 2.000000e-01 : f32
    %16 = vector.broadcast %cst_10 : f32 to vector<1x256xf32>
    %17 = arith.subf %3, %16 : vector<1x256xf32>
    %cst_11 = arith.constant 6.000000e-01 : f32
    %18 = vector.broadcast %cst_11 : f32 to vector<1x256xf32>
    %19 = arith.subf %3, %18 : vector<1x256xf32>
    %cst_12 = arith.constant 1.000000e+00 : f32
    %20 = vector.broadcast %cst_12 : f32 to vector<1x256xf32>
    %21 = arith.subf %3, %20 : vector<1x256xf32>
    %cst_13 = arith.constant 1.400000e+00 : f32
    %22 = vector.broadcast %cst_13 : f32 to vector<1x256xf32>
    %23 = arith.subf %3, %22 : vector<1x256xf32>
    %cst_14 = arith.constant 1.800000e+00 : f32
    %24 = vector.broadcast %cst_14 : f32 to vector<1x256xf32>
    %25 = arith.subf %3, %24 : vector<1x256xf32>
    %cst_15 = arith.constant 2.200000e+00 : f32
    %26 = vector.broadcast %cst_15 : f32 to vector<1x256xf32>
    %27 = arith.subf %3, %26 : vector<1x256xf32>
    %cst_16 = arith.constant 0.000000e+00 : f32
    %28 = vector.broadcast %cst_16 : f32 to vector<1x256xf32>
    %29 = arith.cmpf oge, %5, %28 : vector<1x256xf32>
    %30 = arith.extui %29 : vector<1x256xi1> to vector<1x256xi32>
    %31 = arith.sitofp %30 : vector<1x256xi32> to vector<1x256xf32>
    %cst_17 = arith.constant 0.000000e+00 : f32
    %32 = vector.broadcast %cst_17 : f32 to vector<1x256xf32>
    %33 = arith.cmpf oge, %7, %32 : vector<1x256xf32>
    %34 = arith.extui %33 : vector<1x256xi1> to vector<1x256xi32>
    %35 = arith.sitofp %34 : vector<1x256xi32> to vector<1x256xf32>
    %36 = arith.subf %31, %35 : vector<1x256xf32>
    %cst_18 = arith.constant 0.000000e+00 : f32
    %37 = vector.broadcast %cst_18 : f32 to vector<1x256xf32>
    %38 = arith.cmpf oge, %9, %37 : vector<1x256xf32>
    %39 = arith.extui %38 : vector<1x256xi1> to vector<1x256xi32>
    %40 = arith.sitofp %39 : vector<1x256xi32> to vector<1x256xf32>
    %41 = arith.subf %35, %40 : vector<1x256xf32>
    %cst_19 = arith.constant 0.000000e+00 : f32
    %42 = vector.broadcast %cst_19 : f32 to vector<1x256xf32>
    %43 = arith.cmpf oge, %11, %42 : vector<1x256xf32>
    %44 = arith.extui %43 : vector<1x256xi1> to vector<1x256xi32>
    %45 = arith.sitofp %44 : vector<1x256xi32> to vector<1x256xf32>
    %46 = arith.subf %40, %45 : vector<1x256xf32>
    %cst_20 = arith.constant 0.000000e+00 : f32
    %47 = vector.broadcast %cst_20 : f32 to vector<1x256xf32>
    %48 = arith.cmpf oge, %13, %47 : vector<1x256xf32>
    %49 = arith.extui %48 : vector<1x256xi1> to vector<1x256xi32>
    %50 = arith.sitofp %49 : vector<1x256xi32> to vector<1x256xf32>
    %51 = arith.subf %45, %50 : vector<1x256xf32>
    %cst_21 = arith.constant 0.000000e+00 : f32
    %52 = vector.broadcast %cst_21 : f32 to vector<1x256xf32>
    %53 = arith.cmpf oge, %15, %52 : vector<1x256xf32>
    %54 = arith.extui %53 : vector<1x256xi1> to vector<1x256xi32>
    %55 = arith.sitofp %54 : vector<1x256xi32> to vector<1x256xf32>
    %56 = arith.subf %50, %55 : vector<1x256xf32>
    %cst_22 = arith.constant 0.000000e+00 : f32
    %57 = vector.broadcast %cst_22 : f32 to vector<1x256xf32>
    %58 = arith.cmpf oge, %17, %57 : vector<1x256xf32>
    %59 = arith.extui %58 : vector<1x256xi1> to vector<1x256xi32>
    %60 = arith.sitofp %59 : vector<1x256xi32> to vector<1x256xf32>
    %61 = arith.subf %55, %60 : vector<1x256xf32>
    %cst_23 = arith.constant 0.000000e+00 : f32
    %62 = vector.broadcast %cst_23 : f32 to vector<1x256xf32>
    %63 = arith.cmpf oge, %19, %62 : vector<1x256xf32>
    %64 = arith.extui %63 : vector<1x256xi1> to vector<1x256xi32>
    %65 = arith.sitofp %64 : vector<1x256xi32> to vector<1x256xf32>
    %66 = arith.subf %60, %65 : vector<1x256xf32>
    %cst_24 = arith.constant 0.000000e+00 : f32
    %67 = vector.broadcast %cst_24 : f32 to vector<1x256xf32>
    %68 = arith.cmpf oge, %21, %67 : vector<1x256xf32>
    %69 = arith.extui %68 : vector<1x256xi1> to vector<1x256xi32>
    %70 = arith.sitofp %69 : vector<1x256xi32> to vector<1x256xf32>
    %71 = arith.subf %65, %70 : vector<1x256xf32>
    %cst_25 = arith.constant 0.000000e+00 : f32
    %72 = vector.broadcast %cst_25 : f32 to vector<1x256xf32>
    %73 = arith.cmpf oge, %23, %72 : vector<1x256xf32>
    %74 = arith.extui %73 : vector<1x256xi1> to vector<1x256xi32>
    %75 = arith.sitofp %74 : vector<1x256xi32> to vector<1x256xf32>
    %76 = arith.subf %70, %75 : vector<1x256xf32>
    %cst_26 = arith.constant 0.000000e+00 : f32
    %77 = vector.broadcast %cst_26 : f32 to vector<1x256xf32>
    %78 = arith.cmpf oge, %25, %77 : vector<1x256xf32>
    %79 = arith.extui %78 : vector<1x256xi1> to vector<1x256xi32>
    %80 = arith.sitofp %79 : vector<1x256xi32> to vector<1x256xf32>
    %81 = arith.subf %75, %80 : vector<1x256xf32>
    %cst_27 = arith.constant 0.000000e+00 : f32
    %82 = vector.broadcast %cst_27 : f32 to vector<1x256xf32>
    %83 = arith.cmpf oge, %27, %82 : vector<1x256xf32>
    %84 = arith.extui %83 : vector<1x256xi1> to vector<1x256xi32>
    %85 = arith.sitofp %84 : vector<1x256xi32> to vector<1x256xf32>
    %86 = arith.subf %80, %85 : vector<1x256xf32>
    %87 = arith.mulf %5, %36 : vector<1x256xf32>
    %88 = arith.mulf %9, %41 : vector<1x256xf32>
    %89 = arith.subf %87, %88 : vector<1x256xf32>
    %90 = arith.mulf %7, %41 : vector<1x256xf32>
    %91 = arith.mulf %11, %46 : vector<1x256xf32>
    %92 = arith.subf %90, %91 : vector<1x256xf32>
    %93 = arith.mulf %9, %46 : vector<1x256xf32>
    %94 = arith.mulf %13, %51 : vector<1x256xf32>
    %95 = arith.subf %93, %94 : vector<1x256xf32>
    %96 = arith.mulf %11, %51 : vector<1x256xf32>
    %97 = arith.mulf %15, %56 : vector<1x256xf32>
    %98 = arith.subf %96, %97 : vector<1x256xf32>
    %99 = arith.mulf %13, %56 : vector<1x256xf32>
    %100 = arith.mulf %17, %61 : vector<1x256xf32>
    %101 = arith.subf %99, %100 : vector<1x256xf32>
    %102 = arith.mulf %15, %61 : vector<1x256xf32>
    %103 = arith.mulf %19, %66 : vector<1x256xf32>
    %104 = arith.subf %102, %103 : vector<1x256xf32>
    %105 = arith.mulf %17, %66 : vector<1x256xf32>
    %106 = arith.mulf %21, %71 : vector<1x256xf32>
    %107 = arith.subf %105, %106 : vector<1x256xf32>
    %108 = arith.mulf %19, %71 : vector<1x256xf32>
    %109 = arith.mulf %23, %76 : vector<1x256xf32>
    %110 = arith.subf %108, %109 : vector<1x256xf32>
    %111 = arith.mulf %21, %76 : vector<1x256xf32>
    %112 = arith.mulf %25, %81 : vector<1x256xf32>
    %113 = arith.subf %111, %112 : vector<1x256xf32>
    %114 = arith.mulf %23, %81 : vector<1x256xf32>
    %115 = arith.mulf %27, %86 : vector<1x256xf32>
    %116 = arith.subf %114, %115 : vector<1x256xf32>
    %117 = arith.mulf %5, %89 : vector<1x256xf32>
    %118 = arith.mulf %11, %92 : vector<1x256xf32>
    %119 = arith.subf %117, %118 : vector<1x256xf32>
    %120 = arith.mulf %7, %92 : vector<1x256xf32>
    %121 = arith.mulf %13, %95 : vector<1x256xf32>
    %122 = arith.subf %120, %121 : vector<1x256xf32>
    %123 = arith.mulf %9, %95 : vector<1x256xf32>
    %124 = arith.mulf %15, %98 : vector<1x256xf32>
    %125 = arith.subf %123, %124 : vector<1x256xf32>
    %126 = arith.mulf %11, %98 : vector<1x256xf32>
    %127 = arith.mulf %17, %101 : vector<1x256xf32>
    %128 = arith.subf %126, %127 : vector<1x256xf32>
    %129 = arith.mulf %13, %101 : vector<1x256xf32>
    %130 = arith.mulf %19, %104 : vector<1x256xf32>
    %131 = arith.subf %129, %130 : vector<1x256xf32>
    %132 = arith.mulf %15, %104 : vector<1x256xf32>
    %133 = arith.mulf %21, %107 : vector<1x256xf32>
    %134 = arith.subf %132, %133 : vector<1x256xf32>
    %135 = arith.mulf %17, %107 : vector<1x256xf32>
    %136 = arith.mulf %23, %110 : vector<1x256xf32>
    %137 = arith.subf %135, %136 : vector<1x256xf32>
    %138 = arith.mulf %19, %110 : vector<1x256xf32>
    %139 = arith.mulf %25, %113 : vector<1x256xf32>
    %140 = arith.subf %138, %139 : vector<1x256xf32>
    %141 = arith.mulf %21, %113 : vector<1x256xf32>
    %142 = arith.mulf %27, %116 : vector<1x256xf32>
    %143 = arith.subf %141, %142 : vector<1x256xf32>
    %144 = arith.mulf %5, %119 : vector<1x256xf32>
    %145 = arith.mulf %13, %122 : vector<1x256xf32>
    %146 = arith.subf %144, %145 : vector<1x256xf32>
    %147 = arith.mulf %7, %122 : vector<1x256xf32>
    %148 = arith.mulf %15, %125 : vector<1x256xf32>
    %149 = arith.subf %147, %148 : vector<1x256xf32>
    %150 = arith.mulf %9, %125 : vector<1x256xf32>
    %151 = arith.mulf %17, %128 : vector<1x256xf32>
    %152 = arith.subf %150, %151 : vector<1x256xf32>
    %153 = arith.mulf %11, %128 : vector<1x256xf32>
    %154 = arith.mulf %19, %131 : vector<1x256xf32>
    %155 = arith.subf %153, %154 : vector<1x256xf32>
    %156 = arith.mulf %13, %131 : vector<1x256xf32>
    %157 = arith.mulf %21, %134 : vector<1x256xf32>
    %158 = arith.subf %156, %157 : vector<1x256xf32>
    %159 = arith.mulf %15, %134 : vector<1x256xf32>
    %160 = arith.mulf %23, %137 : vector<1x256xf32>
    %161 = arith.subf %159, %160 : vector<1x256xf32>
    %162 = arith.mulf %17, %137 : vector<1x256xf32>
    %163 = arith.mulf %25, %140 : vector<1x256xf32>
    %164 = arith.subf %162, %163 : vector<1x256xf32>
    %165 = arith.mulf %19, %140 : vector<1x256xf32>
    %166 = arith.mulf %27, %143 : vector<1x256xf32>
    %167 = arith.subf %165, %166 : vector<1x256xf32>
    %cst_28 = arith.constant 0.000000e+00 : f32
    %168 = vector.broadcast %cst_28 : f32 to vector<1x256xf32>
    %169 = arith.subf %168, %3 : vector<1x256xf32>
    %170 = math.exp %169 : vector<1x256xf32>
    %cst_29 = arith.constant 1.000000e+00 : f32
    %171 = vector.broadcast %cst_29 : f32 to vector<1x256xf32>
    %172 = arith.addf %171, %170 : vector<1x256xf32>
    %173 = tpu.reciprocal %172 {approx = true} : vector<1x256xf32> -> vector<1x256xf32>
    %174 = arith.mulf %3, %173 : vector<1x256xf32>
    %175 = arith.truncf %174 : vector<1x256xf32> to vector<1x256xbf16>
    %c0_30 = arith.constant 0 : index
    %c128 = arith.constant 128 : index
    %176 = vector.load %arg4[%c0_30, %c128] : memref<9x1280xbf16, #tpu.memory_space<vmem>>, vector<1x256xbf16>
    tpu.vector_store %arg4[%c0_30, %c128], %175 {strides = array<i32>} : memref<9x1280xbf16, #tpu.memory_space<vmem>>, vector<1x256xbf16>,
    %177 = arith.truncf %146 : vector<1x256xf32> to vector<1x256xbf16>
    %c1 = arith.constant 1 : index
    %c128_31 = arith.constant 128 : index
    %178 = vector.load %arg4[%c1, %c128_31] : memref<9x1280xbf16, #tpu.memory_space<vmem>>, vector<1x256xbf16>
    tpu.vector_store %arg4[%c1, %c128_31], %177 {strides = array<i32>} : memref<9x1280xbf16, #tpu.memory_space<vmem>>, vector<1x256xbf16>,
    %179 = arith.truncf %149 : vector<1x256xf32> to vector<1x256xbf16>
    %c2 = arith.constant 2 : index
    %c128_32 = arith.constant 128 : index
    %180 = vector.load %arg4[%c2, %c128_32] : memref<9x1280xbf16, #tpu.memory_space<vmem>>, vector<1x256xbf16>
    tpu.vector_store %arg4[%c2, %c128_32], %179 {strides = array<i32>} : memref<9x1280xbf16, #tpu.memory_space<vmem>>, vector<1x256xbf16>,
    %181 = arith.truncf %152 : vector<1x256xf32> to vector<1x256xbf16>
    %c3 = arith.constant 3 : index
    %c128_33 = arith.constant 128 : index
    %182 = vector.load %arg4[%c3, %c128_33] : memref<9x1280xbf16, #tpu.memory_space<vmem>>, vector<1x256xbf16>
    tpu.vector_store %arg4[%c3, %c128_33], %181 {strides = array<i32>} : memref<9x1280xbf16, #tpu.memory_space<vmem>>, vector<1x256xbf16>,
    %183 = arith.truncf %155 : vector<1x256xf32> to vector<1x256xbf16>
    %c4 = arith.constant 4 : index
    %c128_34 = arith.constant 128 : index
    %184 = vector.load %arg4[%c4, %c128_34] : memref<9x1280xbf16, #tpu.memory_space<vmem>>, vector<1x256xbf16>
    tpu.vector_store %arg4[%c4, %c128_34], %183 {strides = array<i32>} : memref<9x1280xbf16, #tpu.memory_space<vmem>>, vector<1x256xbf16>,
    %185 = arith.truncf %158 : vector<1x256xf32> to vector<1x256xbf16>
    %c5 = arith.constant 5 : index
    %c128_35 = arith.constant 128 : index
    %186 = vector.load %arg4[%c5, %c128_35] : memref<9x1280xbf16, #tpu.memory_space<vmem>>, vector<1x256xbf16>
    tpu.vector_store %arg4[%c5, %c128_35], %185 {strides = array<i32>} : memref<9x1280xbf16, #tpu.memory_space<vmem>>, vector<1x256xbf16>,
    %187 = arith.truncf %161 : vector<1x256xf32> to vector<1x256xbf16>
    %c6 = arith.constant 6 : index
    %c128_36 = arith.constant 128 : index
    %188 = vector.load %arg4[%c6, %c128_36] : memref<9x1280xbf16, #tpu.memory_space<vmem>>, vector<1x256xbf16>
    tpu.vector_store %arg4[%c6, %c128_36], %187 {strides = array<i32>} : memref<9x1280xbf16, #tpu.memory_space<vmem>>, vector<1x256xbf16>,
    %189 = arith.truncf %164 : vector<1x256xf32> to vector<1x256xbf16>
    %c7 = arith.constant 7 : index
    %c128_37 = arith.constant 128 : index
    %190 = vector.load %arg4[%c7, %c128_37] : memref<9x1280xbf16, #tpu.memory_space<vmem>>, vector<1x256xbf16>
    tpu.vector_store %arg4[%c7, %c128_37], %189 {strides = array<i32>} : memref<9x1280xbf16, #tpu.memory_space<vmem>>, vector<1x256xbf16>,
    %191 = arith.truncf %167 : vector<1x256xf32> to vector<1x256xbf16>
    %c8 = arith.constant 8 : index
    %c128_38 = arith.constant 128 : index
    %192 = vector.load %arg4[%c8, %c128_38] : memref<9x1280xbf16, #tpu.memory_space<vmem>>, vector<1x256xbf16>
    tpu.vector_store %arg4[%c8, %c128_38], %191 {strides = array<i32>} : memref<9x1280xbf16, #tpu.memory_space<vmem>>, vector<1x256xbf16>,
    %c0_39 = arith.constant 0 : index
    %c256 = arith.constant 256 : index
    %193 = vector.load %arg1[%c0_39, %c256] : memref<1x1024xf32, #tpu.memory_space<vmem>>, vector<1x256xf32>
    %cst_40 = arith.constant -2.200000e+00 : f32
    %194 = vector.broadcast %cst_40 : f32 to vector<1x256xf32>
    %195 = arith.subf %193, %194 : vector<1x256xf32>
    %cst_41 = arith.constant -1.800000e+00 : f32
    %196 = vector.broadcast %cst_41 : f32 to vector<1x256xf32>
    %197 = arith.subf %193, %196 : vector<1x256xf32>
    %cst_42 = arith.constant -1.400000e+00 : f32
    %198 = vector.broadcast %cst_42 : f32 to vector<1x256xf32>
    %199 = arith.subf %193, %198 : vector<1x256xf32>
    %cst_43 = arith.constant -1.000000e+00 : f32
    %200 = vector.broadcast %cst_43 : f32 to vector<1x256xf32>
    %201 = arith.subf %193, %200 : vector<1x256xf32>
    %cst_44 = arith.constant -6.000000e-01 : f32
    %202 = vector.broadcast %cst_44 : f32 to vector<1x256xf32>
    %203 = arith.subf %193, %202 : vector<1x256xf32>
    %cst_45 = arith.constant -2.000000e-01 : f32
    %204 = vector.broadcast %cst_45 : f32 to vector<1x256xf32>
    %205 = arith.subf %193, %204 : vector<1x256xf32>
    %cst_46 = arith.constant 2.000000e-01 : f32
    %206 = vector.broadcast %cst_46 : f32 to vector<1x256xf32>
    %207 = arith.subf %193, %206 : vector<1x256xf32>
    %cst_47 = arith.constant 6.000000e-01 : f32
    %208 = vector.broadcast %cst_47 : f32 to vector<1x256xf32>
    %209 = arith.subf %193, %208 : vector<1x256xf32>
    %cst_48 = arith.constant 1.000000e+00 : f32
    %210 = vector.broadcast %cst_48 : f32 to vector<1x256xf32>
    %211 = arith.subf %193, %210 : vector<1x256xf32>
    %cst_49 = arith.constant 1.400000e+00 : f32
    %212 = vector.broadcast %cst_49 : f32 to vector<1x256xf32>
    %213 = arith.subf %193, %212 : vector<1x256xf32>
    %cst_50 = arith.constant 1.800000e+00 : f32
    %214 = vector.broadcast %cst_50 : f32 to vector<1x256xf32>
    %215 = arith.subf %193, %214 : vector<1x256xf32>
    %cst_51 = arith.constant 2.200000e+00 : f32
    %216 = vector.broadcast %cst_51 : f32 to vector<1x256xf32>
    %217 = arith.subf %193, %216 : vector<1x256xf32>
    %cst_52 = arith.constant 0.000000e+00 : f32
    %218 = vector.broadcast %cst_52 : f32 to vector<1x256xf32>
    %219 = arith.cmpf oge, %195, %218 : vector<1x256xf32>
    %220 = arith.extui %219 : vector<1x256xi1> to vector<1x256xi32>
    %221 = arith.sitofp %220 : vector<1x256xi32> to vector<1x256xf32>
    %cst_53 = arith.constant 0.000000e+00 : f32
    %222 = vector.broadcast %cst_53 : f32 to vector<1x256xf32>
    %223 = arith.cmpf oge, %197, %222 : vector<1x256xf32>
    %224 = arith.extui %223 : vector<1x256xi1> to vector<1x256xi32>
    %225 = arith.sitofp %224 : vector<1x256xi32> to vector<1x256xf32>
    %226 = arith.subf %221, %225 : vector<1x256xf32>
    %cst_54 = arith.constant 0.000000e+00 : f32
    %227 = vector.broadcast %cst_54 : f32 to vector<1x256xf32>
    %228 = arith.cmpf oge, %199, %227 : vector<1x256xf32>
    %229 = arith.extui %228 : vector<1x256xi1> to vector<1x256xi32>
    %230 = arith.sitofp %229 : vector<1x256xi32> to vector<1x256xf32>
    %231 = arith.subf %225, %230 : vector<1x256xf32>
    %cst_55 = arith.constant 0.000000e+00 : f32
    %232 = vector.broadcast %cst_55 : f32 to vector<1x256xf32>
    %233 = arith.cmpf oge, %201, %232 : vector<1x256xf32>
    %234 = arith.extui %233 : vector<1x256xi1> to vector<1x256xi32>
    %235 = arith.sitofp %234 : vector<1x256xi32> to vector<1x256xf32>
    %236 = arith.subf %230, %235 : vector<1x256xf32>
    %cst_56 = arith.constant 0.000000e+00 : f32
    %237 = vector.broadcast %cst_56 : f32 to vector<1x256xf32>
    %238 = arith.cmpf oge, %203, %237 : vector<1x256xf32>
    %239 = arith.extui %238 : vector<1x256xi1> to vector<1x256xi32>
    %240 = arith.sitofp %239 : vector<1x256xi32> to vector<1x256xf32>
    %241 = arith.subf %235, %240 : vector<1x256xf32>
    %cst_57 = arith.constant 0.000000e+00 : f32
    %242 = vector.broadcast %cst_57 : f32 to vector<1x256xf32>
    %243 = arith.cmpf oge, %205, %242 : vector<1x256xf32>
    %244 = arith.extui %243 : vector<1x256xi1> to vector<1x256xi32>
    %245 = arith.sitofp %244 : vector<1x256xi32> to vector<1x256xf32>
    %246 = arith.subf %240, %245 : vector<1x256xf32>
    %cst_58 = arith.constant 0.000000e+00 : f32
    %247 = vector.broadcast %cst_58 : f32 to vector<1x256xf32>
    %248 = arith.cmpf oge, %207, %247 : vector<1x256xf32>
    %249 = arith.extui %248 : vector<1x256xi1> to vector<1x256xi32>
    %250 = arith.sitofp %249 : vector<1x256xi32> to vector<1x256xf32>
    %251 = arith.subf %245, %250 : vector<1x256xf32>
    %cst_59 = arith.constant 0.000000e+00 : f32
    %252 = vector.broadcast %cst_59 : f32 to vector<1x256xf32>
    %253 = arith.cmpf oge, %209, %252 : vector<1x256xf32>
    %254 = arith.extui %253 : vector<1x256xi1> to vector<1x256xi32>
    %255 = arith.sitofp %254 : vector<1x256xi32> to vector<1x256xf32>
    %256 = arith.subf %250, %255 : vector<1x256xf32>
    %cst_60 = arith.constant 0.000000e+00 : f32
    %257 = vector.broadcast %cst_60 : f32 to vector<1x256xf32>
    %258 = arith.cmpf oge, %211, %257 : vector<1x256xf32>
    %259 = arith.extui %258 : vector<1x256xi1> to vector<1x256xi32>
    %260 = arith.sitofp %259 : vector<1x256xi32> to vector<1x256xf32>
    %261 = arith.subf %255, %260 : vector<1x256xf32>
    %cst_61 = arith.constant 0.000000e+00 : f32
    %262 = vector.broadcast %cst_61 : f32 to vector<1x256xf32>
    %263 = arith.cmpf oge, %213, %262 : vector<1x256xf32>
    %264 = arith.extui %263 : vector<1x256xi1> to vector<1x256xi32>
    %265 = arith.sitofp %264 : vector<1x256xi32> to vector<1x256xf32>
    %266 = arith.subf %260, %265 : vector<1x256xf32>
    %cst_62 = arith.constant 0.000000e+00 : f32
    %267 = vector.broadcast %cst_62 : f32 to vector<1x256xf32>
    %268 = arith.cmpf oge, %215, %267 : vector<1x256xf32>
    %269 = arith.extui %268 : vector<1x256xi1> to vector<1x256xi32>
    %270 = arith.sitofp %269 : vector<1x256xi32> to vector<1x256xf32>
    %271 = arith.subf %265, %270 : vector<1x256xf32>
    %cst_63 = arith.constant 0.000000e+00 : f32
    %272 = vector.broadcast %cst_63 : f32 to vector<1x256xf32>
    %273 = arith.cmpf oge, %217, %272 : vector<1x256xf32>
    %274 = arith.extui %273 : vector<1x256xi1> to vector<1x256xi32>
    %275 = arith.sitofp %274 : vector<1x256xi32> to vector<1x256xf32>
    %276 = arith.subf %270, %275 : vector<1x256xf32>
    %277 = arith.mulf %195, %226 : vector<1x256xf32>
    %278 = arith.mulf %199, %231 : vector<1x256xf32>
    %279 = arith.subf %277, %278 : vector<1x256xf32>
    %280 = arith.mulf %197, %231 : vector<1x256xf32>
    %281 = arith.mulf %201, %236 : vector<1x256xf32>
    %282 = arith.subf %280, %281 : vector<1x256xf32>
    %283 = arith.mulf %199, %236 : vector<1x256xf32>
    %284 = arith.mulf %203, %241 : vector<1x256xf32>
    %285 = arith.subf %283, %284 : vector<1x256xf32>
    %286 = arith.mulf %201, %241 : vector<1x256xf32>
    %287 = arith.mulf %205, %246 : vector<1x256xf32>
    %288 = arith.subf %286, %287 : vector<1x256xf32>
    %289 = arith.mulf %203, %246 : vector<1x256xf32>
    %290 = arith.mulf %207, %251 : vector<1x256xf32>
    %291 = arith.subf %289, %290 : vector<1x256xf32>
    %292 = arith.mulf %205, %251 : vector<1x256xf32>
    %293 = arith.mulf %209, %256 : vector<1x256xf32>
    %294 = arith.subf %292, %293 : vector<1x256xf32>
    %295 = arith.mulf %207, %256 : vector<1x256xf32>
    %296 = arith.mulf %211, %261 : vector<1x256xf32>
    %297 = arith.subf %295, %296 : vector<1x256xf32>
    %298 = arith.mulf %209, %261 : vector<1x256xf32>
    %299 = arith.mulf %213, %266 : vector<1x256xf32>
    %300 = arith.subf %298, %299 : vector<1x256xf32>
    %301 = arith.mulf %211, %266 : vector<1x256xf32>
    %302 = arith.mulf %215, %271 : vector<1x256xf32>
    %303 = arith.subf %301, %302 : vector<1x256xf32>
    %304 = arith.mulf %213, %271 : vector<1x256xf32>
    %305 = arith.mulf %217, %276 : vector<1x256xf32>
    %306 = arith.subf %304, %305 : vector<1x256xf32>
    %307 = arith.mulf %195, %279 : vector<1x256xf32>
    %308 = arith.mulf %201, %282 : vector<1x256xf32>
    %309 = arith.subf %307, %308 : vector<1x256xf32>
    %310 = arith.mulf %197, %282 : vector<1x256xf32>
    %311 = arith.mulf %203, %285 : vector<1x256xf32>
    %312 = arith.subf %310, %311 : vector<1x256xf32>
    %313 = arith.mulf %199, %285 : vector<1x256xf32>
    %314 = arith.mulf %205, %288 : vector<1x256xf32>
    %315 = arith.subf %313, %314 : vector<1x256xf32>
    %316 = arith.mulf %201, %288 : vector<1x256xf32>
    %317 = arith.mulf %207, %291 : vector<1x256xf32>
    %318 = arith.subf %316, %317 : vector<1x256xf32>
    %319 = arith.mulf %203, %291 : vector<1x256xf32>
    %320 = arith.mulf %209, %294 : vector<1x256xf32>
    %321 = arith.subf %319, %320 : vector<1x256xf32>
    %322 = arith.mulf %205, %294 : vector<1x256xf32>
    %323 = arith.mulf %211, %297 : vector<1x256xf32>
    %324 = arith.subf %322, %323 : vector<1x256xf32>
    %325 = arith.mulf %207, %297 : vector<1x256xf32>
    %326 = arith.mulf %213, %300 : vector<1x256xf32>
    %327 = arith.subf %325, %326 : vector<1x256xf32>
    %328 = arith.mulf %209, %300 : vector<1x256xf32>
    %329 = arith.mulf %215, %303 : vector<1x256xf32>
    %330 = arith.subf %328, %329 : vector<1x256xf32>
    %331 = arith.mulf %211, %303 : vector<1x256xf32>
    %332 = arith.mulf %217, %306 : vector<1x256xf32>
    %333 = arith.subf %331, %332 : vector<1x256xf32>
    %334 = arith.mulf %195, %309 : vector<1x256xf32>
    %335 = arith.mulf %203, %312 : vector<1x256xf32>
    %336 = arith.subf %334, %335 : vector<1x256xf32>
    %337 = arith.mulf %197, %312 : vector<1x256xf32>
    %338 = arith.mulf %205, %315 : vector<1x256xf32>
    %339 = arith.subf %337, %338 : vector<1x256xf32>
    %340 = arith.mulf %199, %315 : vector<1x256xf32>
    %341 = arith.mulf %207, %318 : vector<1x256xf32>
    %342 = arith.subf %340, %341 : vector<1x256xf32>
    %343 = arith.mulf %201, %318 : vector<1x256xf32>
    %344 = arith.mulf %209, %321 : vector<1x256xf32>
    %345 = arith.subf %343, %344 : vector<1x256xf32>
    %346 = arith.mulf %203, %321 : vector<1x256xf32>
    %347 = arith.mulf %211, %324 : vector<1x256xf32>
    %348 = arith.subf %346, %347 : vector<1x256xf32>
    %349 = arith.mulf %205, %324 : vector<1x256xf32>
    %350 = arith.mulf %213, %327 : vector<1x256xf32>
    %351 = arith.subf %349, %350 : vector<1x256xf32>
    %352 = arith.mulf %207, %327 : vector<1x256xf32>
    %353 = arith.mulf %215, %330 : vector<1x256xf32>
    %354 = arith.subf %352, %353 : vector<1x256xf32>
    %355 = arith.mulf %209, %330 : vector<1x256xf32>
    %356 = arith.mulf %217, %333 : vector<1x256xf32>
    %357 = arith.subf %355, %356 : vector<1x256xf32>
    %cst_64 = arith.constant 0.000000e+00 : f32
    %358 = vector.broadcast %cst_64 : f32 to vector<1x256xf32>
    %359 = arith.subf %358, %193 : vector<1x256xf32>
    %360 = math.exp %359 : vector<1x256xf32>
    %cst_65 = arith.constant 1.000000e+00 : f32
    %361 = vector.broadcast %cst_65 : f32 to vector<1x256xf32>
    %362 = arith.addf %361, %360 : vector<1x256xf32>
    %363 = tpu.reciprocal %362 {approx = true} : vector<1x256xf32> -> vector<1x256xf32>
    %364 = arith.mulf %193, %363 : vector<1x256xf32>
    %365 = arith.truncf %364 : vector<1x256xf32> to vector<1x256xbf16>
    %c0_66 = arith.constant 0 : index
    %c384 = arith.constant 384 : index
    %366 = vector.load %arg4[%c0_66, %c384] : memref<9x1280xbf16, #tpu.memory_space<vmem>>, vector<1x256xbf16>
    tpu.vector_store %arg4[%c0_66, %c384], %365 {strides = array<i32>} : memref<9x1280xbf16, #tpu.memory_space<vmem>>, vector<1x256xbf16>,
    %367 = arith.truncf %336 : vector<1x256xf32> to vector<1x256xbf16>
    %c1_67 = arith.constant 1 : index
    %c384_68 = arith.constant 384 : index
    %368 = vector.load %arg4[%c1_67, %c384_68] : memref<9x1280xbf16, #tpu.memory_space<vmem>>, vector<1x256xbf16>
    tpu.vector_store %arg4[%c1_67, %c384_68], %367 {strides = array<i32>} : memref<9x1280xbf16, #tpu.memory_space<vmem>>, vector<1x256xbf16>,
    %369 = arith.truncf %339 : vector<1x256xf32> to vector<1x256xbf16>
    %c2_69 = arith.constant 2 : index
    %c384_70 = arith.constant 384 : index
    %370 = vector.load %arg4[%c2_69, %c384_70] : memref<9x1280xbf16, #tpu.memory_space<vmem>>, vector<1x256xbf16>
    tpu.vector_store %arg4[%c2_69, %c384_70], %369 {strides = array<i32>} : memref<9x1280xbf16, #tpu.memory_space<vmem>>, vector<1x256xbf16>,
    %371 = arith.truncf %342 : vector<1x256xf32> to vector<1x256xbf16>
    %c3_71 = arith.constant 3 : index
    %c384_72 = arith.constant 384 : index
    %372 = vector.load %arg4[%c3_71, %c384_72] : memref<9x1280xbf16, #tpu.memory_space<vmem>>, vector<1x256xbf16>
    tpu.vector_store %arg4[%c3_71, %c384_72], %371 {strides = array<i32>} : memref<9x1280xbf16, #tpu.memory_space<vmem>>, vector<1x256xbf16>,
    %373 = arith.truncf %345 : vector<1x256xf32> to vector<1x256xbf16>
    %c4_73 = arith.constant 4 : index
    %c384_74 = arith.constant 384 : index
    %374 = vector.load %arg4[%c4_73, %c384_74] : memref<9x1280xbf16, #tpu.memory_space<vmem>>, vector<1x256xbf16>
    tpu.vector_store %arg4[%c4_73, %c384_74], %373 {strides = array<i32>} : memref<9x1280xbf16, #tpu.memory_space<vmem>>, vector<1x256xbf16>,
    %375 = arith.truncf %348 : vector<1x256xf32> to vector<1x256xbf16>
    %c5_75 = arith.constant 5 : index
    %c384_76 = arith.constant 384 : index
    %376 = vector.load %arg4[%c5_75, %c384_76] : memref<9x1280xbf16, #tpu.memory_space<vmem>>, vector<1x256xbf16>
    tpu.vector_store %arg4[%c5_75, %c384_76], %375 {strides = array<i32>} : memref<9x1280xbf16, #tpu.memory_space<vmem>>, vector<1x256xbf16>,
    %377 = arith.truncf %351 : vector<1x256xf32> to vector<1x256xbf16>
    %c6_77 = arith.constant 6 : index
    %c384_78 = arith.constant 384 : index
    %378 = vector.load %arg4[%c6_77, %c384_78] : memref<9x1280xbf16, #tpu.memory_space<vmem>>, vector<1x256xbf16>
    tpu.vector_store %arg4[%c6_77, %c384_78], %377 {strides = array<i32>} : memref<9x1280xbf16, #tpu.memory_space<vmem>>, vector<1x256xbf16>,
    %379 = arith.truncf %354 : vector<1x256xf32> to vector<1x256xbf16>
    %c7_79 = arith.constant 7 : index
    %c384_80 = arith.constant 384 : index
    %380 = vector.load %arg4[%c7_79, %c384_80] : memref<9x1280xbf16, #tpu.memory_space<vmem>>, vector<1x256xbf16>
    tpu.vector_store %arg4[%c7_79, %c384_80], %379 {strides = array<i32>} : memref<9x1280xbf16, #tpu.memory_space<vmem>>, vector<1x256xbf16>,
    %381 = arith.truncf %357 : vector<1x256xf32> to vector<1x256xbf16>
    %c8_81 = arith.constant 8 : index
    %c384_82 = arith.constant 384 : index
    %382 = vector.load %arg4[%c8_81, %c384_82] : memref<9x1280xbf16, #tpu.memory_space<vmem>>, vector<1x256xbf16>
    tpu.vector_store %arg4[%c8_81, %c384_82], %381 {strides = array<i32>} : memref<9x1280xbf16, #tpu.memory_space<vmem>>, vector<1x256xbf16>,
    %c0_83 = arith.constant 0 : index
    %c512 = arith.constant 512 : index
    %383 = vector.load %arg1[%c0_83, %c512] : memref<1x1024xf32, #tpu.memory_space<vmem>>, vector<1x256xf32>
    %cst_84 = arith.constant -2.200000e+00 : f32
    %384 = vector.broadcast %cst_84 : f32 to vector<1x256xf32>
    %385 = arith.subf %383, %384 : vector<1x256xf32>
    %cst_85 = arith.constant -1.800000e+00 : f32
    %386 = vector.broadcast %cst_85 : f32 to vector<1x256xf32>
    %387 = arith.subf %383, %386 : vector<1x256xf32>
    %cst_86 = arith.constant -1.400000e+00 : f32
    %388 = vector.broadcast %cst_86 : f32 to vector<1x256xf32>
    %389 = arith.subf %383, %388 : vector<1x256xf32>
    %cst_87 = arith.constant -1.000000e+00 : f32
    %390 = vector.broadcast %cst_87 : f32 to vector<1x256xf32>
    %391 = arith.subf %383, %390 : vector<1x256xf32>
    %cst_88 = arith.constant -6.000000e-01 : f32
    %392 = vector.broadcast %cst_88 : f32 to vector<1x256xf32>
    %393 = arith.subf %383, %392 : vector<1x256xf32>
    %cst_89 = arith.constant -2.000000e-01 : f32
    %394 = vector.broadcast %cst_89 : f32 to vector<1x256xf32>
    %395 = arith.subf %383, %394 : vector<1x256xf32>
    %cst_90 = arith.constant 2.000000e-01 : f32
    %396 = vector.broadcast %cst_90 : f32 to vector<1x256xf32>
    %397 = arith.subf %383, %396 : vector<1x256xf32>
    %cst_91 = arith.constant 6.000000e-01 : f32
    %398 = vector.broadcast %cst_91 : f32 to vector<1x256xf32>
    %399 = arith.subf %383, %398 : vector<1x256xf32>
    %cst_92 = arith.constant 1.000000e+00 : f32
    %400 = vector.broadcast %cst_92 : f32 to vector<1x256xf32>
    %401 = arith.subf %383, %400 : vector<1x256xf32>
    %cst_93 = arith.constant 1.400000e+00 : f32
    %402 = vector.broadcast %cst_93 : f32 to vector<1x256xf32>
    %403 = arith.subf %383, %402 : vector<1x256xf32>
    %cst_94 = arith.constant 1.800000e+00 : f32
    %404 = vector.broadcast %cst_94 : f32 to vector<1x256xf32>
    %405 = arith.subf %383, %404 : vector<1x256xf32>
    %cst_95 = arith.constant 2.200000e+00 : f32
    %406 = vector.broadcast %cst_95 : f32 to vector<1x256xf32>
    %407 = arith.subf %383, %406 : vector<1x256xf32>
    %cst_96 = arith.constant 0.000000e+00 : f32
    %408 = vector.broadcast %cst_96 : f32 to vector<1x256xf32>
    %409 = arith.cmpf oge, %385, %408 : vector<1x256xf32>
    %410 = arith.extui %409 : vector<1x256xi1> to vector<1x256xi32>
    %411 = arith.sitofp %410 : vector<1x256xi32> to vector<1x256xf32>
    %cst_97 = arith.constant 0.000000e+00 : f32
    %412 = vector.broadcast %cst_97 : f32 to vector<1x256xf32>
    %413 = arith.cmpf oge, %387, %412 : vector<1x256xf32>
    %414 = arith.extui %413 : vector<1x256xi1> to vector<1x256xi32>
    %415 = arith.sitofp %414 : vector<1x256xi32> to vector<1x256xf32>
    %416 = arith.subf %411, %415 : vector<1x256xf32>
    %cst_98 = arith.constant 0.000000e+00 : f32
    %417 = vector.broadcast %cst_98 : f32 to vector<1x256xf32>
    %418 = arith.cmpf oge, %389, %417 : vector<1x256xf32>
    %419 = arith.extui %418 : vector<1x256xi1> to vector<1x256xi32>
    %420 = arith.sitofp %419 : vector<1x256xi32> to vector<1x256xf32>
    %421 = arith.subf %415, %420 : vector<1x256xf32>
    %cst_99 = arith.constant 0.000000e+00 : f32
    %422 = vector.broadcast %cst_99 : f32 to vector<1x256xf32>
    %423 = arith.cmpf oge, %391, %422 : vector<1x256xf32>
    %424 = arith.extui %423 : vector<1x256xi1> to vector<1x256xi32>
    %425 = arith.sitofp %424 : vector<1x256xi32> to vector<1x256xf32>
    %426 = arith.subf %420, %425 : vector<1x256xf32>
    %cst_100 = arith.constant 0.000000e+00 : f32
    %427 = vector.broadcast %cst_100 : f32 to vector<1x256xf32>
    %428 = arith.cmpf oge, %393, %427 : vector<1x256xf32>
    %429 = arith.extui %428 : vector<1x256xi1> to vector<1x256xi32>
    %430 = arith.sitofp %429 : vector<1x256xi32> to vector<1x256xf32>
    %431 = arith.subf %425, %430 : vector<1x256xf32>
    %cst_101 = arith.constant 0.000000e+00 : f32
    %432 = vector.broadcast %cst_101 : f32 to vector<1x256xf32>
    %433 = arith.cmpf oge, %395, %432 : vector<1x256xf32>
    %434 = arith.extui %433 : vector<1x256xi1> to vector<1x256xi32>
    %435 = arith.sitofp %434 : vector<1x256xi32> to vector<1x256xf32>
    %436 = arith.subf %430, %435 : vector<1x256xf32>
    %cst_102 = arith.constant 0.000000e+00 : f32
    %437 = vector.broadcast %cst_102 : f32 to vector<1x256xf32>
    %438 = arith.cmpf oge, %397, %437 : vector<1x256xf32>
    %439 = arith.extui %438 : vector<1x256xi1> to vector<1x256xi32>
    %440 = arith.sitofp %439 : vector<1x256xi32> to vector<1x256xf32>
    %441 = arith.subf %435, %440 : vector<1x256xf32>
    %cst_103 = arith.constant 0.000000e+00 : f32
    %442 = vector.broadcast %cst_103 : f32 to vector<1x256xf32>
    %443 = arith.cmpf oge, %399, %442 : vector<1x256xf32>
    %444 = arith.extui %443 : vector<1x256xi1> to vector<1x256xi32>
    %445 = arith.sitofp %444 : vector<1x256xi32> to vector<1x256xf32>
    %446 = arith.subf %440, %445 : vector<1x256xf32>
    %cst_104 = arith.constant 0.000000e+00 : f32
    %447 = vector.broadcast %cst_104 : f32 to vector<1x256xf32>
    %448 = arith.cmpf oge, %401, %447 : vector<1x256xf32>
    %449 = arith.extui %448 : vector<1x256xi1> to vector<1x256xi32>
    %450 = arith.sitofp %449 : vector<1x256xi32> to vector<1x256xf32>
    %451 = arith.subf %445, %450 : vector<1x256xf32>
    %cst_105 = arith.constant 0.000000e+00 : f32
    %452 = vector.broadcast %cst_105 : f32 to vector<1x256xf32>
    %453 = arith.cmpf oge, %403, %452 : vector<1x256xf32>
    %454 = arith.extui %453 : vector<1x256xi1> to vector<1x256xi32>
    %455 = arith.sitofp %454 : vector<1x256xi32> to vector<1x256xf32>
    %456 = arith.subf %450, %455 : vector<1x256xf32>
    %cst_106 = arith.constant 0.000000e+00 : f32
    %457 = vector.broadcast %cst_106 : f32 to vector<1x256xf32>
    %458 = arith.cmpf oge, %405, %457 : vector<1x256xf32>
    %459 = arith.extui %458 : vector<1x256xi1> to vector<1x256xi32>
    %460 = arith.sitofp %459 : vector<1x256xi32> to vector<1x256xf32>
    %461 = arith.subf %455, %460 : vector<1x256xf32>
    %cst_107 = arith.constant 0.000000e+00 : f32
    %462 = vector.broadcast %cst_107 : f32 to vector<1x256xf32>
    %463 = arith.cmpf oge, %407, %462 : vector<1x256xf32>
    %464 = arith.extui %463 : vector<1x256xi1> to vector<1x256xi32>
    %465 = arith.sitofp %464 : vector<1x256xi32> to vector<1x256xf32>
    %466 = arith.subf %460, %465 : vector<1x256xf32>
    %467 = arith.mulf %385, %416 : vector<1x256xf32>
    %468 = arith.mulf %389, %421 : vector<1x256xf32>
    %469 = arith.subf %467, %468 : vector<1x256xf32>
    %470 = arith.mulf %387, %421 : vector<1x256xf32>
    %471 = arith.mulf %391, %426 : vector<1x256xf32>
    %472 = arith.subf %470, %471 : vector<1x256xf32>
    %473 = arith.mulf %389, %426 : vector<1x256xf32>
    %474 = arith.mulf %393, %431 : vector<1x256xf32>
    %475 = arith.subf %473, %474 : vector<1x256xf32>
    %476 = arith.mulf %391, %431 : vector<1x256xf32>
    %477 = arith.mulf %395, %436 : vector<1x256xf32>
    %478 = arith.subf %476, %477 : vector<1x256xf32>
    %479 = arith.mulf %393, %436 : vector<1x256xf32>
    %480 = arith.mulf %397, %441 : vector<1x256xf32>
    %481 = arith.subf %479, %480 : vector<1x256xf32>
    %482 = arith.mulf %395, %441 : vector<1x256xf32>
    %483 = arith.mulf %399, %446 : vector<1x256xf32>
    %484 = arith.subf %482, %483 : vector<1x256xf32>
    %485 = arith.mulf %397, %446 : vector<1x256xf32>
    %486 = arith.mulf %401, %451 : vector<1x256xf32>
    %487 = arith.subf %485, %486 : vector<1x256xf32>
    %488 = arith.mulf %399, %451 : vector<1x256xf32>
    %489 = arith.mulf %403, %456 : vector<1x256xf32>
    %490 = arith.subf %488, %489 : vector<1x256xf32>
    %491 = arith.mulf %401, %456 : vector<1x256xf32>
    %492 = arith.mulf %405, %461 : vector<1x256xf32>
    %493 = arith.subf %491, %492 : vector<1x256xf32>
    %494 = arith.mulf %403, %461 : vector<1x256xf32>
    %495 = arith.mulf %407, %466 : vector<1x256xf32>
    %496 = arith.subf %494, %495 : vector<1x256xf32>
    %497 = arith.mulf %385, %469 : vector<1x256xf32>
    %498 = arith.mulf %391, %472 : vector<1x256xf32>
    %499 = arith.subf %497, %498 : vector<1x256xf32>
    %500 = arith.mulf %387, %472 : vector<1x256xf32>
    %501 = arith.mulf %393, %475 : vector<1x256xf32>
    %502 = arith.subf %500, %501 : vector<1x256xf32>
    %503 = arith.mulf %389, %475 : vector<1x256xf32>
    %504 = arith.mulf %395, %478 : vector<1x256xf32>
    %505 = arith.subf %503, %504 : vector<1x256xf32>
    %506 = arith.mulf %391, %478 : vector<1x256xf32>
    %507 = arith.mulf %397, %481 : vector<1x256xf32>
    %508 = arith.subf %506, %507 : vector<1x256xf32>
    %509 = arith.mulf %393, %481 : vector<1x256xf32>
    %510 = arith.mulf %399, %484 : vector<1x256xf32>
    %511 = arith.subf %509, %510 : vector<1x256xf32>
    %512 = arith.mulf %395, %484 : vector<1x256xf32>
    %513 = arith.mulf %401, %487 : vector<1x256xf32>
    %514 = arith.subf %512, %513 : vector<1x256xf32>
    %515 = arith.mulf %397, %487 : vector<1x256xf32>
    %516 = arith.mulf %403, %490 : vector<1x256xf32>
    %517 = arith.subf %515, %516 : vector<1x256xf32>
    %518 = arith.mulf %399, %490 : vector<1x256xf32>
    %519 = arith.mulf %405, %493 : vector<1x256xf32>
    %520 = arith.subf %518, %519 : vector<1x256xf32>
    %521 = arith.mulf %401, %493 : vector<1x256xf32>
    %522 = arith.mulf %407, %496 : vector<1x256xf32>
    %523 = arith.subf %521, %522 : vector<1x256xf32>
    %524 = arith.mulf %385, %499 : vector<1x256xf32>
    %525 = arith.mulf %393, %502 : vector<1x256xf32>
    %526 = arith.subf %524, %525 : vector<1x256xf32>
    %527 = arith.mulf %387, %502 : vector<1x256xf32>
    %528 = arith.mulf %395, %505 : vector<1x256xf32>
    %529 = arith.subf %527, %528 : vector<1x256xf32>
    %530 = arith.mulf %389, %505 : vector<1x256xf32>
    %531 = arith.mulf %397, %508 : vector<1x256xf32>
    %532 = arith.subf %530, %531 : vector<1x256xf32>
    %533 = arith.mulf %391, %508 : vector<1x256xf32>
    %534 = arith.mulf %399, %511 : vector<1x256xf32>
    %535 = arith.subf %533, %534 : vector<1x256xf32>
    %536 = arith.mulf %393, %511 : vector<1x256xf32>
    %537 = arith.mulf %401, %514 : vector<1x256xf32>
    %538 = arith.subf %536, %537 : vector<1x256xf32>
    %539 = arith.mulf %395, %514 : vector<1x256xf32>
    %540 = arith.mulf %403, %517 : vector<1x256xf32>
    %541 = arith.subf %539, %540 : vector<1x256xf32>
    %542 = arith.mulf %397, %517 : vector<1x256xf32>
    %543 = arith.mulf %405, %520 : vector<1x256xf32>
    %544 = arith.subf %542, %543 : vector<1x256xf32>
    %545 = arith.mulf %399, %520 : vector<1x256xf32>
    %546 = arith.mulf %407, %523 : vector<1x256xf32>
    %547 = arith.subf %545, %546 : vector<1x256xf32>
    %cst_108 = arith.constant 0.000000e+00 : f32
    %548 = vector.broadcast %cst_108 : f32 to vector<1x256xf32>
    %549 = arith.subf %548, %383 : vector<1x256xf32>
    %550 = math.exp %549 : vector<1x256xf32>
    %cst_109 = arith.constant 1.000000e+00 : f32
    %551 = vector.broadcast %cst_109 : f32 to vector<1x256xf32>
    %552 = arith.addf %551, %550 : vector<1x256xf32>
    %553 = tpu.reciprocal %552 {approx = true} : vector<1x256xf32> -> vector<1x256xf32>
    %554 = arith.mulf %383, %553 : vector<1x256xf32>
    %555 = arith.truncf %554 : vector<1x256xf32> to vector<1x256xbf16>
    %c0_110 = arith.constant 0 : index
    %c640 = arith.constant 640 : index
    %556 = vector.load %arg4[%c0_110, %c640] : memref<9x1280xbf16, #tpu.memory_space<vmem>>, vector<1x256xbf16>
    tpu.vector_store %arg4[%c0_110, %c640], %555 {strides = array<i32>} : memref<9x1280xbf16, #tpu.memory_space<vmem>>, vector<1x256xbf16>,
    %557 = arith.truncf %526 : vector<1x256xf32> to vector<1x256xbf16>
    %c1_111 = arith.constant 1 : index
    %c640_112 = arith.constant 640 : index
    %558 = vector.load %arg4[%c1_111, %c640_112] : memref<9x1280xbf16, #tpu.memory_space<vmem>>, vector<1x256xbf16>
    tpu.vector_store %arg4[%c1_111, %c640_112], %557 {strides = array<i32>} : memref<9x1280xbf16, #tpu.memory_space<vmem>>, vector<1x256xbf16>,
    %559 = arith.truncf %529 : vector<1x256xf32> to vector<1x256xbf16>
    %c2_113 = arith.constant 2 : index
    %c640_114 = arith.constant 640 : index
    %560 = vector.load %arg4[%c2_113, %c640_114] : memref<9x1280xbf16, #tpu.memory_space<vmem>>, vector<1x256xbf16>
    tpu.vector_store %arg4[%c2_113, %c640_114], %559 {strides = array<i32>} : memref<9x1280xbf16, #tpu.memory_space<vmem>>, vector<1x256xbf16>,
    %561 = arith.truncf %532 : vector<1x256xf32> to vector<1x256xbf16>
    %c3_115 = arith.constant 3 : index
    %c640_116 = arith.constant 640 : index
    %562 = vector.load %arg4[%c3_115, %c640_116] : memref<9x1280xbf16, #tpu.memory_space<vmem>>, vector<1x256xbf16>
    tpu.vector_store %arg4[%c3_115, %c640_116], %561 {strides = array<i32>} : memref<9x1280xbf16, #tpu.memory_space<vmem>>, vector<1x256xbf16>,
    %563 = arith.truncf %535 : vector<1x256xf32> to vector<1x256xbf16>
    %c4_117 = arith.constant 4 : index
    %c640_118 = arith.constant 640 : index
    %564 = vector.load %arg4[%c4_117, %c640_118] : memref<9x1280xbf16, #tpu.memory_space<vmem>>, vector<1x256xbf16>
    tpu.vector_store %arg4[%c4_117, %c640_118], %563 {strides = array<i32>} : memref<9x1280xbf16, #tpu.memory_space<vmem>>, vector<1x256xbf16>,
    %565 = arith.truncf %538 : vector<1x256xf32> to vector<1x256xbf16>
    %c5_119 = arith.constant 5 : index
    %c640_120 = arith.constant 640 : index
    %566 = vector.load %arg4[%c5_119, %c640_120] : memref<9x1280xbf16, #tpu.memory_space<vmem>>, vector<1x256xbf16>
    tpu.vector_store %arg4[%c5_119, %c640_120], %565 {strides = array<i32>} : memref<9x1280xbf16, #tpu.memory_space<vmem>>, vector<1x256xbf16>,
    %567 = arith.truncf %541 : vector<1x256xf32> to vector<1x256xbf16>
    %c6_121 = arith.constant 6 : index
    %c640_122 = arith.constant 640 : index
    %568 = vector.load %arg4[%c6_121, %c640_122] : memref<9x1280xbf16, #tpu.memory_space<vmem>>, vector<1x256xbf16>
    tpu.vector_store %arg4[%c6_121, %c640_122], %567 {strides = array<i32>} : memref<9x1280xbf16, #tpu.memory_space<vmem>>, vector<1x256xbf16>,
    %569 = arith.truncf %544 : vector<1x256xf32> to vector<1x256xbf16>
    %c7_123 = arith.constant 7 : index
    %c640_124 = arith.constant 640 : index
    %570 = vector.load %arg4[%c7_123, %c640_124] : memref<9x1280xbf16, #tpu.memory_space<vmem>>, vector<1x256xbf16>
    tpu.vector_store %arg4[%c7_123, %c640_124], %569 {strides = array<i32>} : memref<9x1280xbf16, #tpu.memory_space<vmem>>, vector<1x256xbf16>,
    %571 = arith.truncf %547 : vector<1x256xf32> to vector<1x256xbf16>
    %c8_125 = arith.constant 8 : index
    %c640_126 = arith.constant 640 : index
    %572 = vector.load %arg4[%c8_125, %c640_126] : memref<9x1280xbf16, #tpu.memory_space<vmem>>, vector<1x256xbf16>
    tpu.vector_store %arg4[%c8_125, %c640_126], %571 {strides = array<i32>} : memref<9x1280xbf16, #tpu.memory_space<vmem>>, vector<1x256xbf16>,
    %c0_127 = arith.constant 0 : index
    %c768 = arith.constant 768 : index
    %573 = vector.load %arg1[%c0_127, %c768] : memref<1x1024xf32, #tpu.memory_space<vmem>>, vector<1x256xf32>
    %cst_128 = arith.constant -2.200000e+00 : f32
    %574 = vector.broadcast %cst_128 : f32 to vector<1x256xf32>
    %575 = arith.subf %573, %574 : vector<1x256xf32>
    %cst_129 = arith.constant -1.800000e+00 : f32
    %576 = vector.broadcast %cst_129 : f32 to vector<1x256xf32>
    %577 = arith.subf %573, %576 : vector<1x256xf32>
    %cst_130 = arith.constant -1.400000e+00 : f32
    %578 = vector.broadcast %cst_130 : f32 to vector<1x256xf32>
    %579 = arith.subf %573, %578 : vector<1x256xf32>
    %cst_131 = arith.constant -1.000000e+00 : f32
    %580 = vector.broadcast %cst_131 : f32 to vector<1x256xf32>
    %581 = arith.subf %573, %580 : vector<1x256xf32>
    %cst_132 = arith.constant -6.000000e-01 : f32
    %582 = vector.broadcast %cst_132 : f32 to vector<1x256xf32>
    %583 = arith.subf %573, %582 : vector<1x256xf32>
    %cst_133 = arith.constant -2.000000e-01 : f32
    %584 = vector.broadcast %cst_133 : f32 to vector<1x256xf32>
    %585 = arith.subf %573, %584 : vector<1x256xf32>
    %cst_134 = arith.constant 2.000000e-01 : f32
    %586 = vector.broadcast %cst_134 : f32 to vector<1x256xf32>
    %587 = arith.subf %573, %586 : vector<1x256xf32>
    %cst_135 = arith.constant 6.000000e-01 : f32
    %588 = vector.broadcast %cst_135 : f32 to vector<1x256xf32>
    %589 = arith.subf %573, %588 : vector<1x256xf32>
    %cst_136 = arith.constant 1.000000e+00 : f32
    %590 = vector.broadcast %cst_136 : f32 to vector<1x256xf32>
    %591 = arith.subf %573, %590 : vector<1x256xf32>
    %cst_137 = arith.constant 1.400000e+00 : f32
    %592 = vector.broadcast %cst_137 : f32 to vector<1x256xf32>
    %593 = arith.subf %573, %592 : vector<1x256xf32>
    %cst_138 = arith.constant 1.800000e+00 : f32
    %594 = vector.broadcast %cst_138 : f32 to vector<1x256xf32>
    %595 = arith.subf %573, %594 : vector<1x256xf32>
    %cst_139 = arith.constant 2.200000e+00 : f32
    %596 = vector.broadcast %cst_139 : f32 to vector<1x256xf32>
    %597 = arith.subf %573, %596 : vector<1x256xf32>
    %cst_140 = arith.constant 0.000000e+00 : f32
    %598 = vector.broadcast %cst_140 : f32 to vector<1x256xf32>
    %599 = arith.cmpf oge, %575, %598 : vector<1x256xf32>
    %600 = arith.extui %599 : vector<1x256xi1> to vector<1x256xi32>
    %601 = arith.sitofp %600 : vector<1x256xi32> to vector<1x256xf32>
    %cst_141 = arith.constant 0.000000e+00 : f32
    %602 = vector.broadcast %cst_141 : f32 to vector<1x256xf32>
    %603 = arith.cmpf oge, %577, %602 : vector<1x256xf32>
    %604 = arith.extui %603 : vector<1x256xi1> to vector<1x256xi32>
    %605 = arith.sitofp %604 : vector<1x256xi32> to vector<1x256xf32>
    %606 = arith.subf %601, %605 : vector<1x256xf32>
    %cst_142 = arith.constant 0.000000e+00 : f32
    %607 = vector.broadcast %cst_142 : f32 to vector<1x256xf32>
    %608 = arith.cmpf oge, %579, %607 : vector<1x256xf32>
    %609 = arith.extui %608 : vector<1x256xi1> to vector<1x256xi32>
    %610 = arith.sitofp %609 : vector<1x256xi32> to vector<1x256xf32>
    %611 = arith.subf %605, %610 : vector<1x256xf32>
    %cst_143 = arith.constant 0.000000e+00 : f32
    %612 = vector.broadcast %cst_143 : f32 to vector<1x256xf32>
    %613 = arith.cmpf oge, %581, %612 : vector<1x256xf32>
    %614 = arith.extui %613 : vector<1x256xi1> to vector<1x256xi32>
    %615 = arith.sitofp %614 : vector<1x256xi32> to vector<1x256xf32>
    %616 = arith.subf %610, %615 : vector<1x256xf32>
    %cst_144 = arith.constant 0.000000e+00 : f32
    %617 = vector.broadcast %cst_144 : f32 to vector<1x256xf32>
    %618 = arith.cmpf oge, %583, %617 : vector<1x256xf32>
    %619 = arith.extui %618 : vector<1x256xi1> to vector<1x256xi32>
    %620 = arith.sitofp %619 : vector<1x256xi32> to vector<1x256xf32>
    %621 = arith.subf %615, %620 : vector<1x256xf32>
    %cst_145 = arith.constant 0.000000e+00 : f32
    %622 = vector.broadcast %cst_145 : f32 to vector<1x256xf32>
    %623 = arith.cmpf oge, %585, %622 : vector<1x256xf32>
    %624 = arith.extui %623 : vector<1x256xi1> to vector<1x256xi32>
    %625 = arith.sitofp %624 : vector<1x256xi32> to vector<1x256xf32>
    %626 = arith.subf %620, %625 : vector<1x256xf32>
    %cst_146 = arith.constant 0.000000e+00 : f32
    %627 = vector.broadcast %cst_146 : f32 to vector<1x256xf32>
    %628 = arith.cmpf oge, %587, %627 : vector<1x256xf32>
    %629 = arith.extui %628 : vector<1x256xi1> to vector<1x256xi32>
    %630 = arith.sitofp %629 : vector<1x256xi32> to vector<1x256xf32>
    %631 = arith.subf %625, %630 : vector<1x256xf32>
    %cst_147 = arith.constant 0.000000e+00 : f32
    %632 = vector.broadcast %cst_147 : f32 to vector<1x256xf32>
    %633 = arith.cmpf oge, %589, %632 : vector<1x256xf32>
    %634 = arith.extui %633 : vector<1x256xi1> to vector<1x256xi32>
    %635 = arith.sitofp %634 : vector<1x256xi32> to vector<1x256xf32>
    %636 = arith.subf %630, %635 : vector<1x256xf32>
    %cst_148 = arith.constant 0.000000e+00 : f32
    %637 = vector.broadcast %cst_148 : f32 to vector<1x256xf32>
    %638 = arith.cmpf oge, %591, %637 : vector<1x256xf32>
    %639 = arith.extui %638 : vector<1x256xi1> to vector<1x256xi32>
    %640 = arith.sitofp %639 : vector<1x256xi32> to vector<1x256xf32>
    %641 = arith.subf %635, %640 : vector<1x256xf32>
    %cst_149 = arith.constant 0.000000e+00 : f32
    %642 = vector.broadcast %cst_149 : f32 to vector<1x256xf32>
    %643 = arith.cmpf oge, %593, %642 : vector<1x256xf32>
    %644 = arith.extui %643 : vector<1x256xi1> to vector<1x256xi32>
    %645 = arith.sitofp %644 : vector<1x256xi32> to vector<1x256xf32>
    %646 = arith.subf %640, %645 : vector<1x256xf32>
    %cst_150 = arith.constant 0.000000e+00 : f32
    %647 = vector.broadcast %cst_150 : f32 to vector<1x256xf32>
    %648 = arith.cmpf oge, %595, %647 : vector<1x256xf32>
    %649 = arith.extui %648 : vector<1x256xi1> to vector<1x256xi32>
    %650 = arith.sitofp %649 : vector<1x256xi32> to vector<1x256xf32>
    %651 = arith.subf %645, %650 : vector<1x256xf32>
    %cst_151 = arith.constant 0.000000e+00 : f32
    %652 = vector.broadcast %cst_151 : f32 to vector<1x256xf32>
    %653 = arith.cmpf oge, %597, %652 : vector<1x256xf32>
    %654 = arith.extui %653 : vector<1x256xi1> to vector<1x256xi32>
    %655 = arith.sitofp %654 : vector<1x256xi32> to vector<1x256xf32>
    %656 = arith.subf %650, %655 : vector<1x256xf32>
    %657 = arith.mulf %575, %606 : vector<1x256xf32>
    %658 = arith.mulf %579, %611 : vector<1x256xf32>
    %659 = arith.subf %657, %658 : vector<1x256xf32>
    %660 = arith.mulf %577, %611 : vector<1x256xf32>
    %661 = arith.mulf %581, %616 : vector<1x256xf32>
    %662 = arith.subf %660, %661 : vector<1x256xf32>
    %663 = arith.mulf %579, %616 : vector<1x256xf32>
    %664 = arith.mulf %583, %621 : vector<1x256xf32>
    %665 = arith.subf %663, %664 : vector<1x256xf32>
    %666 = arith.mulf %581, %621 : vector<1x256xf32>
    %667 = arith.mulf %585, %626 : vector<1x256xf32>
    %668 = arith.subf %666, %667 : vector<1x256xf32>
    %669 = arith.mulf %583, %626 : vector<1x256xf32>
    %670 = arith.mulf %587, %631 : vector<1x256xf32>
    %671 = arith.subf %669, %670 : vector<1x256xf32>
    %672 = arith.mulf %585, %631 : vector<1x256xf32>
    %673 = arith.mulf %589, %636 : vector<1x256xf32>
    %674 = arith.subf %672, %673 : vector<1x256xf32>
    %675 = arith.mulf %587, %636 : vector<1x256xf32>
    %676 = arith.mulf %591, %641 : vector<1x256xf32>
    %677 = arith.subf %675, %676 : vector<1x256xf32>
    %678 = arith.mulf %589, %641 : vector<1x256xf32>
    %679 = arith.mulf %593, %646 : vector<1x256xf32>
    %680 = arith.subf %678, %679 : vector<1x256xf32>
    %681 = arith.mulf %591, %646 : vector<1x256xf32>
    %682 = arith.mulf %595, %651 : vector<1x256xf32>
    %683 = arith.subf %681, %682 : vector<1x256xf32>
    %684 = arith.mulf %593, %651 : vector<1x256xf32>
    %685 = arith.mulf %597, %656 : vector<1x256xf32>
    %686 = arith.subf %684, %685 : vector<1x256xf32>
    %687 = arith.mulf %575, %659 : vector<1x256xf32>
    %688 = arith.mulf %581, %662 : vector<1x256xf32>
    %689 = arith.subf %687, %688 : vector<1x256xf32>
    %690 = arith.mulf %577, %662 : vector<1x256xf32>
    %691 = arith.mulf %583, %665 : vector<1x256xf32>
    %692 = arith.subf %690, %691 : vector<1x256xf32>
    %693 = arith.mulf %579, %665 : vector<1x256xf32>
    %694 = arith.mulf %585, %668 : vector<1x256xf32>
    %695 = arith.subf %693, %694 : vector<1x256xf32>
    %696 = arith.mulf %581, %668 : vector<1x256xf32>
    %697 = arith.mulf %587, %671 : vector<1x256xf32>
    %698 = arith.subf %696, %697 : vector<1x256xf32>
    %699 = arith.mulf %583, %671 : vector<1x256xf32>
    %700 = arith.mulf %589, %674 : vector<1x256xf32>
    %701 = arith.subf %699, %700 : vector<1x256xf32>
    %702 = arith.mulf %585, %674 : vector<1x256xf32>
    %703 = arith.mulf %591, %677 : vector<1x256xf32>
    %704 = arith.subf %702, %703 : vector<1x256xf32>
    %705 = arith.mulf %587, %677 : vector<1x256xf32>
    %706 = arith.mulf %593, %680 : vector<1x256xf32>
    %707 = arith.subf %705, %706 : vector<1x256xf32>
    %708 = arith.mulf %589, %680 : vector<1x256xf32>
    %709 = arith.mulf %595, %683 : vector<1x256xf32>
    %710 = arith.subf %708, %709 : vector<1x256xf32>
    %711 = arith.mulf %591, %683 : vector<1x256xf32>
    %712 = arith.mulf %597, %686 : vector<1x256xf32>
    %713 = arith.subf %711, %712 : vector<1x256xf32>
    %714 = arith.mulf %575, %689 : vector<1x256xf32>
    %715 = arith.mulf %583, %692 : vector<1x256xf32>
    %716 = arith.subf %714, %715 : vector<1x256xf32>
    %717 = arith.mulf %577, %692 : vector<1x256xf32>
    %718 = arith.mulf %585, %695 : vector<1x256xf32>
    %719 = arith.subf %717, %718 : vector<1x256xf32>
    %720 = arith.mulf %579, %695 : vector<1x256xf32>
    %721 = arith.mulf %587, %698 : vector<1x256xf32>
    %722 = arith.subf %720, %721 : vector<1x256xf32>
    %723 = arith.mulf %581, %698 : vector<1x256xf32>
    %724 = arith.mulf %589, %701 : vector<1x256xf32>
    %725 = arith.subf %723, %724 : vector<1x256xf32>
    %726 = arith.mulf %583, %701 : vector<1x256xf32>
    %727 = arith.mulf %591, %704 : vector<1x256xf32>
    %728 = arith.subf %726, %727 : vector<1x256xf32>
    %729 = arith.mulf %585, %704 : vector<1x256xf32>
    %730 = arith.mulf %593, %707 : vector<1x256xf32>
    %731 = arith.subf %729, %730 : vector<1x256xf32>
    %732 = arith.mulf %587, %707 : vector<1x256xf32>
    %733 = arith.mulf %595, %710 : vector<1x256xf32>
    %734 = arith.subf %732, %733 : vector<1x256xf32>
    %735 = arith.mulf %589, %710 : vector<1x256xf32>
    %736 = arith.mulf %597, %713 : vector<1x256xf32>
    %737 = arith.subf %735, %736 : vector<1x256xf32>
    %cst_152 = arith.constant 0.000000e+00 : f32
    %738 = vector.broadcast %cst_152 : f32 to vector<1x256xf32>
    %739 = arith.subf %738, %573 : vector<1x256xf32>
    %740 = math.exp %739 : vector<1x256xf32>
    %cst_153 = arith.constant 1.000000e+00 : f32
    %741 = vector.broadcast %cst_153 : f32 to vector<1x256xf32>
    %742 = arith.addf %741, %740 : vector<1x256xf32>
    %743 = tpu.reciprocal %742 {approx = true} : vector<1x256xf32> -> vector<1x256xf32>
    %744 = arith.mulf %573, %743 : vector<1x256xf32>
    %745 = arith.truncf %744 : vector<1x256xf32> to vector<1x256xbf16>
    %c0_154 = arith.constant 0 : index
    %c896 = arith.constant 896 : index
    %746 = vector.load %arg4[%c0_154, %c896] : memref<9x1280xbf16, #tpu.memory_space<vmem>>, vector<1x256xbf16>
    tpu.vector_store %arg4[%c0_154, %c896], %745 {strides = array<i32>} : memref<9x1280xbf16, #tpu.memory_space<vmem>>, vector<1x256xbf16>,
    %747 = arith.truncf %716 : vector<1x256xf32> to vector<1x256xbf16>
    %c1_155 = arith.constant 1 : index
    %c896_156 = arith.constant 896 : index
    %748 = vector.load %arg4[%c1_155, %c896_156] : memref<9x1280xbf16, #tpu.memory_space<vmem>>, vector<1x256xbf16>
    tpu.vector_store %arg4[%c1_155, %c896_156], %747 {strides = array<i32>} : memref<9x1280xbf16, #tpu.memory_space<vmem>>, vector<1x256xbf16>,
    %749 = arith.truncf %719 : vector<1x256xf32> to vector<1x256xbf16>
    %c2_157 = arith.constant 2 : index
    %c896_158 = arith.constant 896 : index
    %750 = vector.load %arg4[%c2_157, %c896_158] : memref<9x1280xbf16, #tpu.memory_space<vmem>>, vector<1x256xbf16>
    tpu.vector_store %arg4[%c2_157, %c896_158], %749 {strides = array<i32>} : memref<9x1280xbf16, #tpu.memory_space<vmem>>, vector<1x256xbf16>,
    %751 = arith.truncf %722 : vector<1x256xf32> to vector<1x256xbf16>
    %c3_159 = arith.constant 3 : index
    %c896_160 = arith.constant 896 : index
    %752 = vector.load %arg4[%c3_159, %c896_160] : memref<9x1280xbf16, #tpu.memory_space<vmem>>, vector<1x256xbf16>
    tpu.vector_store %arg4[%c3_159, %c896_160], %751 {strides = array<i32>} : memref<9x1280xbf16, #tpu.memory_space<vmem>>, vector<1x256xbf16>,
    %753 = arith.truncf %725 : vector<1x256xf32> to vector<1x256xbf16>
    %c4_161 = arith.constant 4 : index
    %c896_162 = arith.constant 896 : index
    %754 = vector.load %arg4[%c4_161, %c896_162] : memref<9x1280xbf16, #tpu.memory_space<vmem>>, vector<1x256xbf16>
    tpu.vector_store %arg4[%c4_161, %c896_162], %753 {strides = array<i32>} : memref<9x1280xbf16, #tpu.memory_space<vmem>>, vector<1x256xbf16>,
    %755 = arith.truncf %728 : vector<1x256xf32> to vector<1x256xbf16>
    %c5_163 = arith.constant 5 : index
    %c896_164 = arith.constant 896 : index
    %756 = vector.load %arg4[%c5_163, %c896_164] : memref<9x1280xbf16, #tpu.memory_space<vmem>>, vector<1x256xbf16>
    tpu.vector_store %arg4[%c5_163, %c896_164], %755 {strides = array<i32>} : memref<9x1280xbf16, #tpu.memory_space<vmem>>, vector<1x256xbf16>,
    %757 = arith.truncf %731 : vector<1x256xf32> to vector<1x256xbf16>
    %c6_165 = arith.constant 6 : index
    %c896_166 = arith.constant 896 : index
    %758 = vector.load %arg4[%c6_165, %c896_166] : memref<9x1280xbf16, #tpu.memory_space<vmem>>, vector<1x256xbf16>
    tpu.vector_store %arg4[%c6_165, %c896_166], %757 {strides = array<i32>} : memref<9x1280xbf16, #tpu.memory_space<vmem>>, vector<1x256xbf16>,
    %759 = arith.truncf %734 : vector<1x256xf32> to vector<1x256xbf16>
    %c7_167 = arith.constant 7 : index
    %c896_168 = arith.constant 896 : index
    %760 = vector.load %arg4[%c7_167, %c896_168] : memref<9x1280xbf16, #tpu.memory_space<vmem>>, vector<1x256xbf16>
    tpu.vector_store %arg4[%c7_167, %c896_168], %759 {strides = array<i32>} : memref<9x1280xbf16, #tpu.memory_space<vmem>>, vector<1x256xbf16>,
    %761 = arith.truncf %737 : vector<1x256xf32> to vector<1x256xbf16>
    %c8_169 = arith.constant 8 : index
    %c896_170 = arith.constant 896 : index
    %762 = vector.load %arg4[%c8_169, %c896_170] : memref<9x1280xbf16, #tpu.memory_space<vmem>>, vector<1x256xbf16>
    tpu.vector_store %arg4[%c8_169, %c896_170], %761 {strides = array<i32>} : memref<9x1280xbf16, #tpu.memory_space<vmem>>, vector<1x256xbf16>,
    %c0_171 = arith.constant 0 : index
    %c0_172 = arith.constant 0 : index
    %c0_173 = arith.constant 0 : index
    %763 = vector.load %arg2[%c0_171, %c0_172, %c0_173] : memref<9x8x9xbf16, #tpu.memory_space<vmem>>, vector<1x8x9xbf16>
    %764 = vector.shape_cast %763 : vector<1x8x9xbf16> to vector<8x9xbf16>
    %c0_174 = arith.constant 0 : index
    %c97 = arith.constant 97 : index
    %765 = vector.load %arg4[%c0_174, %c97] : memref<9x1280xbf16, #tpu.memory_space<vmem>>, vector<9x512xbf16>
    %cst_175 = arith.constant dense<0.000000e+00> : vector<8x512xf32>
    %766 = tpu.matmul %764, %765, %cst_175 {dimension_numbers = #tpu.dot_dimension_numbers<[1], [0], [0], [1], [0, 0, 1, 1], [], []>} : vector<8x9xbf16>, vector<9x512xbf16>, vector<8x512xf32> -> vector<8x512xf32>
    %c1_176 = arith.constant 1 : index
    %c0_177 = arith.constant 0 : index
    %c0_178 = arith.constant 0 : index
    %767 = vector.load %arg2[%c1_176, %c0_177, %c0_178] : memref<9x8x9xbf16, #tpu.memory_space<vmem>>, vector<1x8x9xbf16>
    %768 = vector.shape_cast %767 : vector<1x8x9xbf16> to vector<8x9xbf16>
    %c0_179 = arith.constant 0 : index
    %c98 = arith.constant 98 : index
    %769 = vector.load %arg4[%c0_179, %c98] : memref<9x1280xbf16, #tpu.memory_space<vmem>>, vector<9x512xbf16>
    %cst_180 = arith.constant dense<0.000000e+00> : vector<8x512xf32>
    %770 = tpu.matmul %768, %769, %cst_180 {dimension_numbers = #tpu.dot_dimension_numbers<[1], [0], [0], [1], [0, 0, 1, 1], [], []>} : vector<8x9xbf16>, vector<9x512xbf16>, vector<8x512xf32> -> vector<8x512xf32>
    %771 = arith.addf %766, %770 : vector<8x512xf32>
    %c2_181 = arith.constant 2 : index
    %c0_182 = arith.constant 0 : index
    %c0_183 = arith.constant 0 : index
    %772 = vector.load %arg2[%c2_181, %c0_182, %c0_183] : memref<9x8x9xbf16, #tpu.memory_space<vmem>>, vector<1x8x9xbf16>
    %773 = vector.shape_cast %772 : vector<1x8x9xbf16> to vector<8x9xbf16>
    %c0_184 = arith.constant 0 : index
    %c99 = arith.constant 99 : index
    %774 = vector.load %arg4[%c0_184, %c99] : memref<9x1280xbf16, #tpu.memory_space<vmem>>, vector<9x512xbf16>
    %cst_185 = arith.constant dense<0.000000e+00> : vector<8x512xf32>
    %775 = tpu.matmul %773, %774, %cst_185 {dimension_numbers = #tpu.dot_dimension_numbers<[1], [0], [0], [1], [0, 0, 1, 1], [], []>} : vector<8x9xbf16>, vector<9x512xbf16>, vector<8x512xf32> -> vector<8x512xf32>
    %776 = arith.addf %771, %775 : vector<8x512xf32>
    %c3_186 = arith.constant 3 : index
    %c0_187 = arith.constant 0 : index
    %c0_188 = arith.constant 0 : index
    %777 = vector.load %arg2[%c3_186, %c0_187, %c0_188] : memref<9x8x9xbf16, #tpu.memory_space<vmem>>, vector<1x8x9xbf16>
    %778 = vector.shape_cast %777 : vector<1x8x9xbf16> to vector<8x9xbf16>
    %c0_189 = arith.constant 0 : index
    %c127 = arith.constant 127 : index
    %779 = vector.load %arg4[%c0_189, %c127] : memref<9x1280xbf16, #tpu.memory_space<vmem>>, vector<9x512xbf16>
    %cst_190 = arith.constant dense<0.000000e+00> : vector<8x512xf32>
    %780 = tpu.matmul %778, %779, %cst_190 {dimension_numbers = #tpu.dot_dimension_numbers<[1], [0], [0], [1], [0, 0, 1, 1], [], []>} : vector<8x9xbf16>, vector<9x512xbf16>, vector<8x512xf32> -> vector<8x512xf32>
    %781 = arith.addf %776, %780 : vector<8x512xf32>
    %c4_191 = arith.constant 4 : index
    %c0_192 = arith.constant 0 : index
    %c0_193 = arith.constant 0 : index
    %782 = vector.load %arg2[%c4_191, %c0_192, %c0_193] : memref<9x8x9xbf16, #tpu.memory_space<vmem>>, vector<1x8x9xbf16>
    %783 = vector.shape_cast %782 : vector<1x8x9xbf16> to vector<8x9xbf16>
    %c0_194 = arith.constant 0 : index
    %c128_195 = arith.constant 128 : index
    %784 = vector.load %arg4[%c0_194, %c128_195] : memref<9x1280xbf16, #tpu.memory_space<vmem>>, vector<9x512xbf16>
    %cst_196 = arith.constant dense<0.000000e+00> : vector<8x512xf32>
    %785 = tpu.matmul %783, %784, %cst_196 {dimension_numbers = #tpu.dot_dimension_numbers<[1], [0], [0], [1], [0, 0, 1, 1], [], []>} : vector<8x9xbf16>, vector<9x512xbf16>, vector<8x512xf32> -> vector<8x512xf32>
    %786 = arith.addf %781, %785 : vector<8x512xf32>
    %c5_197 = arith.constant 5 : index
    %c0_198 = arith.constant 0 : index
    %c0_199 = arith.constant 0 : index
    %787 = vector.load %arg2[%c5_197, %c0_198, %c0_199] : memref<9x8x9xbf16, #tpu.memory_space<vmem>>, vector<1x8x9xbf16>
    %788 = vector.shape_cast %787 : vector<1x8x9xbf16> to vector<8x9xbf16>
    %c0_200 = arith.constant 0 : index
    %c129 = arith.constant 129 : index
    %789 = vector.load %arg4[%c0_200, %c129] : memref<9x1280xbf16, #tpu.memory_space<vmem>>, vector<9x512xbf16>
    %cst_201 = arith.constant dense<0.000000e+00> : vector<8x512xf32>
    %790 = tpu.matmul %788, %789, %cst_201 {dimension_numbers = #tpu.dot_dimension_numbers<[1], [0], [0], [1], [0, 0, 1, 1], [], []>} : vector<8x9xbf16>, vector<9x512xbf16>, vector<8x512xf32> -> vector<8x512xf32>
    %791 = arith.addf %786, %790 : vector<8x512xf32>
    %c6_202 = arith.constant 6 : index
    %c0_203 = arith.constant 0 : index
    %c0_204 = arith.constant 0 : index
    %792 = vector.load %arg2[%c6_202, %c0_203, %c0_204] : memref<9x8x9xbf16, #tpu.memory_space<vmem>>, vector<1x8x9xbf16>
    %793 = vector.shape_cast %792 : vector<1x8x9xbf16> to vector<8x9xbf16>
    %c0_205 = arith.constant 0 : index
    %c157 = arith.constant 157 : index
    %794 = vector.load %arg4[%c0_205, %c157] : memref<9x1280xbf16, #tpu.memory_space<vmem>>, vector<9x512xbf16>
    %cst_206 = arith.constant dense<0.000000e+00> : vector<8x512xf32>
    %795 = tpu.matmul %793, %794, %cst_206 {dimension_numbers = #tpu.dot_dimension_numbers<[1], [0], [0], [1], [0, 0, 1, 1], [], []>} : vector<8x9xbf16>, vector<9x512xbf16>, vector<8x512xf32> -> vector<8x512xf32>
    %796 = arith.addf %791, %795 : vector<8x512xf32>
    %c7_207 = arith.constant 7 : index
    %c0_208 = arith.constant 0 : index
    %c0_209 = arith.constant 0 : index
    %797 = vector.load %arg2[%c7_207, %c0_208, %c0_209] : memref<9x8x9xbf16, #tpu.memory_space<vmem>>, vector<1x8x9xbf16>
    %798 = vector.shape_cast %797 : vector<1x8x9xbf16> to vector<8x9xbf16>
    %c0_210 = arith.constant 0 : index
    %c158 = arith.constant 158 : index
    %799 = vector.load %arg4[%c0_210, %c158] : memref<9x1280xbf16, #tpu.memory_space<vmem>>, vector<9x512xbf16>
    %cst_211 = arith.constant dense<0.000000e+00> : vector<8x512xf32>
    %800 = tpu.matmul %798, %799, %cst_211 {dimension_numbers = #tpu.dot_dimension_numbers<[1], [0], [0], [1], [0, 0, 1, 1], [], []>} : vector<8x9xbf16>, vector<9x512xbf16>, vector<8x512xf32> -> vector<8x512xf32>
    %801 = arith.addf %796, %800 : vector<8x512xf32>
    %c8_212 = arith.constant 8 : index
    %c0_213 = arith.constant 0 : index
    %c0_214 = arith.constant 0 : index
    %802 = vector.load %arg2[%c8_212, %c0_213, %c0_214] : memref<9x8x9xbf16, #tpu.memory_space<vmem>>, vector<1x8x9xbf16>
    %803 = vector.shape_cast %802 : vector<1x8x9xbf16> to vector<8x9xbf16>
    %c0_215 = arith.constant 0 : index
    %c159 = arith.constant 159 : index
    %804 = vector.load %arg4[%c0_215, %c159] : memref<9x1280xbf16, #tpu.memory_space<vmem>>, vector<9x512xbf16>
    %cst_216 = arith.constant dense<0.000000e+00> : vector<8x512xf32>
    %805 = tpu.matmul %803, %804, %cst_216 {dimension_numbers = #tpu.dot_dimension_numbers<[1], [0], [0], [1], [0, 0, 1, 1], [], []>} : vector<8x9xbf16>, vector<9x512xbf16>, vector<8x512xf32> -> vector<8x512xf32>
    %806 = arith.addf %801, %805 : vector<8x512xf32>
    %c0_217 = arith.constant 0 : index
    %c0_218 = arith.constant 0 : index
    %807 = vector.load %arg3[%c0_217, %c0_218] : memref<8x1024xf32, #tpu.memory_space<vmem>>, vector<8x512xf32>
    tpu.vector_store %arg3[%c0_217, %c0_218], %806 {strides = array<i32>} : memref<8x1024xf32, #tpu.memory_space<vmem>>, vector<8x512xf32>,
    %c0_219 = arith.constant 0 : index
    %c0_220 = arith.constant 0 : index
    %c0_221 = arith.constant 0 : index
    %808 = vector.load %arg2[%c0_219, %c0_220, %c0_221] : memref<9x8x9xbf16, #tpu.memory_space<vmem>>, vector<1x8x9xbf16>
    %809 = vector.shape_cast %808 : vector<1x8x9xbf16> to vector<8x9xbf16>
    %c0_222 = arith.constant 0 : index
    %c609 = arith.constant 609 : index
    %810 = vector.load %arg4[%c0_222, %c609] : memref<9x1280xbf16, #tpu.memory_space<vmem>>, vector<9x512xbf16>
    %cst_223 = arith.constant dense<0.000000e+00> : vector<8x512xf32>
    %811 = tpu.matmul %809, %810, %cst_223 {dimension_numbers = #tpu.dot_dimension_numbers<[1], [0], [0], [1], [0, 0, 1, 1], [], []>} : vector<8x9xbf16>, vector<9x512xbf16>, vector<8x512xf32> -> vector<8x512xf32>
    %c1_224 = arith.constant 1 : index
    %c0_225 = arith.constant 0 : index
    %c0_226 = arith.constant 0 : index
    %812 = vector.load %arg2[%c1_224, %c0_225, %c0_226] : memref<9x8x9xbf16, #tpu.memory_space<vmem>>, vector<1x8x9xbf16>
    %813 = vector.shape_cast %812 : vector<1x8x9xbf16> to vector<8x9xbf16>
    %c0_227 = arith.constant 0 : index
    %c610 = arith.constant 610 : index
    %814 = vector.load %arg4[%c0_227, %c610] : memref<9x1280xbf16, #tpu.memory_space<vmem>>, vector<9x512xbf16>
    %cst_228 = arith.constant dense<0.000000e+00> : vector<8x512xf32>
    %815 = tpu.matmul %813, %814, %cst_228 {dimension_numbers = #tpu.dot_dimension_numbers<[1], [0], [0], [1], [0, 0, 1, 1], [], []>} : vector<8x9xbf16>, vector<9x512xbf16>, vector<8x512xf32> -> vector<8x512xf32>
    %816 = arith.addf %811, %815 : vector<8x512xf32>
    %c2_229 = arith.constant 2 : index
    %c0_230 = arith.constant 0 : index
    %c0_231 = arith.constant 0 : index
    %817 = vector.load %arg2[%c2_229, %c0_230, %c0_231] : memref<9x8x9xbf16, #tpu.memory_space<vmem>>, vector<1x8x9xbf16>
    %818 = vector.shape_cast %817 : vector<1x8x9xbf16> to vector<8x9xbf16>
    %c0_232 = arith.constant 0 : index
    %c611 = arith.constant 611 : index
    %819 = vector.load %arg4[%c0_232, %c611] : memref<9x1280xbf16, #tpu.memory_space<vmem>>, vector<9x512xbf16>
    %cst_233 = arith.constant dense<0.000000e+00> : vector<8x512xf32>
    %820 = tpu.matmul %818, %819, %cst_233 {dimension_numbers = #tpu.dot_dimension_numbers<[1], [0], [0], [1], [0, 0, 1, 1], [], []>} : vector<8x9xbf16>, vector<9x512xbf16>, vector<8x512xf32> -> vector<8x512xf32>
    %821 = arith.addf %816, %820 : vector<8x512xf32>
    %c3_234 = arith.constant 3 : index
    %c0_235 = arith.constant 0 : index
    %c0_236 = arith.constant 0 : index
    %822 = vector.load %arg2[%c3_234, %c0_235, %c0_236] : memref<9x8x9xbf16, #tpu.memory_space<vmem>>, vector<1x8x9xbf16>
    %823 = vector.shape_cast %822 : vector<1x8x9xbf16> to vector<8x9xbf16>
    %c0_237 = arith.constant 0 : index
    %c639 = arith.constant 639 : index
    %824 = vector.load %arg4[%c0_237, %c639] : memref<9x1280xbf16, #tpu.memory_space<vmem>>, vector<9x512xbf16>
    %cst_238 = arith.constant dense<0.000000e+00> : vector<8x512xf32>
    %825 = tpu.matmul %823, %824, %cst_238 {dimension_numbers = #tpu.dot_dimension_numbers<[1], [0], [0], [1], [0, 0, 1, 1], [], []>} : vector<8x9xbf16>, vector<9x512xbf16>, vector<8x512xf32> -> vector<8x512xf32>
    %826 = arith.addf %821, %825 : vector<8x512xf32>
    %c4_239 = arith.constant 4 : index
    %c0_240 = arith.constant 0 : index
    %c0_241 = arith.constant 0 : index
    %827 = vector.load %arg2[%c4_239, %c0_240, %c0_241] : memref<9x8x9xbf16, #tpu.memory_space<vmem>>, vector<1x8x9xbf16>
    %828 = vector.shape_cast %827 : vector<1x8x9xbf16> to vector<8x9xbf16>
    %c0_242 = arith.constant 0 : index
    %c640_243 = arith.constant 640 : index
    %829 = vector.load %arg4[%c0_242, %c640_243] : memref<9x1280xbf16, #tpu.memory_space<vmem>>, vector<9x512xbf16>
    %cst_244 = arith.constant dense<0.000000e+00> : vector<8x512xf32>
    %830 = tpu.matmul %828, %829, %cst_244 {dimension_numbers = #tpu.dot_dimension_numbers<[1], [0], [0], [1], [0, 0, 1, 1], [], []>} : vector<8x9xbf16>, vector<9x512xbf16>, vector<8x512xf32> -> vector<8x512xf32>
    %831 = arith.addf %826, %830 : vector<8x512xf32>
    %c5_245 = arith.constant 5 : index
    %c0_246 = arith.constant 0 : index
    %c0_247 = arith.constant 0 : index
    %832 = vector.load %arg2[%c5_245, %c0_246, %c0_247] : memref<9x8x9xbf16, #tpu.memory_space<vmem>>, vector<1x8x9xbf16>
    %833 = vector.shape_cast %832 : vector<1x8x9xbf16> to vector<8x9xbf16>
    %c0_248 = arith.constant 0 : index
    %c641 = arith.constant 641 : index
    %834 = vector.load %arg4[%c0_248, %c641] : memref<9x1280xbf16, #tpu.memory_space<vmem>>, vector<9x512xbf16>
    %cst_249 = arith.constant dense<0.000000e+00> : vector<8x512xf32>
    %835 = tpu.matmul %833, %834, %cst_249 {dimension_numbers = #tpu.dot_dimension_numbers<[1], [0], [0], [1], [0, 0, 1, 1], [], []>} : vector<8x9xbf16>, vector<9x512xbf16>, vector<8x512xf32> -> vector<8x512xf32>
    %836 = arith.addf %831, %835 : vector<8x512xf32>
    %c6_250 = arith.constant 6 : index
    %c0_251 = arith.constant 0 : index
    %c0_252 = arith.constant 0 : index
    %837 = vector.load %arg2[%c6_250, %c0_251, %c0_252] : memref<9x8x9xbf16, #tpu.memory_space<vmem>>, vector<1x8x9xbf16>
    %838 = vector.shape_cast %837 : vector<1x8x9xbf16> to vector<8x9xbf16>
    %c0_253 = arith.constant 0 : index
    %c669 = arith.constant 669 : index
    %839 = vector.load %arg4[%c0_253, %c669] : memref<9x1280xbf16, #tpu.memory_space<vmem>>, vector<9x512xbf16>
    %cst_254 = arith.constant dense<0.000000e+00> : vector<8x512xf32>
    %840 = tpu.matmul %838, %839, %cst_254 {dimension_numbers = #tpu.dot_dimension_numbers<[1], [0], [0], [1], [0, 0, 1, 1], [], []>} : vector<8x9xbf16>, vector<9x512xbf16>, vector<8x512xf32> -> vector<8x512xf32>
    %841 = arith.addf %836, %840 : vector<8x512xf32>
    %c7_255 = arith.constant 7 : index
    %c0_256 = arith.constant 0 : index
    %c0_257 = arith.constant 0 : index
    %842 = vector.load %arg2[%c7_255, %c0_256, %c0_257] : memref<9x8x9xbf16, #tpu.memory_space<vmem>>, vector<1x8x9xbf16>
    %843 = vector.shape_cast %842 : vector<1x8x9xbf16> to vector<8x9xbf16>
    %c0_258 = arith.constant 0 : index
    %c670 = arith.constant 670 : index
    %844 = vector.load %arg4[%c0_258, %c670] : memref<9x1280xbf16, #tpu.memory_space<vmem>>, vector<9x512xbf16>
    %cst_259 = arith.constant dense<0.000000e+00> : vector<8x512xf32>
    %845 = tpu.matmul %843, %844, %cst_259 {dimension_numbers = #tpu.dot_dimension_numbers<[1], [0], [0], [1], [0, 0, 1, 1], [], []>} : vector<8x9xbf16>, vector<9x512xbf16>, vector<8x512xf32> -> vector<8x512xf32>
    %846 = arith.addf %841, %845 : vector<8x512xf32>
    %c8_260 = arith.constant 8 : index
    %c0_261 = arith.constant 0 : index
    %c0_262 = arith.constant 0 : index
    %847 = vector.load %arg2[%c8_260, %c0_261, %c0_262] : memref<9x8x9xbf16, #tpu.memory_space<vmem>>, vector<1x8x9xbf16>
    %848 = vector.shape_cast %847 : vector<1x8x9xbf16> to vector<8x9xbf16>
    %c0_263 = arith.constant 0 : index
    %c671 = arith.constant 671 : index
    %849 = vector.load %arg4[%c0_263, %c671] : memref<9x1280xbf16, #tpu.memory_space<vmem>>, vector<9x512xbf16>
    %cst_264 = arith.constant dense<0.000000e+00> : vector<8x512xf32>
    %850 = tpu.matmul %848, %849, %cst_264 {dimension_numbers = #tpu.dot_dimension_numbers<[1], [0], [0], [1], [0, 0, 1, 1], [], []>} : vector<8x9xbf16>, vector<9x512xbf16>, vector<8x512xf32> -> vector<8x512xf32>
    %851 = arith.addf %846, %850 : vector<8x512xf32>
    %c0_265 = arith.constant 0 : index
    %c512_266 = arith.constant 512 : index
    %852 = vector.load %arg3[%c0_265, %c512_266] : memref<8x1024xf32, #tpu.memory_space<vmem>>, vector<8x512xf32>
    tpu.vector_store %arg3[%c0_265, %c512_266], %851 {strides = array<i32>} : memref<8x1024xf32, #tpu.memory_space<vmem>>, vector<8x512xf32>,
    return
  }
  func.func @transform_0(%arg0: i32) -> (i32, i32) {
    %c0_i32 = arith.constant 0 : i32
    %c0_i32_0 = arith.constant 0 : i32
    return %c0_i32, %arg0 : i32, i32
  }
  func.func @transform_1(%arg0: i32) -> (i32, i32, i32) {
    %c0_i32 = arith.constant 0 : i32
    %c0_i32_0 = arith.constant 0 : i32
    %c0_i32_1 = arith.constant 0 : i32
    %c0_i32_2 = arith.constant 0 : i32
    return %c0_i32, %c0_i32_0, %c0_i32_1 : i32, i32, i32
  }
  func.func @transform_2(%arg0: i32) -> (i32, i32) {
    %c0_i32 = arith.constant 0 : i32
    %c0_i32_0 = arith.constant 0 : i32
    return %c0_i32, %arg0 : i32, i32
  }
}

module attributes {stable_mosaic.version = 11 : i64} {
  func.func @kernel(%arg0: i32, %arg1: memref<8x256xf32, #tpu.memory_space<vmem>>, %arg2: memref<9x16x72xbf16, #tpu.memory_space<vmem>>, %arg3: memref<16x256xf32, #tpu.memory_space<vmem>>, %arg4: memref<72x512xbf16, #tpu.memory_space<vmem>>) attributes {dimension_semantics = [#tpu.dimension_semantics<parallel>], iteration_bounds = array<i64: 2>, scalar_prefetch = 0 : i64, scratch_operands = 1 : i64, tpu.core_type = #tpu.core_type<tc>, window_params = [{transform_indices = @transform_0, window_bounds = array<i64: 8, 256>}, {pipeline_mode = #tpu.pipeline_mode<synchronous>, transform_indices = @transform_1, window_bounds = array<i64: 9, 16, 72>}, {transform_indices = @transform_2, window_bounds = array<i64: 16, 256>}]} {
    %cst = arith.constant 0.000000e+00 : bf16
    %0 = vector.broadcast %cst : bf16 to vector<72x128xbf16>
    %c0 = arith.constant 0 : index
    %c0_0 = arith.constant 0 : index
    %1 = vector.load %arg4[%c0, %c0_0] : memref<72x512xbf16, #tpu.memory_space<vmem>>, vector<72x128xbf16>
    tpu.vector_store %arg4[%c0, %c0_0], %0 {strides = array<i32>} : memref<72x512xbf16, #tpu.memory_space<vmem>>, vector<72x128xbf16>,
    %c0_1 = arith.constant 0 : index
    %c384 = arith.constant 384 : index
    %2 = vector.load %arg4[%c0_1, %c384] : memref<72x512xbf16, #tpu.memory_space<vmem>>, vector<72x128xbf16>
    tpu.vector_store %arg4[%c0_1, %c384], %0 {strides = array<i32>} : memref<72x512xbf16, #tpu.memory_space<vmem>>, vector<72x128xbf16>,
    %c0_2 = arith.constant 0 : index
    %c0_3 = arith.constant 0 : index
    %3 = vector.load %arg1[%c0_2, %c0_3] : memref<8x256xf32, #tpu.memory_space<vmem>>, vector<8x256xf32>
    %cst_4 = arith.constant -2.200000e+00 : f32
    %4 = vector.broadcast %cst_4 : f32 to vector<8x256xf32>
    %5 = arith.subf %3, %4 : vector<8x256xf32>
    %cst_5 = arith.constant -1.800000e+00 : f32
    %6 = vector.broadcast %cst_5 : f32 to vector<8x256xf32>
    %7 = arith.subf %3, %6 : vector<8x256xf32>
    %cst_6 = arith.constant -1.400000e+00 : f32
    %8 = vector.broadcast %cst_6 : f32 to vector<8x256xf32>
    %9 = arith.subf %3, %8 : vector<8x256xf32>
    %cst_7 = arith.constant -1.000000e+00 : f32
    %10 = vector.broadcast %cst_7 : f32 to vector<8x256xf32>
    %11 = arith.subf %3, %10 : vector<8x256xf32>
    %cst_8 = arith.constant -6.000000e-01 : f32
    %12 = vector.broadcast %cst_8 : f32 to vector<8x256xf32>
    %13 = arith.subf %3, %12 : vector<8x256xf32>
    %cst_9 = arith.constant -2.000000e-01 : f32
    %14 = vector.broadcast %cst_9 : f32 to vector<8x256xf32>
    %15 = arith.subf %3, %14 : vector<8x256xf32>
    %cst_10 = arith.constant 2.000000e-01 : f32
    %16 = vector.broadcast %cst_10 : f32 to vector<8x256xf32>
    %17 = arith.subf %3, %16 : vector<8x256xf32>
    %cst_11 = arith.constant 6.000000e-01 : f32
    %18 = vector.broadcast %cst_11 : f32 to vector<8x256xf32>
    %19 = arith.subf %3, %18 : vector<8x256xf32>
    %cst_12 = arith.constant 1.000000e+00 : f32
    %20 = vector.broadcast %cst_12 : f32 to vector<8x256xf32>
    %21 = arith.subf %3, %20 : vector<8x256xf32>
    %cst_13 = arith.constant 1.400000e+00 : f32
    %22 = vector.broadcast %cst_13 : f32 to vector<8x256xf32>
    %23 = arith.subf %3, %22 : vector<8x256xf32>
    %cst_14 = arith.constant 1.800000e+00 : f32
    %24 = vector.broadcast %cst_14 : f32 to vector<8x256xf32>
    %25 = arith.subf %3, %24 : vector<8x256xf32>
    %cst_15 = arith.constant 2.200000e+00 : f32
    %26 = vector.broadcast %cst_15 : f32 to vector<8x256xf32>
    %27 = arith.subf %3, %26 : vector<8x256xf32>
    %cst_16 = arith.constant 0.000000e+00 : f32
    %28 = vector.broadcast %cst_16 : f32 to vector<8x256xf32>
    %29 = arith.cmpf oge, %5, %28 : vector<8x256xf32>
    %30 = arith.extui %29 : vector<8x256xi1> to vector<8x256xi32>
    %31 = arith.sitofp %30 : vector<8x256xi32> to vector<8x256xf32>
    %cst_17 = arith.constant 0.000000e+00 : f32
    %32 = vector.broadcast %cst_17 : f32 to vector<8x256xf32>
    %33 = arith.cmpf oge, %7, %32 : vector<8x256xf32>
    %34 = arith.extui %33 : vector<8x256xi1> to vector<8x256xi32>
    %35 = arith.sitofp %34 : vector<8x256xi32> to vector<8x256xf32>
    %36 = arith.subf %31, %35 : vector<8x256xf32>
    %cst_18 = arith.constant 0.000000e+00 : f32
    %37 = vector.broadcast %cst_18 : f32 to vector<8x256xf32>
    %38 = arith.cmpf oge, %9, %37 : vector<8x256xf32>
    %39 = arith.extui %38 : vector<8x256xi1> to vector<8x256xi32>
    %40 = arith.sitofp %39 : vector<8x256xi32> to vector<8x256xf32>
    %41 = arith.subf %35, %40 : vector<8x256xf32>
    %cst_19 = arith.constant 0.000000e+00 : f32
    %42 = vector.broadcast %cst_19 : f32 to vector<8x256xf32>
    %43 = arith.cmpf oge, %11, %42 : vector<8x256xf32>
    %44 = arith.extui %43 : vector<8x256xi1> to vector<8x256xi32>
    %45 = arith.sitofp %44 : vector<8x256xi32> to vector<8x256xf32>
    %46 = arith.subf %40, %45 : vector<8x256xf32>
    %cst_20 = arith.constant 0.000000e+00 : f32
    %47 = vector.broadcast %cst_20 : f32 to vector<8x256xf32>
    %48 = arith.cmpf oge, %13, %47 : vector<8x256xf32>
    %49 = arith.extui %48 : vector<8x256xi1> to vector<8x256xi32>
    %50 = arith.sitofp %49 : vector<8x256xi32> to vector<8x256xf32>
    %51 = arith.subf %45, %50 : vector<8x256xf32>
    %cst_21 = arith.constant 0.000000e+00 : f32
    %52 = vector.broadcast %cst_21 : f32 to vector<8x256xf32>
    %53 = arith.cmpf oge, %15, %52 : vector<8x256xf32>
    %54 = arith.extui %53 : vector<8x256xi1> to vector<8x256xi32>
    %55 = arith.sitofp %54 : vector<8x256xi32> to vector<8x256xf32>
    %56 = arith.subf %50, %55 : vector<8x256xf32>
    %cst_22 = arith.constant 0.000000e+00 : f32
    %57 = vector.broadcast %cst_22 : f32 to vector<8x256xf32>
    %58 = arith.cmpf oge, %17, %57 : vector<8x256xf32>
    %59 = arith.extui %58 : vector<8x256xi1> to vector<8x256xi32>
    %60 = arith.sitofp %59 : vector<8x256xi32> to vector<8x256xf32>
    %61 = arith.subf %55, %60 : vector<8x256xf32>
    %cst_23 = arith.constant 0.000000e+00 : f32
    %62 = vector.broadcast %cst_23 : f32 to vector<8x256xf32>
    %63 = arith.cmpf oge, %19, %62 : vector<8x256xf32>
    %64 = arith.extui %63 : vector<8x256xi1> to vector<8x256xi32>
    %65 = arith.sitofp %64 : vector<8x256xi32> to vector<8x256xf32>
    %66 = arith.subf %60, %65 : vector<8x256xf32>
    %cst_24 = arith.constant 0.000000e+00 : f32
    %67 = vector.broadcast %cst_24 : f32 to vector<8x256xf32>
    %68 = arith.cmpf oge, %21, %67 : vector<8x256xf32>
    %69 = arith.extui %68 : vector<8x256xi1> to vector<8x256xi32>
    %70 = arith.sitofp %69 : vector<8x256xi32> to vector<8x256xf32>
    %71 = arith.subf %65, %70 : vector<8x256xf32>
    %cst_25 = arith.constant 0.000000e+00 : f32
    %72 = vector.broadcast %cst_25 : f32 to vector<8x256xf32>
    %73 = arith.cmpf oge, %23, %72 : vector<8x256xf32>
    %74 = arith.extui %73 : vector<8x256xi1> to vector<8x256xi32>
    %75 = arith.sitofp %74 : vector<8x256xi32> to vector<8x256xf32>
    %76 = arith.subf %70, %75 : vector<8x256xf32>
    %cst_26 = arith.constant 0.000000e+00 : f32
    %77 = vector.broadcast %cst_26 : f32 to vector<8x256xf32>
    %78 = arith.cmpf oge, %25, %77 : vector<8x256xf32>
    %79 = arith.extui %78 : vector<8x256xi1> to vector<8x256xi32>
    %80 = arith.sitofp %79 : vector<8x256xi32> to vector<8x256xf32>
    %81 = arith.subf %75, %80 : vector<8x256xf32>
    %cst_27 = arith.constant 0.000000e+00 : f32
    %82 = vector.broadcast %cst_27 : f32 to vector<8x256xf32>
    %83 = arith.cmpf oge, %27, %82 : vector<8x256xf32>
    %84 = arith.extui %83 : vector<8x256xi1> to vector<8x256xi32>
    %85 = arith.sitofp %84 : vector<8x256xi32> to vector<8x256xf32>
    %86 = arith.subf %80, %85 : vector<8x256xf32>
    %87 = arith.mulf %5, %36 : vector<8x256xf32>
    %88 = arith.mulf %9, %41 : vector<8x256xf32>
    %89 = arith.subf %87, %88 : vector<8x256xf32>
    %90 = arith.mulf %7, %41 : vector<8x256xf32>
    %91 = arith.mulf %11, %46 : vector<8x256xf32>
    %92 = arith.subf %90, %91 : vector<8x256xf32>
    %93 = arith.mulf %9, %46 : vector<8x256xf32>
    %94 = arith.mulf %13, %51 : vector<8x256xf32>
    %95 = arith.subf %93, %94 : vector<8x256xf32>
    %96 = arith.mulf %11, %51 : vector<8x256xf32>
    %97 = arith.mulf %15, %56 : vector<8x256xf32>
    %98 = arith.subf %96, %97 : vector<8x256xf32>
    %99 = arith.mulf %13, %56 : vector<8x256xf32>
    %100 = arith.mulf %17, %61 : vector<8x256xf32>
    %101 = arith.subf %99, %100 : vector<8x256xf32>
    %102 = arith.mulf %15, %61 : vector<8x256xf32>
    %103 = arith.mulf %19, %66 : vector<8x256xf32>
    %104 = arith.subf %102, %103 : vector<8x256xf32>
    %105 = arith.mulf %17, %66 : vector<8x256xf32>
    %106 = arith.mulf %21, %71 : vector<8x256xf32>
    %107 = arith.subf %105, %106 : vector<8x256xf32>
    %108 = arith.mulf %19, %71 : vector<8x256xf32>
    %109 = arith.mulf %23, %76 : vector<8x256xf32>
    %110 = arith.subf %108, %109 : vector<8x256xf32>
    %111 = arith.mulf %21, %76 : vector<8x256xf32>
    %112 = arith.mulf %25, %81 : vector<8x256xf32>
    %113 = arith.subf %111, %112 : vector<8x256xf32>
    %114 = arith.mulf %23, %81 : vector<8x256xf32>
    %115 = arith.mulf %27, %86 : vector<8x256xf32>
    %116 = arith.subf %114, %115 : vector<8x256xf32>
    %117 = arith.mulf %5, %89 : vector<8x256xf32>
    %118 = arith.mulf %11, %92 : vector<8x256xf32>
    %119 = arith.subf %117, %118 : vector<8x256xf32>
    %120 = arith.mulf %7, %92 : vector<8x256xf32>
    %121 = arith.mulf %13, %95 : vector<8x256xf32>
    %122 = arith.subf %120, %121 : vector<8x256xf32>
    %123 = arith.mulf %9, %95 : vector<8x256xf32>
    %124 = arith.mulf %15, %98 : vector<8x256xf32>
    %125 = arith.subf %123, %124 : vector<8x256xf32>
    %126 = arith.mulf %11, %98 : vector<8x256xf32>
    %127 = arith.mulf %17, %101 : vector<8x256xf32>
    %128 = arith.subf %126, %127 : vector<8x256xf32>
    %129 = arith.mulf %13, %101 : vector<8x256xf32>
    %130 = arith.mulf %19, %104 : vector<8x256xf32>
    %131 = arith.subf %129, %130 : vector<8x256xf32>
    %132 = arith.mulf %15, %104 : vector<8x256xf32>
    %133 = arith.mulf %21, %107 : vector<8x256xf32>
    %134 = arith.subf %132, %133 : vector<8x256xf32>
    %135 = arith.mulf %17, %107 : vector<8x256xf32>
    %136 = arith.mulf %23, %110 : vector<8x256xf32>
    %137 = arith.subf %135, %136 : vector<8x256xf32>
    %138 = arith.mulf %19, %110 : vector<8x256xf32>
    %139 = arith.mulf %25, %113 : vector<8x256xf32>
    %140 = arith.subf %138, %139 : vector<8x256xf32>
    %141 = arith.mulf %21, %113 : vector<8x256xf32>
    %142 = arith.mulf %27, %116 : vector<8x256xf32>
    %143 = arith.subf %141, %142 : vector<8x256xf32>
    %144 = arith.mulf %5, %119 : vector<8x256xf32>
    %145 = arith.mulf %13, %122 : vector<8x256xf32>
    %146 = arith.subf %144, %145 : vector<8x256xf32>
    %147 = arith.mulf %7, %122 : vector<8x256xf32>
    %148 = arith.mulf %15, %125 : vector<8x256xf32>
    %149 = arith.subf %147, %148 : vector<8x256xf32>
    %150 = arith.mulf %9, %125 : vector<8x256xf32>
    %151 = arith.mulf %17, %128 : vector<8x256xf32>
    %152 = arith.subf %150, %151 : vector<8x256xf32>
    %153 = arith.mulf %11, %128 : vector<8x256xf32>
    %154 = arith.mulf %19, %131 : vector<8x256xf32>
    %155 = arith.subf %153, %154 : vector<8x256xf32>
    %156 = arith.mulf %13, %131 : vector<8x256xf32>
    %157 = arith.mulf %21, %134 : vector<8x256xf32>
    %158 = arith.subf %156, %157 : vector<8x256xf32>
    %159 = arith.mulf %15, %134 : vector<8x256xf32>
    %160 = arith.mulf %23, %137 : vector<8x256xf32>
    %161 = arith.subf %159, %160 : vector<8x256xf32>
    %162 = arith.mulf %17, %137 : vector<8x256xf32>
    %163 = arith.mulf %25, %140 : vector<8x256xf32>
    %164 = arith.subf %162, %163 : vector<8x256xf32>
    %165 = arith.mulf %19, %140 : vector<8x256xf32>
    %166 = arith.mulf %27, %143 : vector<8x256xf32>
    %167 = arith.subf %165, %166 : vector<8x256xf32>
    %cst_28 = arith.constant 0.000000e+00 : f32
    %168 = vector.broadcast %cst_28 : f32 to vector<8x256xf32>
    %169 = arith.subf %168, %3 : vector<8x256xf32>
    %170 = math.exp %169 : vector<8x256xf32>
    %cst_29 = arith.constant 1.000000e+00 : f32
    %171 = vector.broadcast %cst_29 : f32 to vector<8x256xf32>
    %172 = arith.addf %171, %170 : vector<8x256xf32>
    %173 = tpu.reciprocal %172 {approx = true} : vector<8x256xf32> -> vector<8x256xf32>
    %174 = arith.mulf %3, %173 : vector<8x256xf32>
    %175 = arith.truncf %174 : vector<8x256xf32> to vector<8x256xbf16>
    %c0_30 = arith.constant 0 : index
    %c128 = arith.constant 128 : index
    %176 = vector.load %arg4[%c0_30, %c128] : memref<72x512xbf16, #tpu.memory_space<vmem>>, vector<8x256xbf16>
    tpu.vector_store %arg4[%c0_30, %c128], %175 {strides = array<i32>} : memref<72x512xbf16, #tpu.memory_space<vmem>>, vector<8x256xbf16>,
    %177 = arith.truncf %146 : vector<8x256xf32> to vector<8x256xbf16>
    %c8 = arith.constant 8 : index
    %c128_31 = arith.constant 128 : index
    %178 = vector.load %arg4[%c8, %c128_31] : memref<72x512xbf16, #tpu.memory_space<vmem>>, vector<8x256xbf16>
    tpu.vector_store %arg4[%c8, %c128_31], %177 {strides = array<i32>} : memref<72x512xbf16, #tpu.memory_space<vmem>>, vector<8x256xbf16>,
    %179 = arith.truncf %149 : vector<8x256xf32> to vector<8x256xbf16>
    %c16 = arith.constant 16 : index
    %c128_32 = arith.constant 128 : index
    %180 = vector.load %arg4[%c16, %c128_32] : memref<72x512xbf16, #tpu.memory_space<vmem>>, vector<8x256xbf16>
    tpu.vector_store %arg4[%c16, %c128_32], %179 {strides = array<i32>} : memref<72x512xbf16, #tpu.memory_space<vmem>>, vector<8x256xbf16>,
    %181 = arith.truncf %152 : vector<8x256xf32> to vector<8x256xbf16>
    %c24 = arith.constant 24 : index
    %c128_33 = arith.constant 128 : index
    %182 = vector.load %arg4[%c24, %c128_33] : memref<72x512xbf16, #tpu.memory_space<vmem>>, vector<8x256xbf16>
    tpu.vector_store %arg4[%c24, %c128_33], %181 {strides = array<i32>} : memref<72x512xbf16, #tpu.memory_space<vmem>>, vector<8x256xbf16>,
    %183 = arith.truncf %155 : vector<8x256xf32> to vector<8x256xbf16>
    %c32 = arith.constant 32 : index
    %c128_34 = arith.constant 128 : index
    %184 = vector.load %arg4[%c32, %c128_34] : memref<72x512xbf16, #tpu.memory_space<vmem>>, vector<8x256xbf16>
    tpu.vector_store %arg4[%c32, %c128_34], %183 {strides = array<i32>} : memref<72x512xbf16, #tpu.memory_space<vmem>>, vector<8x256xbf16>,
    %185 = arith.truncf %158 : vector<8x256xf32> to vector<8x256xbf16>
    %c40 = arith.constant 40 : index
    %c128_35 = arith.constant 128 : index
    %186 = vector.load %arg4[%c40, %c128_35] : memref<72x512xbf16, #tpu.memory_space<vmem>>, vector<8x256xbf16>
    tpu.vector_store %arg4[%c40, %c128_35], %185 {strides = array<i32>} : memref<72x512xbf16, #tpu.memory_space<vmem>>, vector<8x256xbf16>,
    %187 = arith.truncf %161 : vector<8x256xf32> to vector<8x256xbf16>
    %c48 = arith.constant 48 : index
    %c128_36 = arith.constant 128 : index
    %188 = vector.load %arg4[%c48, %c128_36] : memref<72x512xbf16, #tpu.memory_space<vmem>>, vector<8x256xbf16>
    tpu.vector_store %arg4[%c48, %c128_36], %187 {strides = array<i32>} : memref<72x512xbf16, #tpu.memory_space<vmem>>, vector<8x256xbf16>,
    %189 = arith.truncf %164 : vector<8x256xf32> to vector<8x256xbf16>
    %c56 = arith.constant 56 : index
    %c128_37 = arith.constant 128 : index
    %190 = vector.load %arg4[%c56, %c128_37] : memref<72x512xbf16, #tpu.memory_space<vmem>>, vector<8x256xbf16>
    tpu.vector_store %arg4[%c56, %c128_37], %189 {strides = array<i32>} : memref<72x512xbf16, #tpu.memory_space<vmem>>, vector<8x256xbf16>,
    %191 = arith.truncf %167 : vector<8x256xf32> to vector<8x256xbf16>
    %c64 = arith.constant 64 : index
    %c128_38 = arith.constant 128 : index
    %192 = vector.load %arg4[%c64, %c128_38] : memref<72x512xbf16, #tpu.memory_space<vmem>>, vector<8x256xbf16>
    tpu.vector_store %arg4[%c64, %c128_38], %191 {strides = array<i32>} : memref<72x512xbf16, #tpu.memory_space<vmem>>, vector<8x256xbf16>,
    %c0_39 = arith.constant 0 : index
    %c0_40 = arith.constant 0 : index
    %c0_41 = arith.constant 0 : index
    %193 = vector.load %arg2[%c0_39, %c0_40, %c0_41] : memref<9x16x72xbf16, #tpu.memory_space<vmem>>, vector<1x16x72xbf16>
    %194 = vector.shape_cast %193 : vector<1x16x72xbf16> to vector<16x72xbf16>
    %c0_42 = arith.constant 0 : index
    %c111 = arith.constant 111 : index
    %195 = vector.load %arg4[%c0_42, %c111] : memref<72x512xbf16, #tpu.memory_space<vmem>>, vector<72x256xbf16>
    %cst_43 = arith.constant dense<0.000000e+00> : vector<16x256xf32>
    %196 = tpu.matmul %194, %195, %cst_43 {dimension_numbers = #tpu.dot_dimension_numbers<[1], [0], [0], [1], [0, 0, 1, 1], [], []>} : vector<16x72xbf16>, vector<72x256xbf16>, vector<16x256xf32> -> vector<16x256xf32>
    %c1 = arith.constant 1 : index
    %c0_44 = arith.constant 0 : index
    %c0_45 = arith.constant 0 : index
    %197 = vector.load %arg2[%c1, %c0_44, %c0_45] : memref<9x16x72xbf16, #tpu.memory_space<vmem>>, vector<1x16x72xbf16>
    %198 = vector.shape_cast %197 : vector<1x16x72xbf16> to vector<16x72xbf16>
    %c0_46 = arith.constant 0 : index
    %c112 = arith.constant 112 : index
    %199 = vector.load %arg4[%c0_46, %c112] : memref<72x512xbf16, #tpu.memory_space<vmem>>, vector<72x256xbf16>
    %cst_47 = arith.constant dense<0.000000e+00> : vector<16x256xf32>
    %200 = tpu.matmul %198, %199, %cst_47 {dimension_numbers = #tpu.dot_dimension_numbers<[1], [0], [0], [1], [0, 0, 1, 1], [], []>} : vector<16x72xbf16>, vector<72x256xbf16>, vector<16x256xf32> -> vector<16x256xf32>
    %201 = arith.addf %196, %200 : vector<16x256xf32>
    %c2 = arith.constant 2 : index
    %c0_48 = arith.constant 0 : index
    %c0_49 = arith.constant 0 : index
    %202 = vector.load %arg2[%c2, %c0_48, %c0_49] : memref<9x16x72xbf16, #tpu.memory_space<vmem>>, vector<1x16x72xbf16>
    %203 = vector.shape_cast %202 : vector<1x16x72xbf16> to vector<16x72xbf16>
    %c0_50 = arith.constant 0 : index
    %c113 = arith.constant 113 : index
    %204 = vector.load %arg4[%c0_50, %c113] : memref<72x512xbf16, #tpu.memory_space<vmem>>, vector<72x256xbf16>
    %cst_51 = arith.constant dense<0.000000e+00> : vector<16x256xf32>
    %205 = tpu.matmul %203, %204, %cst_51 {dimension_numbers = #tpu.dot_dimension_numbers<[1], [0], [0], [1], [0, 0, 1, 1], [], []>} : vector<16x72xbf16>, vector<72x256xbf16>, vector<16x256xf32> -> vector<16x256xf32>
    %206 = arith.addf %201, %205 : vector<16x256xf32>
    %c3 = arith.constant 3 : index
    %c0_52 = arith.constant 0 : index
    %c0_53 = arith.constant 0 : index
    %207 = vector.load %arg2[%c3, %c0_52, %c0_53] : memref<9x16x72xbf16, #tpu.memory_space<vmem>>, vector<1x16x72xbf16>
    %208 = vector.shape_cast %207 : vector<1x16x72xbf16> to vector<16x72xbf16>
    %c0_54 = arith.constant 0 : index
    %c127 = arith.constant 127 : index
    %209 = vector.load %arg4[%c0_54, %c127] : memref<72x512xbf16, #tpu.memory_space<vmem>>, vector<72x256xbf16>
    %cst_55 = arith.constant dense<0.000000e+00> : vector<16x256xf32>
    %210 = tpu.matmul %208, %209, %cst_55 {dimension_numbers = #tpu.dot_dimension_numbers<[1], [0], [0], [1], [0, 0, 1, 1], [], []>} : vector<16x72xbf16>, vector<72x256xbf16>, vector<16x256xf32> -> vector<16x256xf32>
    %211 = arith.addf %206, %210 : vector<16x256xf32>
    %c4 = arith.constant 4 : index
    %c0_56 = arith.constant 0 : index
    %c0_57 = arith.constant 0 : index
    %212 = vector.load %arg2[%c4, %c0_56, %c0_57] : memref<9x16x72xbf16, #tpu.memory_space<vmem>>, vector<1x16x72xbf16>
    %213 = vector.shape_cast %212 : vector<1x16x72xbf16> to vector<16x72xbf16>
    %c0_58 = arith.constant 0 : index
    %c128_59 = arith.constant 128 : index
    %214 = vector.load %arg4[%c0_58, %c128_59] : memref<72x512xbf16, #tpu.memory_space<vmem>>, vector<72x256xbf16>
    %cst_60 = arith.constant dense<0.000000e+00> : vector<16x256xf32>
    %215 = tpu.matmul %213, %214, %cst_60 {dimension_numbers = #tpu.dot_dimension_numbers<[1], [0], [0], [1], [0, 0, 1, 1], [], []>} : vector<16x72xbf16>, vector<72x256xbf16>, vector<16x256xf32> -> vector<16x256xf32>
    %216 = arith.addf %211, %215 : vector<16x256xf32>
    %c5 = arith.constant 5 : index
    %c0_61 = arith.constant 0 : index
    %c0_62 = arith.constant 0 : index
    %217 = vector.load %arg2[%c5, %c0_61, %c0_62] : memref<9x16x72xbf16, #tpu.memory_space<vmem>>, vector<1x16x72xbf16>
    %218 = vector.shape_cast %217 : vector<1x16x72xbf16> to vector<16x72xbf16>
    %c0_63 = arith.constant 0 : index
    %c129 = arith.constant 129 : index
    %219 = vector.load %arg4[%c0_63, %c129] : memref<72x512xbf16, #tpu.memory_space<vmem>>, vector<72x256xbf16>
    %cst_64 = arith.constant dense<0.000000e+00> : vector<16x256xf32>
    %220 = tpu.matmul %218, %219, %cst_64 {dimension_numbers = #tpu.dot_dimension_numbers<[1], [0], [0], [1], [0, 0, 1, 1], [], []>} : vector<16x72xbf16>, vector<72x256xbf16>, vector<16x256xf32> -> vector<16x256xf32>
    %221 = arith.addf %216, %220 : vector<16x256xf32>
    %c6 = arith.constant 6 : index
    %c0_65 = arith.constant 0 : index
    %c0_66 = arith.constant 0 : index
    %222 = vector.load %arg2[%c6, %c0_65, %c0_66] : memref<9x16x72xbf16, #tpu.memory_space<vmem>>, vector<1x16x72xbf16>
    %223 = vector.shape_cast %222 : vector<1x16x72xbf16> to vector<16x72xbf16>
    %c0_67 = arith.constant 0 : index
    %c143 = arith.constant 143 : index
    %224 = vector.load %arg4[%c0_67, %c143] : memref<72x512xbf16, #tpu.memory_space<vmem>>, vector<72x256xbf16>
    %cst_68 = arith.constant dense<0.000000e+00> : vector<16x256xf32>
    %225 = tpu.matmul %223, %224, %cst_68 {dimension_numbers = #tpu.dot_dimension_numbers<[1], [0], [0], [1], [0, 0, 1, 1], [], []>} : vector<16x72xbf16>, vector<72x256xbf16>, vector<16x256xf32> -> vector<16x256xf32>
    %226 = arith.addf %221, %225 : vector<16x256xf32>
    %c7 = arith.constant 7 : index
    %c0_69 = arith.constant 0 : index
    %c0_70 = arith.constant 0 : index
    %227 = vector.load %arg2[%c7, %c0_69, %c0_70] : memref<9x16x72xbf16, #tpu.memory_space<vmem>>, vector<1x16x72xbf16>
    %228 = vector.shape_cast %227 : vector<1x16x72xbf16> to vector<16x72xbf16>
    %c0_71 = arith.constant 0 : index
    %c144 = arith.constant 144 : index
    %229 = vector.load %arg4[%c0_71, %c144] : memref<72x512xbf16, #tpu.memory_space<vmem>>, vector<72x256xbf16>
    %cst_72 = arith.constant dense<0.000000e+00> : vector<16x256xf32>
    %230 = tpu.matmul %228, %229, %cst_72 {dimension_numbers = #tpu.dot_dimension_numbers<[1], [0], [0], [1], [0, 0, 1, 1], [], []>} : vector<16x72xbf16>, vector<72x256xbf16>, vector<16x256xf32> -> vector<16x256xf32>
    %231 = arith.addf %226, %230 : vector<16x256xf32>
    %c8_73 = arith.constant 8 : index
    %c0_74 = arith.constant 0 : index
    %c0_75 = arith.constant 0 : index
    %232 = vector.load %arg2[%c8_73, %c0_74, %c0_75] : memref<9x16x72xbf16, #tpu.memory_space<vmem>>, vector<1x16x72xbf16>
    %233 = vector.shape_cast %232 : vector<1x16x72xbf16> to vector<16x72xbf16>
    %c0_76 = arith.constant 0 : index
    %c145 = arith.constant 145 : index
    %234 = vector.load %arg4[%c0_76, %c145] : memref<72x512xbf16, #tpu.memory_space<vmem>>, vector<72x256xbf16>
    %cst_77 = arith.constant dense<0.000000e+00> : vector<16x256xf32>
    %235 = tpu.matmul %233, %234, %cst_77 {dimension_numbers = #tpu.dot_dimension_numbers<[1], [0], [0], [1], [0, 0, 1, 1], [], []>} : vector<16x72xbf16>, vector<72x256xbf16>, vector<16x256xf32> -> vector<16x256xf32>
    %236 = arith.addf %231, %235 : vector<16x256xf32>
    %c0_78 = arith.constant 0 : index
    %c0_79 = arith.constant 0 : index
    %237 = vector.load %arg3[%c0_78, %c0_79] : memref<16x256xf32, #tpu.memory_space<vmem>>, vector<16x256xf32>
    tpu.vector_store %arg3[%c0_78, %c0_79], %236 {strides = array<i32>} : memref<16x256xf32, #tpu.memory_space<vmem>>, vector<16x256xf32>,
    return
  }
  func.func @transform_0(%arg0: i32) -> (i32, i32) {
    %c0_i32 = arith.constant 0 : i32
    %c0_i32_0 = arith.constant 0 : i32
    return %c0_i32, %arg0 : i32, i32
  }
  func.func @transform_1(%arg0: i32) -> (i32, i32, i32) {
    %c0_i32 = arith.constant 0 : i32
    %c0_i32_0 = arith.constant 0 : i32
    %c0_i32_1 = arith.constant 0 : i32
    %c0_i32_2 = arith.constant 0 : i32
    return %c0_i32, %c0_i32_0, %c0_i32_1 : i32, i32, i32
  }
  func.func @transform_2(%arg0: i32) -> (i32, i32) {
    %c0_i32 = arith.constant 0 : i32
    %c0_i32_0 = arith.constant 0 : i32
    return %c0_i32, %arg0 : i32, i32
  }
}

module attributes {stable_mosaic.version = 11 : i64} {
  func.func @fc_fused_kernel(%arg0: i32, %arg1: memref<2x784xf32, #tpu.memory_space<vmem>>, %arg2: memref<784x128xf32, #tpu.memory_space<vmem>>, %arg3: memref<1x128xf32, #tpu.memory_space<vmem>>, %arg4: memref<128x128xf32, #tpu.memory_space<vmem>>, %arg5: memref<1x128xf32, #tpu.memory_space<vmem>>, %arg6: memref<2x128xf32, #tpu.memory_space<vmem>>) attributes {dimension_semantics = [#tpu.dimension_semantics<parallel>], iteration_bounds = array<i64: 1>, scalar_prefetch = 0 : i64, scratch_operands = 0 : i64, tpu.core_type = #tpu.core_type<tc>, window_params = [{transform_indices = @transform_0, window_bounds = array<i64: 2, 784>}, {pipeline_mode = #tpu.pipeline_mode<synchronous>, transform_indices = @transform_1, window_bounds = array<i64: 784, 128>}, {pipeline_mode = #tpu.pipeline_mode<synchronous>, transform_indices = @transform_2, window_bounds = array<i64: 1, 128>}, {pipeline_mode = #tpu.pipeline_mode<synchronous>, transform_indices = @transform_3, window_bounds = array<i64: 128, 128>}, {pipeline_mode = #tpu.pipeline_mode<synchronous>, transform_indices = @transform_4, window_bounds = array<i64: 1, 128>}, {transform_indices = @transform_5, window_bounds = array<i64: 2, 128>}]} {
    %c0 = arith.constant 0 : index
    %c0_0 = arith.constant 0 : index
    %0 = vector.load %arg1[%c0, %c0_0] : memref<2x784xf32, #tpu.memory_space<vmem>>, vector<2x784xf32>
    %c0_1 = arith.constant 0 : index
    %c0_2 = arith.constant 0 : index
    %1 = vector.load %arg2[%c0_1, %c0_2] : memref<784x128xf32, #tpu.memory_space<vmem>>, vector<784x128xf32>
    %cst = arith.constant dense<0.000000e+00> : vector<2x128xf32>
    %2 = tpu.matmul %0, %1, %cst {dimension_numbers = #tpu.dot_dimension_numbers<[1], [0], [0], [1], [0, 0, 1, 1], [], []>} : vector<2x784xf32>, vector<784x128xf32>, vector<2x128xf32> -> vector<2x128xf32>
    %c0_3 = arith.constant 0 : index
    %c0_4 = arith.constant 0 : index
    %3 = vector.load %arg3[%c0_3, %c0_4] : memref<1x128xf32, #tpu.memory_space<vmem>>, vector<1x128xf32>
    %4 = vector.broadcast %3 : vector<1x128xf32> to vector<2x128xf32>
    %5 = arith.addf %2, %4 : vector<2x128xf32>
    %c0_5 = arith.constant 0 : index
    %c0_6 = arith.constant 0 : index
    %6 = vector.load %arg4[%c0_5, %c0_6] : memref<128x128xf32, #tpu.memory_space<vmem>>, vector<128x128xf32>
    %cst_7 = arith.constant dense<0.000000e+00> : vector<2x128xf32>
    %7 = tpu.matmul %5, %6, %cst_7 {dimension_numbers = #tpu.dot_dimension_numbers<[1], [0], [0], [1], [0, 0, 1, 1], [], []>} : vector<2x128xf32>, vector<128x128xf32>, vector<2x128xf32> -> vector<2x128xf32>
    %c0_8 = arith.constant 0 : index
    %c0_9 = arith.constant 0 : index
    %8 = vector.load %arg5[%c0_8, %c0_9] : memref<1x128xf32, #tpu.memory_space<vmem>>, vector<1x128xf32>
    %9 = vector.broadcast %8 : vector<1x128xf32> to vector<2x128xf32>
    %10 = arith.addf %7, %9 : vector<2x128xf32>
    %c0_10 = arith.constant 0 : index
    %c0_11 = arith.constant 0 : index
    %11 = vector.load %arg6[%c0_10, %c0_11] : memref<2x128xf32, #tpu.memory_space<vmem>>, vector<2x128xf32>
    tpu.vector_store %arg6[%c0_10, %c0_11], %10 {strides = array<i32>} : memref<2x128xf32, #tpu.memory_space<vmem>>, vector<2x128xf32>,
    return
  }
  func.func @transform_0(%arg0: i32) -> (i32, i32) {
    %c0_i32 = arith.constant 0 : i32
    %c0_i32_0 = arith.constant 0 : i32
    return %arg0, %c0_i32 : i32, i32
  }
  func.func @transform_1(%arg0: i32) -> (i32, i32) {
    %c0_i32 = arith.constant 0 : i32
    %c0_i32_0 = arith.constant 0 : i32
    %c0_i32_1 = arith.constant 0 : i32
    return %c0_i32, %c0_i32_0 : i32, i32
  }
  func.func @transform_2(%arg0: i32) -> (i32, i32) {
    %c0_i32 = arith.constant 0 : i32
    %c0_i32_0 = arith.constant 0 : i32
    %c0_i32_1 = arith.constant 0 : i32
    return %c0_i32, %c0_i32_0 : i32, i32
  }
  func.func @transform_3(%arg0: i32) -> (i32, i32) {
    %c0_i32 = arith.constant 0 : i32
    %c0_i32_0 = arith.constant 0 : i32
    %c0_i32_1 = arith.constant 0 : i32
    return %c0_i32, %c0_i32_0 : i32, i32
  }
  func.func @transform_4(%arg0: i32) -> (i32, i32) {
    %c0_i32 = arith.constant 0 : i32
    %c0_i32_0 = arith.constant 0 : i32
    %c0_i32_1 = arith.constant 0 : i32
    return %c0_i32, %c0_i32_0 : i32, i32
  }
  func.func @transform_5(%arg0: i32) -> (i32, i32) {
    %c0_i32 = arith.constant 0 : i32
    %c0_i32_0 = arith.constant 0 : i32
    return %arg0, %c0_i32 : i32, i32
  }
}

</mosaic_0001>

<bundles_post_ra>
// kernel: mnist_ckan_forward.3
= control target key start
LH: loop header
LB: loop body
LE: loop exit
PB: predicated region body
PF: predicated region fallthrough
CT: control target
= control target key end

     0   :  { %s4416_s9 = smov 0   ;;  %s5688_s0 = inlined_call_operand.vmem [shape: f32[1,2048], index: 0, kind: input, shape index: {}]   ;;  %s5689_s1 = inlined_call_operand.vmem [shape: bf16[9,8,9], index: 1, kind: input, shape index: {}]   ;;  %s5690_s2 = inlined_call_operand.vmem [shape: f32[8,2048], index: 2, kind: output, shape index: {}]  }
   0x1 LB: > { %s3927_s10 = sadd.s32 4294967295, %s4388_s9   ;;  %p3931_p0 = scmp.ge.s32.totalorder %s4388_s9, 1  ;;  %s4388_s9 = sphi %s4416_s9, %s12_s9  }
   0x2   : > { %p112_p1 = scmp.lt.s32.totalorder %s4388_s9, 3 }
   0x4   : > { %p113_p2 = pnand %p3931_p0, %p112_p1 }
   0x5   : > { %s3932_s11 = sshll.u32 (!%p113_p2), %s3927_s10, 3  ;;  %v304_v0 = vlaneseq (!%p113_p2)  ;;  %v4390_v17 = vmov (!%p113_p2), 0.0   ;;  %vm379_vm12 = vcmask (!%p113_p2), 1041409   ;;  %vm380_vm13 = vsmask.f32 (!%p113_p2), 1280  ;;  %s4392_s15 = smov (!%p113_p2), 30  }
   0x6   : > { %116 = sbr.rel (%p113_p2) target bundleno = 691 (0x2b3), region = 28  ;;  %p134_p3 = scmp.lt.s32.totalorder (!%p113_p2), %s3932_s11, 15  ;;  %vm382_vm14 = vcmask (!%p113_p2), 1045509   ;;  %vm383_vm15 = vsmask.f32 (!%p113_p2), 5376 }
   0x7   : > { %v305_v1 = vshrl.u32 (!%p113_p2), %v304_v0, 7  ;;  %s4393_s16 = smov (!%p113_p2), 31   ;;  %s4394_s17 = smov (!%p113_p2), 29  }
   0x8   : > { %s4395_s18 = smov (!%p113_p2), 1   ;;  %s4396_s19 = smov (!%p113_p2), 127  }
   0x9   : > { %v4435_v3 = vsub.s32 (!%p113_p2), 0, %v305_v1  ;;  %v4437_v4 = vsub.s32 (!%p113_p2), 1, %v305_v1  ;;  %s4397_s20 = smov (!%p113_p2), 99   ;;  %s4398_s21 = smov (!%p113_p2), 98  }
   0xa   : > { %s4399_s22 = smov (!%p113_p2), 97  }
   0xd   : > { %s5734_s11 = smov (!%p134_p3, %s3932_s11), 15 }
   0xe   : > { %s4430_s14 = scalar_lea.vmem %s5688_s0, %s5734_s11  ;;  %s3934_s5 = sshll.u32 %s5734_s11, 3 }
   0xf   : > { %v4433_v2 = vld [vmem:[%s4430_s14] sm:$0x3]  ;;  %s142_s8 = scalar_lea.vmem %s5690_s2, %s3934_s5 }
  0x10   : > { %v4440_v5 = vadd.f32 2.2, %v4433_v2  ;;  %v4443_v6 = vadd.f32 1.8, %v4433_v2  ;;  %v4446_v7 = vadd.f32 1.4, %v4433_v2 }
  0x11   : > { %v4449_v8 = vadd.f32 1.0, %v4433_v2  ;;  %v4452_v9 = vadd.f32 0.6, %v4433_v2  ;;  %v4455_v10 = vadd.f32 0.2, %v4433_v2  ;;  %v4458_v11 = vadd.f32 -1.0, %v4433_v2 }
  0x12   : > { %v4461_v12 = vadd.f32 -0.2, %v4433_v2  ;;  %v4464_v13 = vadd.f32 -0.6, %v4433_v2  ;;  %v4467_v14 = vadd.f32 -1.4, %v4433_v2 }
  0x13   : > { %v4470_v15 = vadd.f32 -1.8, %v4433_v2  ;;  %v4473_v16 = vadd.f32 -2.2, %v4433_v2  ;;  %vm169_vm0 = vcmp.ge.f32.partialorder %v4440_v5, 0.0  ;;  %vm172_vm1 = vcmp.ge.f32.partialorder %v4443_v6, 0.0 }
  0x14   : > { %v3947_v18 = vsel %vm169_vm0, 1.0, %v4390_v17  ;;  %v3948_v19 = vsel %vm172_vm1, 1.0, %v4390_v17  ;;  %vm176_vm2 = vcmp.ge.f32.partialorder %v4446_v7, 0.0  ;;  %vm180_vm3 = vcmp.ge.f32.partialorder %v4449_v8, 0.0 }
  0x15   : > { %v175_v20 = vsub.f32 %v3947_v18, %v3948_v19  ;;  %v3949_v21 = vsel %vm176_vm2, 1.0, %v4390_v17  ;;  %v3950_v22 = vsel %vm180_vm3, 1.0, %v4390_v17  ;;  %vm184_vm4 = vcmp.ge.f32.partialorder %v4452_v9, 0.0 }
  0x16   : > { %v179_v23 = vsub.f32 %v3948_v19, %v3949_v21  ;;  %v183_v24 = vsub.f32 %v3949_v21, %v3950_v22  ;;  %v3951_v25 = vsel %vm184_vm4, 1.0, %v4390_v17  ;;  %vm188_vm5 = vcmp.ge.f32.partialorder %v4455_v10, 0.0 }
  0x17   : > { %v187_v26 = vsub.f32 %v3950_v22, %v3951_v25  ;;  %v3952_v27 = vsel %vm188_vm5, 1.0, %v4390_v17  ;;  %vm192_vm6 = vcmp.ge.f32.partialorder %v4461_v12, 0.0  ;;  %vm196_vm7 = vcmp.ge.f32.partialorder %v4464_v13, 0.0 }
  0x18   : > { %v191_v28 = vsub.f32 %v3951_v25, %v3952_v27  ;;  %v3953_v29 = vsel %vm192_vm6, 1.0, %v4390_v17  ;;  %v3954_v30 = vsel %vm196_vm7, 1.0, %v4390_v17  ;;  %vm200_vm8 = vcmp.ge.f32.partialorder %v4458_v11, 0.0 }
  0x19   : > { %v195_v31 = vsub.f32 %v3952_v27, %v3953_v29  ;;  %v199_v32 = vsub.f32 %v3953_v29, %v3954_v30  ;;  %v3955_v33 = vsel %vm200_vm8, 1.0, %v4390_v17  ;;  %vm204_vm9 = vcmp.ge.f32.partialorder %v4467_v14, 0.0 }
  0x1a   : > { %v203_v34 = vsub.f32 %v3954_v30, %v3955_v33  ;;  %v3956_v35 = vsel %vm204_vm9, 1.0, %v4390_v17  ;;  %vm208_vm10 = vcmp.ge.f32.partialorder %v4470_v15, 0.0  ;;  %vm212_vm11 = vcmp.ge.f32.partialorder %v4473_v16, 0.0  ;;  %vm4548_vm9 = vmand %vm379_vm12, %vm380_vm13 }
  0x1b   : > { %v207_v36 = vsub.f32 %v3955_v33, %v3956_v35  ;;  %v3957_v37 = vsel %vm208_vm10, 1.0, %v4390_v17  ;;  %v3958_v38 = vsel %vm212_vm11, 1.0, %v4390_v17  ;;  %v216_v39 = vmul.f32 %v4440_v5, %v175_v20  ;;  %vm384_vm10 = vmand %vm382_vm14, %vm383_vm15 }
  0x1c   : > { %v211_v40 = vsub.f32 %v3956_v35, %v3957_v37  ;;  %v215_v41 = vsub.f32 %v3957_v37, %v3958_v38  ;;  %v217_v42 = vmul.f32 %v4446_v7, %v179_v23  ;;  %v219_v43 = vmul.f32 %v4443_v6, %v179_v23  ;;  %vm4578_vm15 = vmor %vm384_vm10, %vm4548_vm9 }
  0x1d   : > { %v220_v44 = vmul.f32 %v4449_v8, %v183_v24  ;;  %v222_v45 = vmul.f32 %v4446_v7, %v183_v24  ;;  %v223_v46 = vmul.f32 %v4452_v9, %v187_v26  ;;  %v225_v47 = vmul.f32 %v4449_v8, %v187_v26 }
  0x1e   : > { %v218_v48 = vsub.f32 %v216_v39, %v217_v42  ;;  %v226_v49 = vmul.f32 %v4455_v10, %v191_v28  ;;  %v228_v50 = vmul.f32 %v4452_v9, %v191_v28  ;;  %v229_v51 = vmul.f32 %v4461_v12, %v195_v31 }
  0x1f   : > { %v221_v52 = vsub.f32 %v219_v43, %v220_v44  ;;  %v224_v53 = vsub.f32 %v222_v45, %v223_v46  ;;  %v231_v54 = vmul.f32 %v4455_v10, %v195_v31  ;;  %v232_v55 = vmul.f32 %v4464_v13, %v199_v32 }
  0x20   : > { %v227_v56 = vsub.f32 %v225_v47, %v226_v49  ;;  %v230_v57 = vsub.f32 %v228_v50, %v229_v51  ;;  %v234_v58 = vmul.f32 %v4461_v12, %v199_v32  ;;  %v235_v59 = vmul.f32 %v4458_v11, %v203_v34 }
  0x21   : > { %v233_v60 = vsub.f32 %v231_v54, %v232_v55  ;;  %v237_v61 = vmul.f32 %v4464_v13, %v203_v34  ;;  %v238_v62 = vmul.f32 %v4467_v14, %v207_v36  ;;  %v240_v63 = vmul.f32 %v4458_v11, %v207_v36 }
  0x22   : > { %v236_v0 = vsub.f32 %v234_v58, %v235_v59  ;;  %v241_v1 = vmul.f32 %v4470_v15, %v211_v40  ;;  %v243_v18 = vmul.f32 %v4467_v14, %v211_v40  ;;  %v244_v19 = vmul.f32 %v4473_v16, %v215_v41 }
  0x23   : > { %v239_v20 = vsub.f32 %v237_v61, %v238_v62  ;;  %v246_v21 = vmul.f32 %v4440_v5, %v218_v48  ;;  %v247_v22 = vmul.f32 %v4449_v8, %v221_v52  ;;  %v249_v23 = vmul.f32 %v4443_v6, %v221_v52 }
  0x24   : > { %v242_v24 = vsub.f32 %v240_v63, %v241_v1  ;;  %v245_v25 = vsub.f32 %v243_v18, %v244_v19  ;;  %v250_v26 = vmul.f32 %v4452_v9, %v224_v53  ;;  %v252_v27 = vmul.f32 %v4446_v7, %v224_v53 }
  0x25   : > { %vm5692_vm0 = vcmask 1040384   ;;  %vm147_vm1 = vsmask.f32 256  ;;  %v248_v28 = vsub.f32 %v246_v21, %v247_v22  ;;  %v253_v29 = vmul.f32 %v4455_v10, %v227_v56 }
  0x26   : > { %v255_v30 = vmul.f32 %v4449_v8, %v227_v56  ;;  %v256_v31 = vmul.f32 %v4461_v12, %v230_v57  ;;  %vm5691_vm2 = vcmask 1044484   ;;  %vm323_vm3 = vsmask.f32 4352  ;;  %vm4564_vm11 = vmand %vm5692_vm0, %vm147_vm1 }
  0x27   : > { %v251_v32 = vsub.f32 %v249_v23, %v250_v26  ;;  %v258_v33 = vmul.f32 %v4452_v9, %v230_v57  ;;  %v259_v34 = vmul.f32 %v4464_v13, %v233_v60  ;;  %v261_v35 = vmul.f32 %v4455_v10, %v233_v60  ;;  %vm4570_vm13 = vmand %vm5691_vm2, %vm323_vm3 }
  0x28   : > { %vm440_vm4 = vcmask 1042434   ;;  %vm441_vm5 = vsmask.f32 2304  ;;  %v254_v36 = vsub.f32 %v252_v27, %v253_v29  ;;  %v257_v37 = vsub.f32 %v255_v30, %v256_v31 }
  0x29   : > { %v262_v38 = vmul.f32 %v4458_v11, %v236_v0  ;;  %v264_v39 = vmul.f32 %v4461_v12, %v236_v0  ;;  %vm443_vm6 = vcmask 1046534   ;;  %vm444_vm7 = vsmask.f32 6400  ;;  %vm4586_vm3 = vmand %vm440_vm4, %vm441_vm5 }
  0x2a   : > { %v260_v40 = vsub.f32 %v258_v33, %v259_v34  ;;  %v265_v41 = vmul.f32 %v4467_v14, %v239_v20  ;;  %v267_v42 = vmul.f32 %v4464_v13, %v239_v20  ;;  %v268_v43 = vmul.f32 %v4470_v15, %v242_v24  ;;  %vm445_vm9 = vmand %vm443_vm6, %vm444_vm7  ;;  %v386_v33 = vld [vmem:[#allocation2 + $0x4] sm:$0x22] }
  0x2b   : > { %vm412_vm8 = vsmask.f32 7942  ;;  %v263_v44 = vsub.f32 %v261_v35, %v262_v38  ;;  %v270_v45 = vmul.f32 %v4458_v11, %v242_v24  ;;  %v271_v46 = vmul.f32 %v4473_v16, %v245_v25  ;;  %vm4616_vm7 = vmor %vm445_vm9, %vm4586_vm3 }
  0x2c   : > { %v273_v47 = vmul.f32 %v4440_v5, %v248_v28  ;;  %v266_v48 = vsub.f32 %v264_v39, %v265_v41  ;;  %v269_v49 = vsub.f32 %v267_v42, %v268_v43  ;;  %v274_v50 = vmul.f32 %v4452_v9, %v251_v32  ;;  %vm4599_vm10 = vmand %vm379_vm12, %vm412_vm8  ;;  %v447_v42 = vld [vmem:[#allocation2 + $0x4] sm:$0x44] }
  0x2d   : > { %v276_v51 = vmul.f32 %v4443_v6, %v251_v32  ;;  %v272_v52 = vsub.f32 %v270_v45, %v271_v46  ;;  %v277_v53 = vmul.f32 %v4455_v10, %v254_v36  ;;  %v279_v54 = vmul.f32 %v4446_v7, %v254_v36 }
  0x2e   : > { %v280_v55 = vmul.f32 %v4461_v12, %v257_v37  ;;  %v275_v56 = vsub.f32 %v273_v47, %v274_v50  ;;  %v282_v57 = vmul.f32 %v4449_v8, %v257_v37  ;;  %v283_v58 = vmul.f32 %v4464_v13, %v260_v40 }
  0x2f   : > { %v285_v5 = vmul.f32 %v4452_v9, %v260_v40  ;;  %v278_v6 = vsub.f32 %v276_v51, %v277_v53  ;;  %v286_v61 = vmul.f32 %v4458_v11, %v263_v44  ;;  %v288_v7 = vmul.f32 %v4455_v10, %v263_v44 }
  0x30   : > { %v281_v60 = vsub.f32 %v279_v54, %v280_v55  ;;  %v284_v8 = vsub.f32 %v282_v57, %v283_v58  ;;  %v289_v62 = vmul.f32 %v4467_v14, %v266_v48  ;;  %v291_v9 = vmul.f32 %v4461_v12, %v266_v48  ;;  %v508_v54 = vld [vmem:[#allocation2 + $0x4] sm:$0x88] }
  0x31   : > { %v292_v63 = vmul.f32 %v4470_v15, %v269_v49  ;;  %v287_v0 = vsub.f32 %v285_v5, %v286_v61  ;;  %v294_v1 = vmul.f32 %v4464_v13, %v269_v49  ;;  %v295_v18 = vmul.f32 %v4473_v16, %v272_v52 }
  0x32   : > { %v297_v19 = vsub.f32 0.0, %v4433_v2  ;;  %v290_v11 = vsub.f32 %v288_v7, %v289_v62  ;;  %v333_v14 = vrot.slane %v275_v56, %v4435_v3  ;;  %v337_v13 = vrot.slane %v275_v56, %v4437_v4 }
  0x33   : > { %vm414_vm1 = vsmask.f32 7958  ;;  %v293_v16 = vsub.f32 %v291_v9, %v292_v63  ;;  %v363_v21 = vrot.slane %v278_v6, %v4435_v3  ;;  %v367_v22 = vrot.slane %v278_v6, %v4437_v4  ;;  %v4648_v6 = vld [vmem:[%s4430_s14 + $0x2] sm:$0x3] }
  0x34   : > { %v298_v20 = vmul.f32 1.442695, %v297_v19  ;;  %v4590_v24 = vsub.f32 %v294_v1, %v295_v18  ;;  %v393_v25 = vrot.slane %v281_v60, %v4435_v3  ;;  %v397_v26 = vrot.slane %v281_v60, %v4437_v4  ;;  %vm4609_vm5 = vmand %vm382_vm14, %vm414_vm1 }
  0x35   : > { %v424_v27 = vrot.slane %v284_v8, %v4435_v3  ;;  %v4151_v28 = vpack.c.bf16 %v367_v22, %v363_v21  ;;  %v428_v30 = vrot.slane %v284_v8, %v4437_v4  ;;  %v454_v31 = vrot.slane %v287_v0, %v4435_v3  ;;  %v561_v8 = vld [vmem:[#allocation2 + $0x2c] sm:$0x11] }
  0x36   : > { %4366 = vpow2.f32 %v298_v20  ;;  %v4605_v32 = vpack.c.bf16 %v337_v13, %v333_v14  ;;  %v4152_v34 = vpack.c.bf16 %v397_v26, %v393_v25  ;;  %v458_v36 = vrot.slane %v287_v0, %v4437_v4 }
  0x37   : > { %vm473_vm12 = vsmask.f32 7946  ;;  %v377_v37 = vrot.slane %v4151_v28, 7  ;;  %v4153_v38 = vpack.c.bf16 %v428_v30, %v424_v27  ;;  %vm475_vm8 = vsmask.f32 7962 }
  0x38   : > { %v485_v40 = vrot.slane %v290_v11, %v4435_v3  ;;  %v408_v41 = vshll.u32 %v4152_v34, 16  ;;  %v4154_v43 = vpack.c.bf16 %v458_v36, %v454_v31  ;;  %vm4622_vm14 = vmand %vm440_vm4, %vm473_vm12  ;;  %v489_v45 = vrot.slane %v290_v11, %v4437_v4 }
  0x39   : > { %vm501_vm1 = vcmask 1043459   ;;  %v387_v46 = vsel %vm4578_vm15, %v377_v37, %v386_v33  ;;  %v438_v47 = vrot.slane %v4153_v38, 6  ;;  %vm4630_vm3 = vmand %vm443_vm6, %vm475_vm8  ;;  %vm502_vm9 = vsmask.f32 3328 }
  0x3a   : > { %vm504_vm2 = vcmask 1047559   ;;  %v348_v49 = vshll.u32 %v4605_v32, 16  ;;  %388 = vst [vmem:[#allocation2 + $0x4] sm:$0x22] %v387_v46  ;;  %v469_v50 = vshll.u32 %v4154_v43, 16  ;;  %v4155_v51 = vpack.c.bf16 %v489_v45, %v485_v40  ;;  %vm503_vm4 = vmand %vm501_vm1, %vm502_vm9 }
  0x3b   : > { %vm505_vm12 = vsmask.f32 7424  ;;  %v410_v52 = vrot.slane %v408_v41, 7  ;;  %v448_v53 = vsel %vm4616_vm7, %v438_v47, %v447_v42  ;;  %v515_v55 = vrot.slane %v293_v16, %v4435_v3 }
  0x3c   : > { %vm506_vm6 = vmand %vm504_vm2, %vm505_vm12  ;;  %v519_v56 = vrot.slane %v293_v16, %v4437_v4  ;;  %449 = vst [vmem:[#allocation2 + $0x4] sm:$0x44] %v448_v53  ;;  %v471_v57 = vrot.slane %v469_v50, 6  ;;  %v499_v58 = vrot.slane %v4155_v51, 5  ;;  %vm534_vm9 = vsmask.f32 7950 }
  0x3d   : > { %vm4641_vm8 = vmor %vm506_vm6, %vm503_vm4  ;;  %v546_v59 = vrot.slane %v4590_v24, %v4435_v3  ;;  %vm536_vm0 = vsmask.f32 7966  ;;  %v550_v7 = vrot.slane %v4590_v24, %v4437_v4  ;;  %v4661_v62 = vadd.f32 2.2, %v4648_v6 }
  0x3e   : > { %vm4654_vm12 = vmor %vm4570_vm13, %vm4564_vm11  ;;  %v4156_v61 = vpack.c.bf16 %v519_v56, %v515_v55  ;;  %v509_v63 = vsel %vm4641_vm8, %v499_v58, %v508_v54  ;;  %v4674_v0 = vadd.f32 1.8, %v4648_v6  ;;  %v4677_v1 = vadd.f32 1.4, %v4648_v6 }
  0x3f   : > { %vm4667_vm4 = vmor %vm4609_vm5, %vm4599_vm10  ;;  %v4680_v18 = vadd.f32 1.0, %v4648_v6  ;;  %510 = vst [vmem:[#allocation2 + $0x4] sm:$0x88] %v509_v63  ;;  %v4157_v14 = vpack.c.bf16 %v550_v7, %v546_v59  ;;  %v4691_v13 = vadd.f32 0.6, %v4648_v6  ;;  %v4709_v24 = vadd.f32 -1.0, %v4648_v6 }
  0x40   : > { %v4367_v19 = vpop.eup %4366  ;;  %vm4686_vm13 = vmor %vm4630_vm3, %vm4622_vm14  ;;  %v530_v12 = vshll.u32 %v4156_v61, 16  ;;  %v4694_v16 = vadd.f32 0.2, %v4648_v6  ;;  %v4703_v22 = vadd.f32 -0.2, %v4648_v6  ;;  %vm577_vm14 = vcmp.ge.f32.partialorder %v4661_v62, 0.0 }
  0x41   : > { %v300_v20 = vadd.f32 1.0, %v4367_v19  ;;  %vm4698_vm10 = vmand %vm501_vm1, %vm534_vm9  ;;  %v4706_v23 = vadd.f32 -0.6, %v4648_v6  ;;  %v417_v25 = vld [vmem:[#allocation2 + $0x4] sm:$0x22]  ;;  %v562_v28 = vsel %vm4654_vm12, %v4157_v14, %v561_v8  ;;  %v3980_v33 = vsel %vm577_vm14, 1.0, %v4390_v17 }
  0x42   : > { %v532_v26 = vrot.slane %v530_v12, 5  ;;  %vm4713_vm5 = vmand %vm504_vm2, %vm536_vm0  ;;  %v4720_v29 = vadd.f32 -1.4, %v4648_v6  ;;  %v418_v30 = vsel %vm4667_vm4, %v410_v52, %v417_v25  ;;  %563 = vst [vmem:[#allocation2 + $0x2c] sm:$0x11] %v562_v28  ;;  %vm580_vm0 = vcmp.ge.f32.partialorder %v4674_v0, 0.0 }
  0x43   : > { %4368 = vrcp.f32 %v300_v20  ;;  %v4726_v31 = vadd.f32 -1.8, %v4648_v6  ;;  %419 = vst [vmem:[#allocation2 + $0x4] sm:$0x22] %v418_v30  ;;  %v478_v34 = vld [vmem:[#allocation2 + $0x4] sm:$0x44]  ;;  %vm4739_vm6 = vmor %vm4713_vm5, %vm4698_vm10 }
  0x44   : > { %vm584_vm2 = vcmp.ge.f32.partialorder %v4677_v1, 0.0  ;;  %vm588_vm1 = vcmp.ge.f32.partialorder %v4680_v18, 0.0  ;;  %vm592_vm3 = vcmp.ge.f32.partialorder %v4691_v13, 0.0  ;;  %v479_v35 = vsel %vm4686_vm13, %v471_v57, %v478_v34 }
  0x45   : > { %v3981_v37 = vsel %vm580_vm0, 1.0, %v4390_v17  ;;  %v3982_v38 = vsel %vm584_vm2, 1.0, %v4390_v17  ;;  %v3983_v40 = vsel %vm588_vm1, 1.0, %v4390_v17  ;;  %480 = vst [vmem:[#allocation2 + $0x4] sm:$0x44] %v479_v35  ;;  %v3984_v44 = vsel %vm592_vm3, 1.0, %v4390_v17 }
  0x46   : > { %v4747_v41 = vadd.f32 -2.2, %v4648_v6  ;;  %v583_v42 = vsub.f32 %v3980_v33, %v3981_v37  ;;  %v587_v43 = vsub.f32 %v3981_v37, %v3982_v38  ;;  %v539_v45 = vld [vmem:[#allocation2 + $0x4] sm:$0x88]  ;;  %v591_v46 = vsub.f32 %v3982_v38, %v3983_v40 }
  0x47   : > { %vm596_vm9 = vcmp.ge.f32.partialorder %v4694_v16, 0.0  ;;  %vm600_vm10 = vcmp.ge.f32.partialorder %v4703_v22, 0.0  ;;  %vm604_vm5 = vcmp.ge.f32.partialorder %v4706_v23, 0.0  ;;  %v540_v47 = vsel %vm4739_vm6, %v532_v26, %v539_v45 }
  0x48   : > { %v3985_v48 = vsel %vm596_vm9, 1.0, %v4390_v17  ;;  %v3986_v50 = vsel %vm600_vm10, 1.0, %v4390_v17  ;;  %v3987_v51 = vsel %vm604_vm5, 1.0, %v4390_v17  ;;  %541 = vst [vmem:[#allocation2 + $0x4] sm:$0x88] %v540_v47  ;;  %v595_v52 = vsub.f32 %v3983_v40, %v3984_v44 }
  0x49   : > { %v599_v53 = vsub.f32 %v3984_v44, %v3985_v48  ;;  %v603_v54 = vsub.f32 %v3985_v48, %v3986_v50  ;;  %vm608_vm14 = vcmp.ge.f32.partialorder %v4709_v24, 0.0  ;;  %vm612_vm0 = vcmp.ge.f32.partialorder %v4720_v29, 0.0 }
  0x4a   : > { %v3988_v55 = vsel %vm608_vm14, 1.0, %v4390_v17  ;;  %vm616_vm2 = vcmp.ge.f32.partialorder %v4726_v31, 0.0  ;;  %vm620_vm1 = vcmp.ge.f32.partialorder %v4747_v41, 0.0  ;;  %vm351_vm3 = vsmask.f32 7938 }
  0x4b   : > { %v607_v56 = vsub.f32 %v3986_v50, %v3987_v51  ;;  %v611_v57 = vsub.f32 %v3987_v51, %v3988_v55  ;;  %v3989_v58 = vsel %vm612_vm0, 1.0, %v4390_v17  ;;  %v3990_v59 = vsel %vm616_vm2, 1.0, %v4390_v17 }
  0x4c   : > { %vm353_vm9 = vsmask.f32 7954  ;;  %v615_v61 = vsub.f32 %v3988_v55, %v3989_v58  ;;  %v619_v7 = vsub.f32 %v3989_v58, %v3990_v59  ;;  %v3991_v8 = vsel %vm620_vm1, 1.0, %v4390_v17 }
  0x4d   : > { %v624_v63 = vmul.f32 %v4661_v62, %v583_v42  ;;  %v4369_v19 = vpop.eup %4368  ;;  %v625_v12 = vmul.f32 %v4677_v1, %v587_v43  ;;  %v627_v14 = vmul.f32 %v4674_v0, %v587_v43  ;;  %v628_v20 = vmul.f32 %v4680_v18, %v591_v46  ;;  %v326_v43 = vld [vmem:[#allocation2 + $0x4] sm:$0x11] }
  0x4e   : > { %v630_v21 = vmul.f32 %v4677_v1, %v591_v46  ;;  %v302_v25 = vmul.f32 %v4369_v19, %v4433_v2  ;;  %v631_v26 = vmul.f32 %v4691_v13, %v595_v52  ;;  %v633_v27 = vmul.f32 %v4680_v18, %v595_v52 }
  0x4f   : > { %v634_v28 = vmul.f32 %v4694_v16, %v599_v53  ;;  %v623_v30 = vsub.f32 %v3990_v59, %v3991_v8  ;;  %v626_v33 = vsub.f32 %v624_v63, %v625_v12  ;;  %v636_v34 = vmul.f32 %v4691_v13, %v599_v53 }
  0x50   : > { %v637_v35 = vmul.f32 %v4703_v22, %v603_v54  ;;  %v307_v37 = vrot.slane %v302_v25, %v4435_v3  ;;  %v311_v38 = vrot.slane %v302_v25, %v4437_v4  ;;  %v629_v40 = vsub.f32 %v627_v14, %v628_v20 }
  0x51   : > { %v632_v42 = vsub.f32 %v630_v21, %v631_v26  ;;  %v635_v2 = vsub.f32 %v633_v27, %v634_v28  ;;  %v639_v44 = vmul.f32 %v4694_v16, %v603_v54  ;;  %v640_v45 = vmul.f32 %v4706_v23, %v607_v56 }
  0x52   : > { %v642_v46 = vmul.f32 %v4703_v22, %v607_v56  ;;  %v4149_v47 = vpack.c.bf16 %v311_v38, %v307_v37  ;;  %v643_v48 = vmul.f32 %v4709_v24, %v611_v57  ;;  %v645_v50 = vmul.f32 %v4706_v23, %v611_v57 }
  0x53   : > { %v646_v51 = vmul.f32 %v4720_v29, %v615_v61  ;;  %v638_v52 = vsub.f32 %v636_v34, %v637_v35  ;;  %v648_v53 = vmul.f32 %v4709_v24, %v615_v61  ;;  %v649_v55 = vmul.f32 %v4726_v31, %v619_v7 }
  0x54   : > { %v651_v58 = vmul.f32 %v4720_v29, %v619_v7  ;;  %v327_v54 = vsel %vm4654_vm12, %v4149_v47, %v326_v43  ;;  %v641_v59 = vsub.f32 %v639_v44, %v640_v45  ;;  %v644_v8 = vsub.f32 %v642_v46, %v643_v48 }
  0x55   : > { %v652_v56 = vmul.f32 %v4747_v41, %v623_v30  ;;  %328 = vst [vmem:[#allocation2 + $0x4] sm:$0x11] %v327_v54  ;;  %v647_v63 = vsub.f32 %v645_v50, %v646_v51  ;;  %v650_v19 = vsub.f32 %v648_v53, %v649_v55  ;;  %v654_v57 = vmul.f32 %v4661_v62, %v626_v33 }
  0x56   : > { %v657_v12 = vmul.f32 %v4674_v0, %v629_v40  ;;  %vm5727_vm10 = vcmask 1040384   ;;  %v655_v7 = vmul.f32 %v4680_v18, %v629_v40  ;;  %v658_v14 = vmul.f32 %v4691_v13, %v632_v42 }
  0x57   : > { %vm4795_vm5 = vmand %vm5727_vm10, %vm351_vm3  ;;  %v660_v20 = vmul.f32 %v4677_v1, %v632_v42  ;;  %v661_v21 = vmul.f32 %v4694_v16, %v635_v2  ;;  %vm5730_vm14 = vcmask 1044484   ;;  %v653_v25 = vsub.f32 %v651_v58, %v652_v56 }
  0x58   : > { %vm354_vm0 = vmand %vm5730_vm14, %vm353_vm9  ;;  %v663_v26 = vmul.f32 %v4680_v18, %v635_v2  ;;  %v664_v27 = vmul.f32 %v4703_v22, %v638_v52  ;;  %v666_v28 = vmul.f32 %v4691_v13, %v638_v52  ;;  %v659_v30 = vsub.f32 %v657_v12, %v658_v14 }
  0x59   : > { %v662_v33 = vsub.f32 %v660_v20, %v661_v21  ;;  %v667_v34 = vmul.f32 %v4706_v23, %v641_v59  ;;  %v669_v35 = vmul.f32 %v4694_v16, %v641_v59  ;;  %v670_v38 = vmul.f32 %v4709_v24, %v644_v8  ;;  %vm4815_vm2 = vmor %vm354_vm0, %vm4795_vm5 }
  0x5a   : > { %v665_v37 = vsub.f32 %v663_v26, %v664_v27  ;;  %v672_v40 = vmul.f32 %v4703_v22, %v644_v8  ;;  %v673_v42 = vmul.f32 %v4720_v29, %v647_v63  ;;  %v675_v44 = vmul.f32 %v4706_v23, %v647_v63 }
  0x5b   : > { %v668_v2 = vsub.f32 %v666_v28, %v667_v34  ;;  %v676_v45 = vmul.f32 %v4726_v31, %v650_v19  ;;  %v678_v46 = vmul.f32 %v4709_v24, %v650_v19  ;;  %v671_v47 = vsub.f32 %v669_v35, %v670_v38 }
  0x5c   : > { %v679_v48 = vmul.f32 %v4747_v41, %v653_v25  ;;  %v356_v50 = vld [vmem:[#allocation2 + $0x4] sm:$0x11]  ;;  %v674_v51 = vsub.f32 %v672_v40, %v673_v42  ;;  %v684_v53 = vmul.f32 %v4674_v0, %v659_v30  ;;  %v685_v55 = vmul.f32 %v4694_v16, %v662_v33 }
  0x5d   : > { %v677_v52 = vsub.f32 %v675_v44, %v676_v45  ;;  %v357_v58 = vsel %vm4815_vm2, %v348_v49, %v356_v50  ;;  %v687_v59 = vmul.f32 %v4677_v1, %v662_v33  ;;  %v688_v8 = vmul.f32 %v4703_v22, %v665_v37 }
  0x5e   : > { %v680_v54 = vsub.f32 %v678_v46, %v679_v48  ;;  %358 = vst [vmem:[#allocation2 + $0x4] sm:$0x11] %v357_v58  ;;  %v656_v56 = vsub.f32 %v654_v57, %v655_v7  ;;  %v686_v63 = vsub.f32 %v684_v53, %v685_v55  ;;  %v690_v19 = vmul.f32 %v4680_v18, %v665_v37  ;;  %v827_v46 = vld [vmem:[#allocation2 + $0xc] sm:$0x44]  ;;  %v876_v58 = vld [vmem:[#allocation2 + $0xc] sm:$0x88] }
  0x5f   : > { %v691_v12 = vmul.f32 %v4706_v23, %v668_v2  ;;  %v689_v0 = vsub.f32 %v687_v59, %v688_v8  ;;  %v693_v61 = vmul.f32 %v4691_v13, %v668_v2  ;;  %v694_v32 = vmul.f32 %v4709_v24, %v671_v47 }
  0x60   : > { %v696_v14 = vmul.f32 %v4694_v16, %v671_v47  ;;  %v697_v20 = vmul.f32 %v4720_v29, %v674_v51  ;;  %v699_v1 = vmul.f32 %v4703_v22, %v674_v51  ;;  %v700_v21 = vmul.f32 %v4726_v31, %v677_v52  ;;  %v149_v51 = vld [vmem:[#allocation2 + $0x28] sm:$0x1] }
  0x61   : > { %v692_v49 = vsub.f32 %v690_v19, %v691_v12  ;;  %v695_v57 = vsub.f32 %v693_v61, %v694_v32  ;;  %v702_v7 = vmul.f32 %v4706_v23, %v677_v52  ;;  %v703_v18 = vmul.f32 %v4747_v41, %v680_v54 }
  0x62   : > { %v705_v25 = vsub.f32 0.0, %v4648_v6  ;;  %v681_v26 = vmul.f32 %v4661_v62, %v656_v56  ;;  %v682_v24 = vmul.f32 %v4691_v13, %v659_v30  ;;  %v698_v27 = vsub.f32 %v696_v14, %v697_v20  ;;  %v778_v30 = vld [vmem:[#allocation2 + $0xc] sm:$0x22]  ;;  %v4869_v14 = vld [vmem:[%s4430_s14 + $0x4] sm:$0x3] }
  0x63   : > { %v701_v16 = vsub.f32 %v699_v1, %v700_v21  ;;  %v762_v29 = vrot.slane %v686_v63, %v4435_v3  ;;  %v766_v22 = vrot.slane %v686_v63, %v4437_v4  ;;  %v704_v33 = vsub.f32 %v702_v7, %v703_v18  ;;  %v924_v63 = vld [vmem:[#allocation2 + $0x34] sm:$0x11] }
  0x64   : > { %v706_v28 = vmul.f32 1.442695, %v705_v25  ;;  %v785_v31 = vrot.slane %v689_v0, %v4435_v3  ;;  %v789_v23 = vrot.slane %v689_v0, %v4437_v4  ;;  %v811_v41 = vrot.slane %v692_v49, %v4435_v3 }
  0x65   : > { %v4160_v34 = vpack.c.bf16 %v766_v22, %v762_v29  ;;  %v815_v62 = vrot.slane %v692_v49, %v4437_v4  ;;  %v834_v13 = vrot.slane %v695_v57, %v4435_v3  ;;  %v838_v37 = vrot.slane %v695_v57, %v4437_v4 }
  0x66   : > { %4370 = vpow2.f32 %v706_v28  ;;  %v4161_v35 = vpack.c.bf16 %v789_v23, %v785_v31  ;;  %v860_v38 = vrot.slane %v698_v27, %v4435_v3  ;;  %v864_v2 = vrot.slane %v698_v27, %v4437_v4 }
  0x67   : > { %v776_v40 = vrot.slane %v4160_v34, 7  ;;  %v4162_v42 = vpack.c.bf16 %v815_v62, %v811_v41  ;;  %v883_v44 = vrot.slane %v701_v16, %v4435_v3  ;;  %v4855_v45 = vsub.f32 %v681_v26, %v682_v24 }
  0x68   : > { %v4163_v47 = vpack.c.bf16 %v838_v37, %v834_v13  ;;  %v887_v48 = vrot.slane %v701_v16, %v4437_v4  ;;  %v909_v50 = vrot.slane %v704_v33, %v4435_v3  ;;  %v4164_v55 = vpack.c.bf16 %v864_v2, %v860_v38 }
  0x69   : > { %v779_v52 = vsel %vm4578_vm15, %v776_v40, %v778_v30  ;;  %v825_v53 = vrot.slane %v4162_v42, 6  ;;  %v913_v54 = vrot.slane %v704_v33, %v4437_v4  ;;  %v800_v59 = vshll.u32 %v4161_v35, 16 }
  0x6a   : > { %780 = vst [vmem:[#allocation2 + $0xc] sm:$0x22] %v779_v52  ;;  %v849_v8 = vshll.u32 %v4163_v47, 16  ;;  %v4165_v56 = vpack.c.bf16 %v887_v48, %v883_v44  ;;  %v874_v12 = vrot.slane %v4164_v55, 5  ;;  %v4391_v61 = vmov 0  }
  0x6b   : > { %v828_v19 = vsel %vm4616_vm7, %v825_v53, %v827_v46  ;;  %v4166_v0 = vpack.c.bf16 %v913_v54, %v909_v50  ;;  %145 = vst [vmem:[#allocation2] sm:$0xf] %v4391_v61  ;;  %v150_v32 = vsel %vm4564_vm11, 0, %v149_v51  ;;  %152 = vst [vmem:[#allocation2 + $0x24] sm:$0xf] %v4391_v61  ;;  %1791 = vmatprep.mubr.bf16.mxu1 %v4391_v61  ;;  %1750 = vmatprep.mubr.bf16.mxu0 %v4391_v61 }
  0x6c   : > { %v737_v49 = vrot.slane %v4855_v45, %v4435_v3  ;;  %829 = vst [vmem:[#allocation2 + $0xc] sm:$0x44] %v828_v19  ;;  %v898_v20 = vshll.u32 %v4165_v56, 16  ;;  %151 = vst [vmem:[#allocation2 + $0x28] sm:$0x1] %v150_v32  ;;  %v877_v57 = vsel %vm4641_vm8, %v874_v12, %v876_v58  ;;  %v4889_v25 = vadd.f32 1.0, %v4869_v14 }
  0x6d   : > { %v4876_v1 = vadd.f32 2.2, %v4869_v14  ;;  %v4879_v21 = vadd.f32 1.8, %v4869_v14  ;;  %v925_v7 = vsel %vm4654_vm12, %v4166_v0, %v924_v63  ;;  %v4886_v18 = vadd.f32 1.4, %v4869_v14 }
  0x6e   : > { %v802_v26 = vrot.slane %v800_v59, 7  ;;  %v851_v24 = vrot.slane %v849_v8, 6  ;;  %878 = vst [vmem:[#allocation2 + $0xc] sm:$0x88] %v877_v57  ;;  %v900_v27 = vrot.slane %v898_v20, 5  ;;  %v741_v29 = vrot.slane %v4855_v45, %v4437_v4 }
  0x6f   : > { %926 = vst [vmem:[#allocation2 + $0x34] sm:$0x11] %v925_v7  ;;  %v4892_v16 = vadd.f32 0.6, %v4869_v14  ;;  %v4897_v22 = vadd.f32 0.2, %v4869_v14 }
  0x70   : > { %v4371_v28 = vpop.eup %4370  ;;  %v4900_v33 = vadd.f32 -0.2, %v4869_v14  ;;  %v4903_v31 = vadd.f32 -0.6, %v4869_v14  ;;  %v4906_v41 = vadd.f32 -1.4, %v4869_v14  ;;  %v4932_v48 = vpack.c.bf16 %v741_v29, %v737_v49 }
  0x71   : > { %v708_v23 = vadd.f32 1.0, %v4371_v28  ;;  %v4909_v34 = vadd.f32 -1.8, %v4869_v14  ;;  %vm940_vm1 = vcmp.ge.f32.partialorder %v4876_v1, 0.0  ;;  %v804_v62 = vld [vmem:[#allocation2 + $0xc] sm:$0x22] }
  0x72   : > { %v4013_v13 = vsel %vm940_vm1, 1.0, %v4390_v17  ;;  %vm943_vm3 = vcmp.ge.f32.partialorder %v4879_v21, 0.0  ;;  %vm947_vm9 = vcmp.ge.f32.partialorder %v4886_v18, 0.0  ;;  %vm951_vm10 = vcmp.ge.f32.partialorder %v4889_v25, 0.0 }
  0x73   : > { %4372 = vrcp.f32 %v708_v23  ;;  %v805_v30 = vsel %vm4667_vm4, %v802_v26, %v804_v62  ;;  %v4014_v35 = vsel %vm943_vm3, 1.0, %v4390_v17  ;;  %v4015_v37 = vsel %vm947_vm9, 1.0, %v4390_v17  ;;  %v853_v38 = vld [vmem:[#allocation2 + $0xc] sm:$0x44] }
  0x74   : > { %806 = vst [vmem:[#allocation2 + $0xc] sm:$0x22] %v805_v30  ;;  %v946_v40 = vsub.f32 %v4013_v13, %v4014_v35  ;;  %v950_v42 = vsub.f32 %v4014_v35, %v4015_v37  ;;  %v4016_v2 = vsel %vm951_vm10, 1.0, %v4390_v17  ;;  %vm955_vm5 = vcmp.ge.f32.partialorder %v4892_v16, 0.0 }
  0x75   : > { %v854_v44 = vsel %vm4686_vm13, %v851_v24, %v853_v38  ;;  %v4924_v45 = vld [vmem:[#allocation2 + $0x4] ss:$40 sps:$4 sm:$0x1f]   ;;  %v4927_v46 = vadd.f32 -1.0, %v4869_v14  ;;  %v4930_v47 = vadd.f32 -2.2, %v4869_v14  ;;  %v954_v51 = vsub.f32 %v4015_v37, %v4016_v2 }
  0x76   : > { %855 = vst [vmem:[#allocation2 + $0xc] sm:$0x44] %v854_v44  ;;  %v902_v50 = vld [vmem:[#allocation2 + $0xc] sm:$0x88]  ;;  %v4935_v52 = vmul.f32 %v4876_v1, %v946_v40  ;;  %v988_v53 = vmul.f32 %v4886_v18, %v950_v42  ;;  %1685 = vrot.lane.b32.xlu0 %v4924_v45, %s4392_s15  ;;  %v4017_v58 = vsel %vm955_vm5, 1.0, %v4390_v17  ;;  %vm959_vm14 = vcmp.ge.f32.partialorder %v4897_v22, 0.0 }
  0x77   : > { %v903_v55 = vsel %vm4739_vm6, %v900_v27, %v902_v50  ;;  %vm963_vm0 = vcmp.ge.f32.partialorder %v4900_v33, 0.0  ;;  %v4018_v54 = vsel %vm959_vm14, 1.0, %v4390_v17  ;;  %vm967_vm1 = vcmp.ge.f32.partialorder %v4903_v31, 0.0 }
  0x78   : > { %904 = vst [vmem:[#allocation2 + $0xc] sm:$0x88] %v903_v55  ;;  %v4019_v59 = vsel %vm963_vm0, 1.0, %v4390_v17  ;;  %v990_v8 = vmul.f32 %v4879_v21, %v950_v42  ;;  %v958_v56 = vsub.f32 %v4016_v2, %v4017_v58  ;;  %v962_v63 = vsub.f32 %v4017_v58, %v4018_v54 }
  0x79   : > { %v4020_v19 = vsel %vm967_vm1, 1.0, %v4390_v17  ;;  %vm971_vm3 = vcmp.ge.f32.partialorder %v4927_v46, 0.0  ;;  %v966_v12 = vsub.f32 %v4018_v54, %v4019_v59  ;;  %vm975_vm9 = vcmp.ge.f32.partialorder %v4906_v41, 0.0 }
  0x7a   : > { %v4021_v0 = vsel %vm971_vm3, 1.0, %v4390_v17  ;;  %vm979_vm10 = vcmp.ge.f32.partialorder %v4909_v34, 0.0  ;;  %v970_v32 = vsub.f32 %v4019_v59, %v4020_v19  ;;  %v4022_v49 = vsel %vm975_vm9, 1.0, %v4390_v17 }
  0x7b   : > { %v4023_v20 = vsel %vm979_vm10, 1.0, %v4390_v17  ;;  %vm983_vm5 = vcmp.ge.f32.partialorder %v4930_v47, 0.0  ;;  %v974_v57 = vsub.f32 %v4020_v19, %v4021_v0  ;;  %v978_v7 = vsub.f32 %v4021_v0, %v4022_v49 }
  0x7c   : > { %v982_v26 = vsub.f32 %v4022_v49, %v4023_v20  ;;  %v4024_v24 = vsel %vm983_vm5, 1.0, %v4390_v17  ;;  %v989_v28 = vsub.f32 %v4935_v52, %v988_v53  ;;  %v991_v29 = vmul.f32 %v4889_v25, %v954_v51 }
  0x7d   : > { %v4373_v27 = vpop.eup %4372  ;;  %v993_v23 = vmul.f32 %v4886_v18, %v954_v51  ;;  %v994_v62 = vmul.f32 %v4892_v16, %v958_v56  ;;  %v996_v30 = vmul.f32 %v4889_v25, %v958_v56  ;;  %v997_v35 = vmul.f32 %v4897_v22, %v962_v63 }
  0x7e   : > { %v710_v13 = vmul.f32 %v4373_v27, %v4648_v6  ;;  %v999_v37 = vmul.f32 %v4892_v16, %v962_v63  ;;  %v986_v38 = vsub.f32 %v4023_v20, %v4024_v24  ;;  %v992_v40 = vsub.f32 %v990_v8, %v991_v29  ;;  %v730_v6 = vld [vmem:[#allocation2 + $0xc] sm:$0x11] }
  0x7f   : > { %v1000_v42 = vmul.f32 %v4900_v33, %v966_v12  ;;  %v1002_v2 = vmul.f32 %v4897_v22, %v966_v12  ;;  %v995_v51 = vsub.f32 %v993_v23, %v994_v62  ;;  %v1003_v52 = vmul.f32 %v4903_v31, %v970_v32 }
  0x80   : > { %v715_v44 = vrot.slane %v710_v13, %v4435_v3  ;;  %v719_v50 = vrot.slane %v710_v13, %v4437_v4  ;;  %v998_v53 = vsub.f32 %v996_v30, %v997_v35  ;;  %v1005_v55 = vmul.f32 %v4900_v33, %v970_v32 }
  0x81   : > { %v1006_v58 = vmul.f32 %v4927_v46, %v974_v57  ;;  %v1008_v54 = vmul.f32 %v4903_v31, %v974_v57  ;;  %v1001_v8 = vsub.f32 %v999_v37, %v1000_v42  ;;  %v1009_v56 = vmul.f32 %v4906_v41, %v978_v7 }
  0x82   : > { %v4158_v59 = vpack.c.bf16 %v719_v50, %v715_v44  ;;  %v1011_v63 = vmul.f32 %v4927_v46, %v978_v7  ;;  %v1004_v19 = vsub.f32 %v1002_v2, %v1003_v52  ;;  %v1012_v12 = vmul.f32 %v4909_v34, %v982_v26 }
  0x83   : > { %v1014_v0 = vmul.f32 %v4906_v41, %v982_v26  ;;  %v1015_v49 = vmul.f32 %v4930_v47, %v986_v38  ;;  %v1007_v20 = vsub.f32 %v1005_v55, %v1006_v58  ;;  %v1010_v24 = vsub.f32 %v1008_v54, %v1009_v56 }
  0x84   : > { %v731_v32 = vsel %vm4654_vm12, %v4158_v59, %v730_v6  ;;  %v1017_v57 = vmul.f32 %v4876_v1, %v989_v28  ;;  %v1013_v27 = vsub.f32 %v1011_v63, %v1012_v12  ;;  %v1018_v29 = vmul.f32 %v4889_v25, %v992_v40 }
  0x85   : > { %732 = vst [vmem:[#allocation2 + $0xc] sm:$0x11] %v731_v32  ;;  %v1020_v7 = vmul.f32 %v4879_v21, %v992_v40  ;;  %v1021_v23 = vmul.f32 %v4892_v16, %v995_v51  ;;  %v1016_v62 = vsub.f32 %v1014_v0, %v1015_v49  ;;  %v1023_v26 = vmul.f32 %v4886_v18, %v995_v51 }
  0x86   : > { %v1024_v13 = vmul.f32 %v4897_v22, %v998_v53  ;;  %v1026_v30 = vmul.f32 %v4889_v25, %v998_v53  ;;  %v1027_v37 = vmul.f32 %v4900_v33, %v1001_v8  ;;  %v1029_v28 = vmul.f32 %v4892_v16, %v1001_v8 }
  0x87   : > { %v1022_v35 = vsub.f32 %v1020_v7, %v1021_v23  ;;  %v1030_v38 = vmul.f32 %v4903_v31, %v1004_v19  ;;  %v1032_v2 = vmul.f32 %v4897_v22, %v1004_v19  ;;  %v1033_v40 = vmul.f32 %v4927_v46, %v1007_v20 }
  0x88   : > { %v1025_v42 = vsub.f32 %v1023_v26, %v1024_v13  ;;  %v1035_v44 = vmul.f32 %v4900_v33, %v1007_v20  ;;  %v752_v50 = vshll.u32 %v4932_v48, 16  ;;  %v1028_v51 = vsub.f32 %v1026_v30, %v1027_v37 }
  0x89   : > { %v1036_v52 = vmul.f32 %v4906_v41, %v1010_v24  ;;  %v1038_v6 = vmul.f32 %v4903_v31, %v1010_v24  ;;  %v1031_v53 = vsub.f32 %v1029_v28, %v1030_v38  ;;  %v1039_v55 = vmul.f32 %v4909_v34, %v1013_v27 }
  0x8a   : > { %v1041_v58 = vmul.f32 %v4927_v46, %v1013_v27  ;;  %v1042_v54 = vmul.f32 %v4930_v47, %v1016_v62  ;;  %v1034_v59 = vsub.f32 %v1032_v2, %v1033_v40  ;;  %v1047_v56 = vmul.f32 %v4879_v21, %v1022_v35 }
  0x8b   : > { %v1037_v8 = vsub.f32 %v1035_v44, %v1036_v52  ;;  %v1019_v19 = vsub.f32 %v1017_v57, %v1018_v29  ;;  %v1040_v12 = vsub.f32 %v1038_v6, %v1039_v55  ;;  %v1048_v48 = vmul.f32 %v4897_v22, %v1025_v42  ;;  %v1141_v44 = vld [vmem:[#allocation2 + $0x14] sm:$0x22]  ;;  %v1190_v55 = vld [vmem:[#allocation2 + $0x14] sm:$0x44] }
  0x8c   : > { %v755_v63 = vld [vmem:[#allocation2 + $0xc] sm:$0x11]  ;;  %v1050_v0 = vmul.f32 %v4886_v18, %v1025_v42  ;;  %v1043_v32 = vsub.f32 %v1041_v58, %v1042_v54  ;;  %v1051_v20 = vmul.f32 %v4900_v33, %v1028_v51  ;;  %v1053_v24 = vmul.f32 %v4889_v25, %v1028_v51 }
  0x8d   : > { %v756_v49 = vsel %vm4815_vm2, %v752_v50, %v755_v63  ;;  %v1049_v27 = vsub.f32 %v1047_v56, %v1048_v48  ;;  %v1054_v7 = vmul.f32 %v4903_v31, %v1031_v53  ;;  %v1056_v21 = vmul.f32 %v4892_v16, %v1031_v53 }
  0x8e   : > { %757 = vst [vmem:[#allocation2 + $0xc] sm:$0x11] %v756_v49  ;;  %v1057_v57 = vmul.f32 %v4927_v46, %v1034_v59  ;;  %v1052_v29 = vsub.f32 %v1050_v0, %v1051_v20  ;;  %v1059_v23 = vmul.f32 %v4897_v22, %v1034_v59  ;;  %v1060_v18 = vmul.f32 %v4906_v41, %v1037_v8 }
  0x8f   : > { %v1062_v62 = vmul.f32 %v4900_v33, %v1037_v8  ;;  %v1055_v26 = vsub.f32 %v1053_v24, %v1054_v7  ;;  %v1063_v13 = vmul.f32 %v4909_v34, %v1040_v12  ;;  %v1065_v25 = vmul.f32 %v4903_v31, %v1040_v12  ;;  %v5041_v12 = vld [vmem:[#allocation2] ss:$40 sps:$4 sm:$0x1f]   ;;  %v1239_v24 = vld [vmem:[#allocation2 + $0x14] sm:$0x88] }
  0x90   : > { %v1044_v30 = vmul.f32 %v4876_v1, %v1019_v19  ;;  %v1058_v37 = vsub.f32 %v1056_v21, %v1057_v57  ;;  %v1066_v28 = vmul.f32 %v4930_v47, %v1043_v32  ;;  %v1068_v38 = vsub.f32 0.0, %v4869_v14  ;;  %v1287_v21 = vld [vmem:[#allocation2 + $0x3c] sm:$0x11] }
  0x91   : > { %v1061_v46 = vsub.f32 %v1059_v23, %v1060_v18  ;;  %v1064_v42 = vsub.f32 %v1062_v62, %v1063_v13  ;;  %v1125_v22 = vrot.slane %v1049_v27, %v4435_v3  ;;  %v1129_v41 = vrot.slane %v1049_v27, %v4437_v4  ;;  %v5052_v62 = vld [vmem:[%s4430_s14 + $0x6] sm:$0x3] }
  0x92   : > { %v1045_v33 = vmul.f32 %v4892_v16, %v1022_v35  ;;  %v1069_v2 = vmul.f32 1.442695, %v1068_v38  ;;  %v1148_v34 = vrot.slane %v1052_v29, %v4435_v3  ;;  %v1152_v31 = vrot.slane %v1052_v29, %v4437_v4  ;;  %v5029_v35 = vld [vmem:[#allocation2 + $0x8] ss:$40 sps:$4 sm:$0x1f]  }
  0x93   : > { %v1067_v40 = vsub.f32 %v1065_v25, %v1066_v28  ;;  %v4169_v1 = vpack.c.bf16 %v1129_v41, %v1125_v22  ;;  %v1174_v47 = vrot.slane %v1055_v26, %v4435_v3  ;;  %v1178_v50 = vrot.slane %v1055_v26, %v4437_v4  ;;  %1687 = vrot.lane.b32.xlu0 %v5029_v35, %s4392_s15 }
  0x94   : > { %4374 = vpow2.f32 %v1069_v2  ;;  %v4170_v52 = vpack.c.bf16 %v1152_v31, %v1148_v34  ;;  %v1197_v6 = vrot.slane %v1058_v37, %v4435_v3  ;;  %v1201_v16 = vrot.slane %v1058_v37, %v4437_v4 }
  0x95   : > { %v5025_v51 = vld [vmem:[#allocation2 + $0xc] ss:$40 sps:$4 sm:$0x1f]   ;;  %v4171_v53 = vpack.c.bf16 %v1178_v50, %v1174_v47  ;;  %v1223_v58 = vrot.slane %v1061_v46, %v4435_v3  ;;  %v1227_v54 = vrot.slane %v1061_v46, %v4437_v4  ;;  %v1246_v59 = vrot.slane %v1064_v42, %v4435_v3  ;;  %v5036_v8 = vld [vmem:[#allocation2 + $0x10] ss:$40 sps:$4 sm:$0x1f]  }
  0x96   : > { %1689 = vrot.lane.b32.xlu1 %v5025_v51, %s4392_s15  ;;  %v1139_v56 = vrot.slane %v4169_v1, 7  ;;  %v4172_v63 = vpack.c.bf16 %v1201_v16, %v1197_v6  ;;  %v1250_v19 = vrot.slane %v1064_v42, %v4437_v4  ;;  %v1272_v49 = vrot.slane %v1067_v40, %v4435_v3 }
  0x97   : > { %v1188_v48 = vrot.slane %v4171_v53, 6  ;;  %v4173_v0 = vpack.c.bf16 %v1227_v54, %v1223_v58  ;;  %v5044_v32 = vsub.f32 %v1044_v30, %v1045_v33  ;;  %v1276_v7 = vrot.slane %v1067_v40, %v4437_v4  ;;  %1683 = vrot.lane.b32.xlu0 %v5041_v12, %s4392_s15 }
  0x98   : > { %v1142_v20 = vsel %vm4578_vm15, %v1139_v56, %v1141_v44  ;;  %v4174_v27 = vpack.c.bf16 %v1250_v19, %v1246_v59  ;;  %v1163_v57 = vshll.u32 %v4170_v52, 16  ;;  %v1212_v23 = vshll.u32 %v4172_v63, 16 }
  0x99   : > { %1143 = vst [vmem:[#allocation2 + $0x14] sm:$0x22] %v1142_v20  ;;  %v1191_v29 = vsel %vm4616_vm7, %v1188_v48, %v1190_v55  ;;  %v1237_v18 = vrot.slane %v4173_v0, 5  ;;  %v4175_v13 = vpack.c.bf16 %v1276_v7, %v1272_v49  ;;  %v5057_v25 = vadd.f32 1.8, %v5052_v62 }
  0x9a   : > { %1691 = vrot.lane.b32.xlu1 %v5036_v8, %s4392_s15  ;;  %1192 = vst [vmem:[#allocation2 + $0x14] sm:$0x44] %v1191_v29  ;;  %v1261_v26 = vshll.u32 %v4174_v27, 16  ;;  %v5064_v37 = vadd.f32 1.4, %v5052_v62  ;;  %v5067_v28 = vadd.f32 1.0, %v5052_v62  ;;  %v1100_v38 = vrot.slane %v5044_v32, %v4435_v3 }
  0x9b   : > { %v1240_v30 = vsel %vm4641_vm8, %v1237_v18, %v1239_v24  ;;  %v1288_v46 = vsel %vm4654_vm12, %v4175_v13, %v1287_v21  ;;  %v5074_v42 = vadd.f32 0.6, %v5052_v62  ;;  %v1165_v22 = vrot.slane %v1163_v57, 7  ;;  %1804 = vrot.lane.b32.xlu0 %v5029_v35, %s4393_s16 }
  0x9c   : > { %1241 = vst [vmem:[#allocation2 + $0x14] sm:$0x88] %v1240_v30  ;;  %v1214_v41 = vrot.slane %v1212_v23, 6  ;;  %1289 = vst [vmem:[#allocation2 + $0x3c] sm:$0x11] %v1288_v46  ;;  %v1263_v31 = vrot.slane %v1261_v26, 5  ;;  %v1104_v63 = vrot.slane %v5044_v32, %v4437_v4 }
  0x9d   : > { %v5077_v33 = vadd.f32 0.2, %v5052_v62  ;;  %v5080_v2 = vadd.f32 -0.2, %v5052_v62  ;;  %v5085_v40 = vadd.f32 -0.6, %v5052_v62 }
  0x9e   : > { %v4375_v34 = vpop.eup %4374  ;;  %1802 = vrot.lane.b32.xlu1 %v4924_v45, %s4393_s16  ;;  %v5088_v1 = vadd.f32 -1.4, %v5052_v62  ;;  %vm1306_vm14 = vcmp.ge.f32.partialorder %v5057_v25, 0.0  ;;  %v5094_v47 = vadd.f32 -1.8, %v5052_v62  ;;  %vm1310_vm0 = vcmp.ge.f32.partialorder %v5064_v37, 0.0 }
  0x9f   : > { %v1071_v44 = vadd.f32 1.0, %v4375_v34  ;;  %vm1314_vm1 = vcmp.ge.f32.partialorder %v5067_v28, 0.0  ;;  %v5099_v52 = vadd.f32 -1.0, %v5052_v62  ;;  %v5102_v6 = vsel %vm1306_vm14, 1.0, %v4390_v17  ;;  %1808 = vrot.lane.b32.xlu0 %v5036_v8, %s4393_s16 }
  0xa0   : > { %v1167_v50 = vld [vmem:[#allocation2 + $0x14] sm:$0x22]  ;;  %v4048_v16 = vsel %vm1310_vm0, 1.0, %v4390_v17  ;;  %vm1318_vm3 = vcmp.ge.f32.partialorder %v5074_v42, 0.0  ;;  %v5109_v58 = vadd.f32 -2.2, %v5052_v62 }
  0xa1   : > { %4376 = vrcp.f32 %v1071_v44  ;;  %v1168_v53 = vsel %vm4667_vm4, %v1165_v22, %v1167_v50  ;;  %v1216_v55 = vld [vmem:[#allocation2 + $0x14] sm:$0x44]  ;;  %v4049_v54 = vsel %vm1314_vm1, 1.0, %v4390_v17  ;;  %v4050_v56 = vsel %vm1318_vm3, 1.0, %v4390_v17 }
  0xa2   : > { %1806 = vrot.lane.b32.xlu1 %v5025_v51, %s4393_s16  ;;  %1169 = vst [vmem:[#allocation2 + $0x14] sm:$0x22] %v1168_v53  ;;  %v1217_v59 = vsel %vm4686_vm13, %v1214_v41, %v1216_v55  ;;  %vm1322_vm9 = vcmp.ge.f32.partialorder %v5077_v33, 0.0  ;;  %vm1326_vm10 = vcmp.ge.f32.partialorder %v5080_v2, 0.0  ;;  %v5124_v48 = vsub.f32 %v5102_v6, %v4048_v16 }
  0xa3   : > { %1218 = vst [vmem:[#allocation2 + $0x14] sm:$0x44] %v1217_v59  ;;  %v1265_v19 = vld [vmem:[#allocation2 + $0x14] sm:$0x88]  ;;  %v4051_v0 = vsel %vm1322_vm9, 1.0, %v4390_v17  ;;  %vm1330_vm5 = vcmp.ge.f32.partialorder %v5085_v40, 0.0  ;;  %v1317_v20 = vsub.f32 %v4048_v16, %v4049_v54  ;;  %v1321_v7 = vsub.f32 %v4049_v54, %v4050_v56  ;;  %1916 = vrot.lane.b32.xlu0 %v4924_v45, %s4394_s17 }
  0xa4   : > { %v1266_v49 = vsel %vm4739_vm6, %v1263_v31, %v1265_v19  ;;  %v4052_v24 = vsel %vm1326_vm10, 1.0, %v4390_v17  ;;  %v4053_v27 = vsel %vm1330_vm5, 1.0, %v4390_v17  ;;  %vm1334_vm14 = vcmp.ge.f32.partialorder %v5099_v52, 0.0 }
  0xa5   : > { %1267 = vst [vmem:[#allocation2 + $0x14] sm:$0x88] %v1266_v49  ;;  %vm1338_vm0 = vcmp.ge.f32.partialorder %v5088_v1, 0.0  ;;  %vm1342_vm1 = vcmp.ge.f32.partialorder %v5094_v47, 0.0  ;;  %v1325_v21 = vsub.f32 %v4050_v56, %v4051_v0  ;;  %v4054_v57 = vsel %vm1334_vm14, 1.0, %v4390_v17 }
  0xa6   : > { %1800 = vrot.lane.b32.xlu1 %v5041_v12, %s4393_s16  ;;  %v4055_v29 = vsel %vm1338_vm0, 1.0, %v4390_v17  ;;  %vm1346_vm3 = vcmp.ge.f32.partialorder %v5109_v58, 0.0  ;;  %v1329_v23 = vsub.f32 %v4051_v0, %v4052_v24  ;;  %v1333_v18 = vsub.f32 %v4052_v24, %v4053_v27 }
  0xa7   : > { %v4056_v26 = vsel %vm1342_vm1, 1.0, %v4390_v17  ;;  %v4057_v13 = vsel %vm1346_vm3, 1.0, %v4390_v17  ;;  %v1337_v30 = vsub.f32 %v4053_v27, %v4054_v57  ;;  %v1341_v46 = vsub.f32 %v4054_v57, %v4055_v29  ;;  %1920 = vrot.lane.b32.xlu0 %v5025_v51, %s4394_s17 }
  0xa8   : > { %v1353_v22 = vmul.f32 %v5057_v25, %v5124_v48  ;;  %v1354_v41 = vmul.f32 %v5067_v28, %v1317_v20  ;;  %v1356_v34 = vmul.f32 %v5064_v37, %v1317_v20  ;;  %v1357_v31 = vmul.f32 %v5074_v42, %v1321_v7 }
  0xa9   : > { %v1359_v44 = vmul.f32 %v5067_v28, %v1321_v7  ;;  %v5155_v50 = vpack.c.bf16 %v1104_v63, %v1100_v38  ;;  %v1345_v16 = vsub.f32 %v4055_v29, %v4056_v26  ;;  %v1349_v53 = vsub.f32 %v4056_v26, %v4057_v13 }
  0xaa   : > { %1918 = vrot.lane.b32.xlu1 %v5029_v35, %s4394_s17  ;;  %v1360_v55 = vmul.f32 %v5077_v33, %v1325_v21  ;;  %v1362_v59 = vmul.f32 %v5074_v42, %v1325_v21  ;;  %v1363_v56 = vmul.f32 %v5080_v2, %v1329_v23  ;;  %v1365_v19 = vmul.f32 %v5077_v33, %v1329_v23  ;;  %v1093_v23 = vld [vmem:[#allocation2 + $0x14] sm:$0x11] }
  0xab   : > { %v4377_v54 = vpop.eup %4376  ;;  %v1366_v0 = vmul.f32 %v5085_v40, %v1333_v18  ;;  %v5165_v38 = vsub.f32 %v1353_v22, %v1354_v41  ;;  %v1358_v63 = vsub.f32 %v1356_v34, %v1357_v31  ;;  %v1368_v49 = vmul.f32 %v5080_v2, %v1333_v18  ;;  %1914 = vrot.lane.b32.xlu0 %v5041_v12, %s4394_s17 }
  0xac   : > { %v1073_v32 = vmul.f32 %v4377_v54, %v4869_v14  ;;  %v1361_v20 = vsub.f32 %v1359_v44, %v1360_v55  ;;  %v1369_v24 = vmul.f32 %v5099_v52, %v1337_v30  ;;  %v1371_v27 = vmul.f32 %v5085_v40, %v1337_v30 }
  0xad   : > { %v1372_v7 = vmul.f32 %v5088_v1, %v1341_v46  ;;  %v1374_v14 = vmul.f32 %v5099_v52, %v1341_v46  ;;  %v1375_v29 = vmul.f32 %v5094_v47, %v1345_v16  ;;  %v1364_v18 = vsub.f32 %v1362_v59, %v1363_v56 }
  0xae   : > { %1922 = vrot.lane.b32.xlu1 %v5036_v8, %s4394_s17  ;;  %v1078_v21 = vrot.slane %v1073_v32, %v4435_v3  ;;  %v1082_v57 = vrot.slane %v1073_v32, %v4437_v4  ;;  %v1367_v26 = vsub.f32 %v1365_v19, %v1366_v0  ;;  %v1377_v13 = vmul.f32 %v5088_v1, %v1345_v16 }
  0xaf   : > { %v1378_v30 = vmul.f32 %v5109_v58, %v1349_v53  ;;  %v5182_v41 = vadd.f32 2.2, %v5052_v62  ;;  %v1370_v34 = vsub.f32 %v1368_v49, %v1369_v24  ;;  %v1373_v31 = vsub.f32 %v1371_v27, %v1372_v7  ;;  %2036 = vrot.lane.b32.xlu0 %v5029_v35, %s4395_s18 }
  0xb0   : > { %v4167_v22 = vpack.c.bf16 %v1082_v57, %v1078_v21  ;;  %v1376_v44 = vsub.f32 %v1374_v14, %v1375_v29  ;;  %v1383_v46 = vmul.f32 %v5057_v25, %v5165_v38  ;;  %v1384_v55 = vmul.f32 %v5074_v42, %v1358_v63 }
  0xb1   : > { %v1386_v54 = vmul.f32 %v5064_v37, %v1358_v63  ;;  %v1379_v53 = vsub.f32 %v1377_v13, %v1378_v30  ;;  %v1387_v59 = vmul.f32 %v5077_v33, %v1361_v20  ;;  %v1389_v56 = vmul.f32 %v5067_v28, %v1361_v20 }
  0xb2   : > { %2034 = vrot.lane.b32.xlu1 %v4924_v45, %s4395_s18  ;;  %v1094_v16 = vsel %vm4654_vm12, %v4167_v22, %v1093_v23  ;;  %v5196_v19 = vsub.f32 %v1383_v46, %v1384_v55  ;;  %v1390_v0 = vmul.f32 %v5080_v2, %v1364_v18  ;;  %v1392_v32 = vmul.f32 %v5074_v42, %v1364_v18  ;;  %v5213_v18 = vld [vmem:[#allocation2 + $0x8] ss:$40 sps:$4 sm:$0x1f]  }
  0xb3   : > { %1095 = vst [vmem:[#allocation2 + $0x14] sm:$0x11] %v1094_v16  ;;  %v1393_v45 = vmul.f32 %v5085_v40, %v1367_v26  ;;  %v1388_v63 = vsub.f32 %v1386_v54, %v1387_v59  ;;  %v1395_v49 = vmul.f32 %v5077_v33, %v1367_v26  ;;  %v1396_v24 = vmul.f32 %v5099_v52, %v1370_v34  ;;  %v5233_v59 = vld [vmem:[#allocation2 + $0x10] ss:$40 sps:$4 sm:$0x1f]  }
  0xb4   : > { %v1398_v27 = vmul.f32 %v5080_v2, %v1370_v34  ;;  %v1391_v20 = vsub.f32 %v1389_v56, %v1390_v0  ;;  %v1399_v35 = vmul.f32 %v5088_v1, %v1373_v31  ;;  %v1401_v21 = vmul.f32 %v5085_v40, %v1373_v31  ;;  %2040 = vrot.lane.b32.xlu0 %v5036_v8, %s4395_s18 }
  0xb5   : > { %v1394_v7 = vsub.f32 %v1392_v32, %v1393_v45  ;;  %v1397_v57 = vsub.f32 %v1395_v49, %v1396_v24  ;;  %v1402_v14 = vmul.f32 %v5094_v47, %v1376_v44  ;;  %v1404_v29 = vmul.f32 %v5099_v52, %v1376_v44 }
  0xb6   : > { %2038 = vrot.lane.b32.xlu1 %v5025_v51, %s4395_s18  ;;  %v1405_v23 = vmul.f32 %v5109_v58, %v1379_v53  ;;  %v1115_v26 = vshll.u32 %v5155_v50, 16  ;;  %v1400_v13 = vsub.f32 %v1398_v27, %v1399_v35  ;;  %v1410_v30 = vmul.f32 %v5057_v25, %v5196_v19  ;;  %v5226_v50 = vld [vmem:[#allocation2 + $0xc] ss:$40 sps:$4 sm:$0x1f]  }
  0xb7   : > { %vm1303_vm9 = vcmp.ge.f32.partialorder %v5182_v41, 0.0  ;;  %v1403_v51 = vsub.f32 %v1401_v21, %v1402_v14  ;;  %v1411_v22 = vmul.f32 %v5077_v33, %v1388_v63  ;;  %v1413_v34 = vmul.f32 %v5064_v37, %v1388_v63 }
  0xb8   : > { %v1406_v31 = vsub.f32 %v1404_v29, %v1405_v23  ;;  %v1414_v44 = vmul.f32 %v5080_v2, %v1391_v20  ;;  %v1416_v8 = vmul.f32 %v5067_v28, %v1391_v20  ;;  %v1417_v46 = vmul.f32 %v5085_v40, %v1394_v7  ;;  %2302 = vrot.lane.b32.xlu0 %v5213_v18, %s4396_s19  ;;  %v1504_v29 = vld [vmem:[#allocation2 + $0x1c] sm:$0x22] }
  0xb9   : > { %v1412_v55 = vsub.f32 %v1410_v30, %v1411_v22  ;;  %v1419_v54 = vmul.f32 %v5074_v42, %v1394_v7  ;;  %v1420_v16 = vmul.f32 %v5099_v52, %v1397_v57  ;;  %v1422_v53 = vmul.f32 %v5077_v33, %v1397_v57 }
  0xba   : > { %2032 = vrot.lane.b32.xlu1 %v5041_v12, %s4395_s18  ;;  %v1118_v25 = vld [vmem:[#allocation2 + $0x14] sm:$0x11]  ;;  %v4046_v12 = vsel %vm1303_vm9, 1.0, %v4390_v17  ;;  %v1415_v0 = vsub.f32 %v1413_v34, %v1414_v44  ;;  %v1423_v32 = vmul.f32 %v5088_v1, %v1400_v13  ;;  %v1418_v52 = vsub.f32 %v1416_v8, %v1417_v46  ;;  %v1553_v34 = vld [vmem:[#allocation2 + $0x1c] sm:$0x44] }
  0xbb   : > { %v1119_v56 = vsel %vm4815_vm2, %v1115_v26, %v1118_v25  ;;  %v1425_v33 = vmul.f32 %v5080_v2, %v1400_v13  ;;  %v1426_v45 = vmul.f32 %v5094_v47, %v1403_v51  ;;  %v1428_v63 = vmul.f32 %v5085_v40, %v1403_v51  ;;  %v5253_v2 = vld [vmem:[#allocation2 + $0x4] ss:$40 sps:$4 sm:$0x1f]  }
  0xbc   : > { %1120 = vst [vmem:[#allocation2 + $0x14] sm:$0x11] %v1119_v56  ;;  %v1421_v49 = vsub.f32 %v1419_v54, %v1420_v16  ;;  %v1429_v24 = vmul.f32 %v5109_v58, %v1406_v31  ;;  %v1431_v27 = vsub.f32 0.0, %v5052_v62  ;;  %v1309_v17 = vsub.f32 %v4046_v12, %v5102_v6  ;;  %2306 = vrot.lane.b32.xlu0 %v5233_v59, %s4396_s19 }
  0xbd   : > { %v1424_v20 = vsub.f32 %v1422_v53, %v1423_v32  ;;  %v1488_v1 = vrot.slane %v1412_v55, %v4435_v3  ;;  %v1492_v7 = vrot.slane %v1412_v55, %v4437_v4  ;;  %v1427_v40 = vsub.f32 %v1425_v33, %v1426_v45  ;;  %v1602_v33 = vld [vmem:[#allocation2 + $0x1c] sm:$0x88] }
  0xbe   : > { %2304 = vrot.lane.b32.xlu1 %v5226_v50, %s4396_s19  ;;  %v1432_v47 = vmul.f32 1.442695, %v1431_v27  ;;  %v1511_v58 = vrot.slane %v1415_v0, %v4435_v3  ;;  %v1515_v35 = vrot.slane %v1415_v0, %v4437_v4  ;;  %v1430_v21 = vsub.f32 %v1428_v63, %v1429_v24  ;;  %v153_v24 = vld [vmem:[#allocation2 + $0x4c] sm:$0x1] }
  0xbf   : > { %v4178_v57 = vpack.c.bf16 %v1492_v7, %v1488_v1  ;;  %v1537_v6 = vrot.slane %v1418_v52, %v4435_v3  ;;  %v1541_v14 = vrot.slane %v1418_v52, %v4437_v4  ;;  %v1560_v26 = vrot.slane %v1421_v49, %v4435_v3 }
  0xc0   : > { %4378 = vpow2.f32 %v1432_v47  ;;  %v4179_v23 = vpack.c.bf16 %v1515_v35, %v1511_v58  ;;  %v1564_v13 = vrot.slane %v1421_v49, %v4437_v4  ;;  %v1350_v30 = vmul.f32 %v5182_v41, %v1309_v17  ;;  %2300 = vrot.lane.b32.xlu0 %v5253_v2, %s4396_s19 }
  0xc1   : > { %v1502_v51 = vrot.slane %v4178_v57, 7  ;;  %v4180_v22 = vpack.c.bf16 %v1541_v14, %v1537_v6  ;;  %v1586_v31 = vrot.slane %v1424_v20, %v4435_v3  ;;  %v1590_v46 = vrot.slane %v1424_v20, %v4437_v4 }
  0xc2   : > { %v4181_v8 = vpack.c.bf16 %v1564_v13, %v1560_v26  ;;  %v1609_v25 = vrot.slane %v1427_v40, %v4435_v3  ;;  %v1613_v55 = vrot.slane %v1427_v40, %v4437_v4  ;;  %v1351_v54 = vmul.f32 %v5064_v37, %v5124_v48  ;;  %v1650_v37 = vld [vmem:[#allocation2 + $0x44] sm:$0x11] }
  0xc3   : > { %v5263_v44 = vld [vmem:[#allocation2 + $0x14] ss:$40 sps:$4 sm:$0x1f]   ;;  %v1505_v16 = vsel %vm4578_vm15, %v1502_v51, %v1504_v29  ;;  %v1551_v53 = vrot.slane %v4180_v22, 6  ;;  %v1635_v56 = vrot.slane %v1430_v21, %v4435_v3  ;;  %v1526_v12 = vshll.u32 %v4179_v23, 16 }
  0xc4   : > { %2308 = vrot.lane.b32.xlu1 %v5263_v44, %s4396_s19  ;;  %1506 = vst [vmem:[#allocation2 + $0x1c] sm:$0x22] %v1505_v16  ;;  %v4182_v0 = vpack.c.bf16 %v1590_v46, %v1586_v31  ;;  %v1639_v32 = vrot.slane %v1430_v21, %v4437_v4  ;;  %v4183_v45 = vpack.c.bf16 %v1613_v55, %v1609_v25  ;;  %v1575_v15 = vshll.u32 %v4181_v8, 16  ;;  %v4348_v22 = vld [vmem:[#allocation2 + $0x18] ss:$40 sps:$4 sm:$0x1f]  }
  0xc5   : > { %v1554_v52 = vsel %vm4616_vm7, %v1551_v53, %v1553_v34  ;;  %2422 = vrot.lane.b32.xlu0 %v5226_v50, %s4397_s20  ;;  %v1352_v49 = vsub.f32 %v1350_v30, %v1351_v54  ;;  %v1528_v27 = vrot.slane %v1526_v12, 7  ;;  %v154_v40 = vsel %vm4564_vm11, 0, %v153_v24  ;;  %v4352_v31 = vld [vmem:[#allocation2 + $0x10] ss:$40 sps:$4 sm:$0x1f]  }
  0xc6   : > { %1555 = vst [vmem:[#allocation2 + $0x1c] sm:$0x44] %v1554_v52  ;;  %v1600_v48 = vrot.slane %v4182_v0, 5  ;;  %v4184_v63 = vpack.c.bf16 %v1639_v32, %v1635_v56  ;;  %v1624_v20 = vshll.u32 %v4183_v45, 16  ;;  %v1577_v7 = vrot.slane %v1575_v15, 6  ;;  %v5364_v45 = vld [vmem:[#allocation2 + $0x14] sm:$0xff] }
  0xc7   : > { %v1380_v47 = vmul.f32 %v5182_v41, %v1352_v49  ;;  %v1381_v5 = vmul.f32 %v5067_v28, %v5165_v38  ;;  %155 = vst [vmem:[#allocation2 + $0x4c] sm:$0x1] %v154_v40  ;;  %v1408_v29 = vmul.f32 %v5074_v42, %v5196_v19  ;;  %v1456_v19 = vld [vmem:[#allocation2 + $0x1c] sm:$0x11]  ;;  %vm1702_vm11 = vcmask 1043456  }
  0xc8   : > { %2420 = vrot.lane.b32.xlu1 %v5213_v18, %s4397_s20  ;;  %v1603_v39 = vsel %vm4641_vm8, %v1600_v48, %v1602_v33  ;;  %v1651_v17 = vsel %vm4654_vm12, %v4184_v63, %v1650_v37  ;;  %v1626_v6 = vrot.slane %v1624_v20, 5  ;;  %vm1703_vm15 = vcmask 1044480   ;;  %v3383_v37 = vld [vmem:[#allocation2 + $0x3c] sm:$0x11]  ;;  %v4067_v15 = vld [vmem:[%s5689_s1 + $0x4] sm:$0xf] }
  0xc9   : > { %1604 = vst [vmem:[#allocation2 + $0x1c] sm:$0x88] %v1603_v39  ;;  %1652 = vst [vmem:[#allocation2 + $0x44] sm:$0x11] %v1651_v17  ;;  %2426 = vrot.lane.b32.xlu0 %v5263_v44, %s4397_s20  ;;  %v1382_v28 = vsub.f32 %v1380_v47, %v1381_v5  ;;  %vm1693_vm7 = vcmask 244736   ;;  %vm1810_vm8 = vcmask 252928   ;;  %v5374_v24 = vcombine.high %v5364_v45, %v3383_v37 }
  0xca   : > { %v4379_v1 = vpop.eup %4378  ;;  %vm2546_vm10 = vcmask 801792   ;;  %vm2664_vm5 = vcmask 793600  }
  0xcb   : > { %v1434_v58 = vadd.f32 1.0, %v4379_v1  ;;  %v1530_v35 = vld [vmem:[#allocation2 + $0x1c] sm:$0x22]  ;;  %v1407_v14 = vmul.f32 %v5182_v41, %v1382_v28  ;;  %v5404_v28 = vcombine.low %v5364_v45, %v3383_v37 }
  0xcc   : > { %2424 = vrot.lane.b32.xlu1 %v5233_v59, %s4397_s20  ;;  %v1531_v21 = vsel %vm4667_vm4, %v1528_v27, %v1530_v35  ;;  %vm1924_vm4 = vcmask 236544  }
  0xcd   : > { %4380 = vrcp.f32 %v1434_v58  ;;  %1532 = vst [vmem:[#allocation2 + $0x1c] sm:$0x22] %v1531_v21  ;;  %v1579_v57 = vld [vmem:[#allocation2 + $0x1c] sm:$0x44]  ;;  %2538 = vrot.lane.b32.xlu0 %v5213_v18, %s4398_s21  ;;  %v1409_v23 = vsub.f32 %v1407_v14, %v1408_v29 }
  0xce   : > { %v1580_v10 = vsel %vm4686_vm13, %v1577_v7, %v1579_v57  ;;  %v1653_v14 = vld [vmem:[%s5689_s1] sm:$0xf]  ;;  %vm2042_vm13 = vcmask 7168  }
  0xcf   : > { %1581 = vst [vmem:[#allocation2 + $0x1c] sm:$0x44] %v1580_v10  ;;  %v1463_v26 = vrot.slane %v1409_v23, %v4435_v3  ;;  %v1467_v13 = vrot.slane %v1409_v23, %v4437_v4  ;;  %v5399_v10 = vld [vmem:[#allocation2 + $0x24] ss:$40 sps:$4 sm:$0x1f]  }
  0xd0   : > { %2418 = vrot.lane.b32.xlu1 %v5253_v2, %s4397_s20  ;;  %v1628_v38 = vld [vmem:[#allocation2 + $0x1c] sm:$0x88]  ;;  %v3384_v39 = vld [vmem:[#allocation2 + $0x44] sm:$0x11] }
  0xd1   : > { %v1629_v9 = vsel %vm4739_vm6, %v1626_v6, %v1628_v38  ;;  %2542 = vrot.lane.b32.xlu0 %v5233_v59, %s4398_s21  ;;  %v4177_v51 = vpack.c.bf16 %v1467_v13, %v1463_v26  ;;  %vm2310_vm6 = vcmask 1039360  }
  0xd2   : > { %1630 = vst [vmem:[#allocation2 + $0x1c] sm:$0x88] %v1629_v9 }
  0xd4   : > { %2540 = vrot.lane.b32.xlu1 %v5226_v50, %s4398_s21 }
  0xd5   : > { %2536 = vrot.lane.b32.xlu0 %v5253_v2, %s4398_s21 }
  0xd7   : > { %v4381_v11 = vpop.eup %4380 }
  0xd8   : > { %2544 = vrot.lane.b32.xlu1 %v5263_v44, %s4398_s21  ;;  %v1436_v36 = vmul.f32 %v4381_v11, %v5052_v62  ;;  %v4346_v62 = vld [vmem:[#allocation2 + $0x14] ss:$40 sps:$4 sm:$0x1f]  }
  0xd9   : > { %2658 = vrot.lane.b32.xlu0 %v5226_v50, %s4399_s22 }
  0xda   : > { %v1441_v41 = vrot.slane %v1436_v36, %v4435_v3  ;;  %v1445_v42 = vrot.slane %v1436_v36, %v4437_v4  ;;  %v1478_v3 = vshll.u32 %v4177_v51, 16 }
  0xdc   : > { %2656 = vrot.lane.b32.xlu1 %v5213_v18, %s4399_s22  ;;  %v4176_v30 = vpack.c.bf16 %v1445_v42, %v1441_v41 }
  0xdd   : > { %2662 = vrot.lane.b32.xlu0 %v5263_v44, %s4399_s22 }
  0xde   : > { %v1457_v50 = vsel %vm4654_vm12, %v4176_v30, %v1456_v19  ;;  %vm1698_vm12 = vcmask 72704  }
  0xdf   : > { %1458 = vst [vmem:[#allocation2 + $0x1c] sm:$0x11] %v1457_v50 }
  0xe0   : > { %2660 = vrot.lane.b32.xlu1 %v5233_v59, %s4399_s22  ;;  %v4400_v59 = vmov 65535  }
  0xe1   : > { %2805 = vrot.lane.b32.xlu0 %v4346_v62, %s4392_s15 }
  0xe4   : > { %2654 = vrot.lane.b32.xlu1 %v5253_v2, %s4399_s22  ;;  %v1704_v2 = vsel %vm1702_vm11, 4294967295, %v4400_v59 }
  0xe5   : > { %v5350_v8 = vsel %vm1703_vm15, %v1704_v2, 0 }
  0xe6   : > { %v1481_v4 = vld [vmem:[#allocation2 + $0x1c] sm:$0x11] }
  0xe7   : > { %v1482_v18 = vsel %vm4815_vm2, %v1478_v3, %v1481_v4  ;;  %v4363_v4 = vld [vmem:[#allocation2 + $0x10] ss:$40 sps:$4 sm:$0x1f]   ;;  %vm2428_vm2 = vcmask 809984  }
  0xe8   : > { %1483 = vst [vmem:[#allocation2 + $0x1c] sm:$0x11] %v1482_v18  ;;  %2807 = vrot.lane.b32.xlu1 %v4348_v22, %s4392_s15  ;;  %v1686_v43 = vpop.permute.xlu0 %1685 }
  0xef   : > { %v4350_v34 = vld [vmem:[#allocation2 + $0x1c] ss:$40 sps:$4 sm:$0x1f]   ;;  %v4351_v60 = vld [vmem:[#allocation2 + $0x20] ss:$40 sps:$4 sm:$0x1f]  }
  0xf0   : > { %2809 = vrot.lane.b32.xlu0 %v4350_v34, %s4392_s15  ;;  %2811 = vrot.lane.b32.xlu1 %v4351_v60, %s4392_s15  ;;  %v5376_v27 = vld [vmem:[#allocation2 + $0x1c] sm:$0xff] }
  0xf1   : > { %v5386_v40 = vcombine.low %v5376_v27, %v3384_v39  ;;  %v5392_v5 = vcombine.high %v5376_v27, %v3384_v39 }
  0xf4   : > { %2803 = vrot.lane.b32.xlu0 %v4352_v31, %s4392_s15  ;;  %2916 = vrot.lane.b32.xlu1 %v4346_v62, %s4393_s16 }
  0xf8   : > { %2918 = vrot.lane.b32.xlu0 %v4348_v22, %s4393_s16  ;;  %2920 = vrot.lane.b32.xlu1 %v4350_v34, %s4393_s16 }
  0xfc   : > { %2922 = vrot.lane.b32.xlu0 %v4351_v60, %s4393_s16  ;;  %2914 = vrot.lane.b32.xlu1 %v4352_v31, %s4393_s16 }
 0x100   : > { %3028 = vrot.lane.b32.xlu0 %v4346_v62, %s4394_s17  ;;  %3030 = vrot.lane.b32.xlu1 %v4348_v22, %s4394_s17 }
 0x104   : > { %3032 = vrot.lane.b32.xlu0 %v4350_v34, %s4394_s17  ;;  %3034 = vrot.lane.b32.xlu1 %v4351_v60, %s4394_s17 }
 0x105   : > { %v1688_v46 = vpop.permute.xlu0 %1687 }
 0x106   : > { %v1695_v55 = vsel %vm1693_vm7, %v1686_v43, %v1688_v46 }
 0x107   : > { %v1710_v54 = vand.u32 %v5350_v8, %v1695_v55 }
 0x108   : > { %v1690_v44 = vpop.permute.xlu1 %1689  ;;  %3026 = vrot.lane.b32.xlu0 %v4352_v31, %s4394_s17  ;;  %3144 = vrot.lane.b32.xlu1 %v4346_v62, %s4395_s18 }
 0x109   : > { %v1696_v25 = vsel %vm1693_vm7, %v1688_v46, %v1690_v44  ;;  %1718 = vmatprep.subr.bf16.mxu0 %v1710_v54  ;;  %v1684_v56 = vpop.permute.xlu0 %1683 }
 0x10a   : > { %v1713_v12 = vand.u32 %v5350_v8, %v1696_v25  ;;  %v1694_v32 = vsel %vm1693_vm7, %v1684_v56, %v1686_v43 }
 0x10b   : > { %v1707_v52 = vand.u32 %v5350_v8, %v1694_v32 }
 0x10c   : > { %v1692_v16 = vpop.permute.xlu1 %1691  ;;  %3146 = vrot.lane.b32.xlu0 %v4348_v22, %s4395_s18  ;;  %3148 = vrot.lane.b32.xlu1 %v4350_v34, %s4395_s18  ;;  %v4077_v34 = vld [vmem:[%s5689_s1 + $0x8] sm:$0xf] }
 0x10d   : > { %v1697_v53 = vsel %vm1693_vm7, %v1690_v44, %v1692_v16  ;;  %1719 = vmatpush1.bf16.msra.mxu0 %v1707_v52  ;;  %v1805_v48 = vpop.permute.xlu0 %1804  ;;  %v2183_v44 = vand.u32 %v4363_v4, %v5350_v8  ;;  %v4080_v52 = vld [vmem:[%s5689_s1 + $0xc] sm:$0xf] }
 0x10e   : > { %v1716_v0 = vand.u32 %v5350_v8, %v1697_v53 }
 0x110   : > { %1759 = vmatprep.subr.bf16.mxu1 %v1716_v0  ;;  %v1803_v33 = vpop.permute.xlu1 %1802  ;;  %3150 = vrot.lane.b32.xlu0 %v4351_v60, %s4395_s18  ;;  %v4358_v0 = vld [vmem:[#allocation2 + $0x4] ss:$40 sps:$4 sm:$0x1f]  }
 0x111   : > { %1760 = vmatpush1.bf16.msra.mxu1 %v1713_v12  ;;  %v1812_v63 = vsel %vm1810_vm8, %v1803_v33, %v1805_v48  ;;  %4073 = vmatmul.mubr.msk.bf16.vlgmr.msra.gmra.mrb[0].mxu0 %vm1698_vm12, %v4067_v15  ;;  %v1809_v1 = vpop.permute.xlu0 %1808  ;;  %v4361_v12 = vld [vmem:[#allocation2 + $0xc] ss:$40 sps:$4 sm:$0x1f]  }
 0x112   : > { %v1822_v49 = vand.u32 %v1812_v63, %v5350_v8  ;;  %3142 = vrot.lane.b32.xlu1 %v4352_v31, %s4395_s18  ;;  %1862 = vmatprep.mubr.bf16.mxu0 %v4391_v61  ;;  %v4360_v31 = vld [vmem:[#allocation2 + $0x8] ss:$40 sps:$4 sm:$0x1f]  }
 0x113   : > { %v2177_v54 = vand.u32 %v4360_v31, %v5350_v8 }
 0x114   : > { %v1807_v17 = vpop.permute.xlu1 %1806  ;;  %4074 = vmatmul.mubr.msk.bf16.vlgmr.msra.gmra.mrb[0].mxu1 %vm1698_vm12, %v4067_v15  ;;  %1830 = vmatprep.subr.bf16.mxu0 %v1822_v49  ;;  %v2174_v15 = vand.u32 %v4358_v0, %v5350_v8 }
 0x115   : > { %v1813_v20 = vsel %vm1810_vm8, %v1805_v48, %v1807_v17  ;;  %1903 = vmatprep.mubr.bf16.mxu1 %v4391_v61  ;;  %v1814_v7 = vsel %vm1810_vm8, %v1807_v17, %v1809_v1  ;;  %3409 = vrot.lane.b32.xlu0 %v5374_v24, %s4396_s19  ;;  %v1917_v57 = vpop.permute.xlu0 %1916 }
 0x116   : > { %v1828_v47 = vand.u32 %v1814_v7, %v5350_v8  ;;  %v1825_v58 = vand.u32 %v1813_v20, %v5350_v8  ;;  %3411 = vrot.lane.b32.xlu1 %v5386_v40, %s4396_s19 }
 0x118   : > { %v1801_v35 = vpop.permute.xlu1 %1800  ;;  %1871 = vmatprep.subr.bf16.mxu1 %v1828_v47 }
 0x119   : > { %v1811_v21 = vsel %vm1810_vm8, %v1801_v35, %v1803_v33  ;;  %1872 = vmatpush1.bf16.msra.mxu1 %v1825_v58  ;;  %3413 = vrot.lane.b32.xlu0 %v5392_v5, %s4396_s19  ;;  %v1921_v29 = vpop.permute.xlu0 %1920  ;;  %v2180_v33 = vand.u32 %v4361_v12, %v5350_v8 }
 0x11a   : > { %v1819_v6 = vand.u32 %v1811_v21, %v5350_v8  ;;  %3415 = vrot.lane.b32.xlu1 %v5399_v10, %s4396_s19 }
 0x11c   : > { %v1919_v38 = vpop.permute.xlu1 %1918  ;;  %1831 = vmatpush1.bf16.msra.mxu0 %v1819_v6 }
 0x11d   : > { %v1926_v9 = vsel %vm1924_vm4, %v1917_v57, %v1919_v38  ;;  %v1927_v23 = vsel %vm1924_vm4, %v1919_v38, %v1921_v29  ;;  %3407 = vrot.lane.b32.xlu0 %v5404_v28, %s4396_s19  ;;  %v1915_v19 = vpop.permute.xlu0 %1914 }
 0x11e   : > { %v1936_v11 = vand.u32 %v1926_v9, %v5350_v8  ;;  %v1939_v42 = vand.u32 %v1927_v23, %v5350_v8  ;;  %v1925_v13 = vsel %vm1924_vm4, %v1915_v19, %v1917_v57  ;;  %3525 = vrot.lane.b32.xlu1 %v5374_v24, %s4397_s20 }
 0x11f   : > { %4075 = vmatmul.mubr.msk.bf16.vlgmr.msra.gmra.mrb[0].mxu0 %vm1698_vm12, %v1653_v14  ;;  %v1933_v30 = vand.u32 %v1925_v13, %v5350_v8 }
 0x120   : > { %v1923_v36 = vpop.permute.xlu1 %1922  ;;  %4076 = vmatmul.mubr.msk.bf16.vlgmr.msra.gmra.mrb[0].mxu1 %vm1698_vm12, %v1653_v14  ;;  %1944 = vmatprep.subr.bf16.mxu0 %v1936_v11 }
 0x121   : > { %v1928_v41 = vsel %vm1924_vm4, %v1921_v29, %v1923_v36  ;;  %2017 = vmatprep.mubr.bf16.mxu1 %v4391_v61  ;;  %1976 = vmatprep.mubr.bf16.mxu0 %v4391_v61  ;;  %v2037_v50 = vpop.permute.xlu0 %2036 }
 0x122   : > { %v1942_v26 = vand.u32 %v1928_v41, %v5350_v8  ;;  %3527 = vrot.lane.b32.xlu0 %v5386_v40, %s4397_s20  ;;  %1945 = vmatpush1.bf16.msra.mxu0 %v1933_v30 }
 0x123   : > { %3529 = vrot.lane.b32.xlu1 %v5392_v5, %s4397_s20 }
 0x124   : > { %v2035_v62 = vpop.permute.xlu1 %2034  ;;  %1985 = vmatprep.subr.bf16.mxu1 %v1942_v26 }
 0x125   : > { %1986 = vmatpush1.bf16.msra.mxu1 %v1939_v42  ;;  %v2044_v51 = vsel %vm2042_vm13, %v2035_v62, %v2037_v50  ;;  %v4090_v42 = vld [vmem:[%s5689_s1 + $0x14] sm:$0xf] }
 0x126   : > { %v2054_v3 = vand.u32 %v2044_v51, %v5350_v8  ;;  %3531 = vrot.lane.b32.xlu0 %v5399_v10, %s4397_s20  ;;  %v2041_v60 = vpop.permute.xlu0 %2040 }
 0x127   : > { %3523 = vrot.lane.b32.xlu1 %v5404_v28, %s4397_s20 }
 0x128   : > { %v2039_v18 = vpop.permute.xlu1 %2038  ;;  %2062 = vmatprep.subr.bf16.mxu0 %v2054_v3 }
 0x129   : > { %v2045_v22 = vsel %vm2042_vm13, %v2037_v50, %v2039_v18  ;;  %v2046_v59 = vsel %vm2042_vm13, %v2039_v18, %v2041_v60  ;;  %v4098_v60 = vld [vmem:[%s5689_s1 + $0x18] sm:$0xf] }
 0x12a   : > { %v2057_v43 = vand.u32 %v2045_v22, %v5350_v8  ;;  %v2060_v2 = vand.u32 %v2046_v59, %v5350_v8  ;;  %3641 = vrot.lane.b32.xlu0 %v5374_v24, %s4398_s21  ;;  %v2303_v55 = vpop.permute.xlu0 %2302 }
 0x12b   : > { %4078 = vmatmul.mubr.msk.bf16.vlgmr.msra.gmra.mrb[0].mxu0 %vm1698_vm12, %v4077_v34  ;;  %3643 = vrot.lane.b32.xlu1 %v5386_v40, %s4398_s21 }
 0x12c   : > { %v2033_v46 = vpop.permute.xlu1 %2032  ;;  %4079 = vmatmul.mubr.msk.bf16.vlgmr.msra.gmra.mrb[0].mxu1 %vm1698_vm12, %v4077_v34  ;;  %2103 = vmatprep.subr.bf16.mxu1 %v2060_v2 }
 0x12d   : > { %v2043_v25 = vsel %vm2042_vm13, %v2033_v46, %v2035_v62  ;;  %2104 = vmatpush1.bf16.msra.mxu1 %v2057_v43  ;;  %2135 = vmatprep.mubr.bf16.mxu1 %v4391_v61 }
 0x12e   : > { %v2051_v16 = vand.u32 %v2043_v25, %v5350_v8  ;;  %2094 = vmatprep.mubr.bf16.mxu0 %v4391_v61  ;;  %2226 = vmatprep.subr.bf16.mxu1 %v2183_v44  ;;  %v2307_v56 = vpop.permute.xlu0 %2306 }
 0x12f   : > { %3645 = vrot.lane.b32.xlu0 %v5392_v5, %s4398_s21  ;;  %3647 = vrot.lane.b32.xlu1 %v5399_v10, %s4398_s21 }
 0x130   : > { %2063 = vmatpush1.bf16.msra.mxu0 %v2051_v16  ;;  %v2305_v53 = vpop.permute.xlu1 %2304 }
 0x131   : > { %2185 = vmatprep.subr.bf16.mxu0 %v2177_v54  ;;  %v2312_v32 = vsel %vm2310_vm6, %v2303_v55, %v2305_v53 }
 0x132   : > { %v2301_v37 = vpop.permute.xlu0 %2300  ;;  %v2322_v48 = vand.u32 %v2312_v32, %v5350_v8 }
 0x133   : > { %3639 = vrot.lane.b32.xlu0 %v5404_v28, %s4398_s21  ;;  %3757 = vrot.lane.b32.xlu1 %v5374_v24, %s4399_s22  ;;  %v2313_v24 = vsel %vm2310_vm6, %v2305_v53, %v2307_v56  ;;  %v2311_v7 = vsel %vm2310_vm6, %v2301_v37, %v2303_v55  ;;  %v4101_v53 = vld [vmem:[%s5689_s1 + $0x1c] sm:$0xf] }
 0x134   : > { %v2325_v35 = vand.u32 %v2313_v24, %v5350_v8  ;;  %v4104_v24 = vld [vmem:[%s5689_s1 + $0x20] sm:$0xf] }
 0x136   : > { %v2309_v63 = vpop.permute.xlu1 %2308 }
 0x137   : > { %v2314_v49 = vsel %vm2310_vm6, %v2307_v56, %v2309_v63  ;;  %4081 = vmatmul.mubr.msk.bf16.vlgmr.msra.gmra.mrb[0].mxu0 %vm1698_vm12, %v4080_v52  ;;  %v2423_v17 = vpop.permute.xlu0 %2422  ;;  %3761 = vrot.lane.b32.xlu1 %v5392_v5, %s4399_s22  ;;  %v4083_v5 = vld [vmem:[%s5689_s1 + $0x10] sm:$0xf] }
 0x138   : > { %4082 = vmatmul.mubr.msk.bf16.vlgmr.msra.gmra.mrb[0].mxu1 %vm1698_vm12, %v4080_v52  ;;  %v2328_v39 = vand.u32 %v2314_v49, %v5350_v8  ;;  %2186 = vmatpush1.bf16.msra.mxu0 %v2174_v15 }
 0x139   : > { %2227 = vmatpush1.bf16.msra.mxu1 %v2180_v33  ;;  %2258 = vmatprep.mubr.bf16.mxu1 %v4391_v61 }
 0x13a   : > { %v2421_v20 = vpop.permute.xlu1 %2420  ;;  %2330 = vmatprep.subr.bf16.mxu0 %v2322_v48  ;;  %2217 = vmatprep.mubr.bf16.mxu0 %v4391_v61 }
 0x13b   : > { %2371 = vmatprep.subr.bf16.mxu1 %v2328_v39  ;;  %v2427_v1 = vpop.permute.xlu0 %2426  ;;  %3759 = vrot.lane.b32.xlu0 %v5386_v40, %s4399_s22  ;;  %v2430_v58 = vsel %vm2428_vm2, %v2421_v20, %v2423_v17  ;;  %v2319_v40 = vand.u32 %v2311_v7, %v5350_v8 }
 0x13c   : > { %3755 = vrot.lane.b32.xlu1 %v5404_v28, %s4399_s22  ;;  %v2440_v6 = vand.u32 %v2430_v58, %v5350_v8 }
 0x13e   : > { %v2425_v47 = vpop.permute.xlu1 %2424 }
 0x13f   : > { %v2432_v21 = vsel %vm2428_vm2, %v2425_v47, %v2427_v1  ;;  %v2539_v57 = vpop.permute.xlu0 %2538  ;;  %3763 = vrot.lane.b32.xlu0 %v5399_v10, %s4399_s22  ;;  %v2431_v14 = vsel %vm2428_vm2, %v2423_v17, %v2425_v47 }
 0x140   : > { %v2446_v28 = vand.u32 %v2432_v21, %v5350_v8  ;;  %v2443_v41 = vand.u32 %v2431_v14, %v5350_v8 }
 0x142   : > { %v2419_v38 = vpop.permute.xlu1 %2418 }
 0x143   : > { %4088 = vmatmul.mubr.msk.bf16.vlgmr.msra.gmra.mrb[0].mxu0 %vm1698_vm12, %v4083_v5  ;;  %v2543_v9 = vpop.permute.xlu0 %2542  ;;  %v2429_v29 = vsel %vm2428_vm2, %v2419_v38, %v2421_v20 }
 0x144   : > { %4089 = vmatmul.mubr.msk.bf16.vlgmr.msra.gmra.mrb[0].mxu1 %vm1698_vm12, %v4083_v5  ;;  %2331 = vmatpush1.bf16.msra.mxu0 %v2319_v40  ;;  %v2437_v26 = vand.u32 %v2429_v29, %v5350_v8 }
 0x145   : > { %2372 = vmatpush1.bf16.msra.mxu1 %v2325_v35  ;;  %2403 = vmatprep.mubr.bf16.mxu1 %v4391_v61 }
 0x146   : > { %2448 = vmatprep.subr.bf16.mxu0 %v2440_v6  ;;  %2362 = vmatprep.mubr.bf16.mxu0 %v4391_v61  ;;  %v2541_v10 = vpop.permute.xlu1 %2540 }
 0x147   : > { %2489 = vmatprep.subr.bf16.mxu1 %v2446_v28  ;;  %v2548_v11 = vsel %vm2546_vm10, %v2539_v57, %v2541_v10  ;;  %v2537_v36 = vpop.permute.xlu0 %2536  ;;  %v2549_v51 = vsel %vm2546_vm10, %v2541_v10, %v2543_v9 }
 0x148   : > { %v2558_v13 = vand.u32 %v2548_v11, %v5350_v8  ;;  %v2547_v3 = vsel %vm2546_vm10, %v2537_v36, %v2539_v57  ;;  %v2561_v34 = vand.u32 %v2549_v51, %v5350_v8  ;;  %v2774_v51 = vld [vmem:[%s5689_s1] sm:$0xf] }
 0x149   : > { %v2555_v43 = vand.u32 %v2547_v3, %v5350_v8 }
 0x14a   : > { %v2545_v23 = vpop.permute.xlu1 %2544 }
 0x14b   : > { %v2550_v19 = vsel %vm2546_vm10, %v2543_v9, %v2545_v23  ;;  %v2659_v50 = vpop.permute.xlu0 %2658  ;;  %v4107_v9 = vld [vmem:[%s5689_s1 + $0x4] sm:$0xf] }
 0x14c   : > { %v2564_v30 = vand.u32 %v2550_v19, %v5350_v8 }
 0x14e   : > { %v2657_v62 = vpop.permute.xlu1 %2656 }
 0x14f   : > { %4096 = vmatmul.mubr.msk.bf16.vlgmr.msra.gmra.mrb[0].mxu0 %vm1698_vm12, %v4090_v42  ;;  %v2666_v4 = vsel %vm2664_vm5, %v2657_v62, %v2659_v50  ;;  %v2663_v22 = vpop.permute.xlu0 %2662 }
 0x150   : > { %4097 = vmatmul.mubr.msk.bf16.vlgmr.msra.gmra.mrb[0].mxu1 %vm1698_vm12, %v4090_v42  ;;  %2449 = vmatpush1.bf16.msra.mxu0 %v2437_v26  ;;  %v2676_v59 = vand.u32 %v2666_v4, %v5350_v8 }
 0x151   : > { %2490 = vmatpush1.bf16.msra.mxu1 %v2443_v41  ;;  %2521 = vmatprep.mubr.bf16.mxu1 %v4391_v61 }
 0x152   : > { %2566 = vmatprep.subr.bf16.mxu0 %v2558_v13  ;;  %2480 = vmatprep.mubr.bf16.mxu0 %v4391_v61  ;;  %v2661_v18 = vpop.permute.xlu1 %2660 }
 0x153   : > { %2607 = vmatprep.subr.bf16.mxu1 %v2564_v30  ;;  %v2668_v31 = vsel %vm2664_vm5, %v2661_v18, %v2663_v22  ;;  %v2806_v46 = vpop.permute.xlu0 %2805  ;;  %v2667_v25 = vsel %vm2664_vm5, %v2659_v50, %v2661_v18 }
 0x154   : > { %v2682_v2 = vand.u32 %v2668_v31, %v5350_v8  ;;  %v2679_v16 = vand.u32 %v2667_v25, %v5350_v8 }
 0x156   : > { %v2655_v44 = vpop.permute.xlu1 %2654 }
 0x157   : > { %v2665_v55 = vsel %vm2664_vm5, %v2655_v44, %v2657_v62 }
 0x158   : > { %v2673_v0 = vand.u32 %v2665_v55, %v5350_v8 }
 0x15a   : > { %v2808_v54 = vpop.permute.xlu1 %2807 }
 0x15b   : > { %4099 = vmatmul.mubr.msk.bf16.vlgmr.msra.gmra.mrb[0].mxu0 %vm1698_vm12, %v4098_v60  ;;  %v2814_v56 = vsel %vm1693_vm7, %v2806_v46, %v2808_v54 }
 0x15c   : > { %4100 = vmatmul.mubr.msk.bf16.vlgmr.msra.gmra.mrb[0].mxu1 %vm1698_vm12, %v4098_v60  ;;  %2567 = vmatpush1.bf16.msra.mxu0 %v2555_v43  ;;  %v2824_v32 = vand.u32 %v2814_v56, %v5350_v8 }
 0x15d   : > { %2608 = vmatpush1.bf16.msra.mxu1 %v2561_v34  ;;  %2639 = vmatprep.mubr.bf16.mxu1 %v4391_v61 }
 0x15e   : > { %2684 = vmatprep.subr.bf16.mxu0 %v2676_v59  ;;  %2598 = vmatprep.mubr.bf16.mxu0 %v4391_v61  ;;  %v3260_v59 = vld [vmem:[#allocation2 + $0x3c] sm:$0x11] }
 0x15f   : > { %2725 = vmatprep.subr.bf16.mxu1 %v2682_v2  ;;  %v3261_v2 = vld [vmem:[#allocation2 + $0x44] sm:$0x11]  ;;  %v4125_v25 = vcombine.high %v5364_v45, %v3260_v59 }
 0x160   : > { %v4127_v55 = vcombine.high %v5376_v27, %v3261_v2 }
 0x162   : > { %v2810_v12 = vpop.permute.xlu0 %2809  ;;  %v2812_v52 = vpop.permute.xlu1 %2811 }
 0x163   : > { %v2816_v33 = vsel %vm1693_vm7, %v2810_v12, %v2812_v52  ;;  %v2815_v49 = vsel %vm1693_vm7, %v2808_v54, %v2810_v12 }
 0x164   : > { %v2830_v15 = vand.u32 %v2816_v33, %v5350_v8  ;;  %v2827_v20 = vand.u32 %v2815_v49, %v5350_v8  ;;  %v4120_v49 = vld [vmem:[%s5689_s1 + $0xc] sm:$0xf] }
 0x166   : > { %v2804_v37 = vpop.permute.xlu0 %2803  ;;  %v2917_v48 = vpop.permute.xlu1 %2916 }
 0x167   : > { %4102 = vmatmul.mubr.msk.bf16.vlgmr.msra.gmra.mrb[0].mxu0 %vm1698_vm12, %v4101_v53  ;;  %v2813_v1 = vsel %vm1693_vm7, %v2804_v37, %v2806_v46  ;;  %v4126_v37 = vcombine.low %v5376_v27, %v3261_v2 }
 0x168   : > { %4103 = vmatmul.mubr.msk.bf16.vlgmr.msra.gmra.mrb[0].mxu1 %vm1698_vm12, %v4101_v53  ;;  %2685 = vmatpush1.bf16.msra.mxu0 %v2673_v0  ;;  %v2821_v35 = vand.u32 %v2813_v1, %v5350_v8  ;;  %v3285_v0 = vand.u32 %v4125_v25, %v5350_v8 }
 0x169   : > { %2726 = vmatpush1.bf16.msra.mxu1 %v2679_v16  ;;  %2757 = vmatprep.mubr.bf16.mxu1 %v4391_v61  ;;  %v4117_v16 = vld [vmem:[%s5689_s1 + $0x8] sm:$0xf] }
 0x16a   : > { %2832 = vmatprep.subr.bf16.mxu0 %v2824_v32  ;;  %2716 = vmatprep.mubr.bf16.mxu0 %v4391_v61  ;;  %v2919_v63 = vpop.permute.xlu0 %2918  ;;  %v2921_v39 = vpop.permute.xlu1 %2920  ;;  %v3291_v32 = vand.u32 %v4127_v55, %v5350_v8 }
 0x16b   : > { %2873 = vmatprep.subr.bf16.mxu1 %v2830_v15  ;;  %v2925_v17 = vsel %vm1810_vm8, %v2917_v48, %v2919_v63  ;;  %v2926_v40 = vsel %vm1810_vm8, %v2919_v63, %v2921_v39  ;;  %v4124_v15 = vcombine.low %v5364_v45, %v3260_v59 }
 0x16c   : > { %v2935_v58 = vand.u32 %v2925_v17, %v5350_v8  ;;  %v2938_v28 = vand.u32 %v2926_v40, %v5350_v8  ;;  %v3288_v17 = vand.u32 %v4126_v37, %v5350_v8 }
 0x16e   : > { %v2923_v7 = vpop.permute.xlu0 %2922  ;;  %v2915_v5 = vpop.permute.xlu1 %2914 }
 0x16f   : > { %v2927_v47 = vsel %vm1810_vm8, %v2921_v39, %v2923_v7  ;;  %v2924_v6 = vsel %vm1810_vm8, %v2915_v5, %v2917_v48 }
 0x170   : > { %v2941_v21 = vand.u32 %v2927_v47, %v5350_v8  ;;  %v2932_v29 = vand.u32 %v2924_v6, %v5350_v8 }
 0x172   : > { %v3029_v57 = vpop.permute.xlu0 %3028  ;;  %v3031_v38 = vpop.permute.xlu1 %3030 }
 0x173   : > { %4105 = vmatmul.mubr.msk.bf16.vlgmr.msra.gmra.mrb[0].mxu0 %vm1698_vm12, %v4104_v24  ;;  %v3037_v10 = vsel %vm1924_vm4, %v3029_v57, %v3031_v38 }
 0x174   : > { %4106 = vmatmul.mubr.msk.bf16.vlgmr.msra.gmra.mrb[0].mxu1 %vm1698_vm12, %v4104_v24  ;;  %2833 = vmatpush1.bf16.msra.mxu0 %v2821_v35  ;;  %v3047_v11 = vand.u32 %v3037_v10, %v5350_v8 }
 0x175   : > { %2874 = vmatpush1.bf16.msra.mxu1 %v2827_v20  ;;  %2905 = vmatprep.mubr.bf16.mxu1 %v4391_v61  ;;  %v3282_v20 = vand.u32 %v4124_v15, %v5350_v8 }
 0x176   : > { %2943 = vmatprep.subr.bf16.mxu0 %v2935_v58  ;;  %2864 = vmatprep.mubr.bf16.mxu0 %v4391_v61  ;;  %v3033_v14 = vpop.permute.xlu0 %3032  ;;  %v3035_v23 = vpop.permute.xlu1 %3034 }
 0x177   : > { %2984 = vmatprep.subr.bf16.mxu1 %v2941_v21  ;;  %v3039_v36 = vsel %vm1924_vm4, %v3033_v14, %v3035_v23  ;;  %v3038_v13 = vsel %vm1924_vm4, %v3031_v38, %v3033_v14 }
 0x178   : > { %v3053_v42 = vand.u32 %v3039_v36, %v5350_v8  ;;  %v3050_v50 = vand.u32 %v3038_v13, %v5350_v8 }
 0x17a   : > { %v3027_v41 = vpop.permute.xlu0 %3026  ;;  %v3145_v19 = vpop.permute.xlu1 %3144 }
 0x17b   : > { %4113 = vmatmul.mubr.msk.bf16.vlgmr.msra.gmra.mrb[4].mxu0 %vm1698_vm12, %v4107_v9  ;;  %v3036_v30 = vsel %vm1924_vm4, %v3027_v41, %v3029_v57  ;;  %v4123_v57 = vld [vmem:[%s5689_s1 + $0x10] sm:$0xf] }
 0x17c   : > { %4114 = vmatmul.mubr.msk.bf16.vlgmr.msra.gmra.mrb[4].mxu1 %vm1698_vm12, %v4107_v9  ;;  %2944 = vmatpush1.bf16.msra.mxu0 %v2932_v29  ;;  %v3044_v18 = vand.u32 %v3036_v30, %v5350_v8 }
 0x17d   : > { %2985 = vmatpush1.bf16.msra.mxu1 %v2938_v28  ;;  %3016 = vmatprep.mubr.bf16.mxu1 %v4391_v61 }
 0x17e   : > { %3055 = vmatprep.subr.bf16.mxu0 %v3047_v11  ;;  %2975 = vmatprep.mubr.bf16.mxu0 %v4391_v61  ;;  %v3147_v26 = vpop.permute.xlu0 %3146  ;;  %v3149_v3 = vpop.permute.xlu1 %3148 }
 0x17f   : > { %3096 = vmatprep.subr.bf16.mxu1 %v3053_v42  ;;  %v3153_v62 = vsel %vm2042_vm13, %v3145_v19, %v3147_v26  ;;  %v3154_v44 = vsel %vm2042_vm13, %v3147_v26, %v3149_v3 }
 0x180   : > { %v3163_v34 = vand.u32 %v3153_v62, %v5350_v8  ;;  %v3166_v54 = vand.u32 %v3154_v44, %v5350_v8 }
 0x182   : > { %v3151_v4 = vpop.permute.xlu0 %3150 }
 0x183   : > { %v3155_v22 = vsel %vm2042_vm13, %v3149_v3, %v3151_v4 }
 0x184   : > { %v3169_v60 = vand.u32 %v3155_v22, %v5350_v8  ;;  %v3143_v31 = vpop.permute.xlu1 %3142 }
 0x185   : > { %v3152_v46 = vsel %vm2042_vm13, %v3143_v31, %v3145_v19  ;;  %v4130_v19 = vld [vmem:[%s5689_s1 + $0x14] sm:$0xf]  ;;  %v4138_v31 = vld [vmem:[%s5689_s1 + $0x18] sm:$0xf] }
 0x186   : > { %v3160_v53 = vand.u32 %v3152_v46, %v5350_v8 }
 0x187   : > { %4115 = vmatmul.mubr.msk.bf16.vlgmr.msra.gmra.mrb[4].mxu0 %vm1698_vm12, %v2774_v51  ;;  %v3410_v43 = vpop.permute.xlu0 %3409 }
 0x188   : > { %4116 = vmatmul.mubr.msk.bf16.vlgmr.msra.gmra.mrb[4].mxu1 %vm1698_vm12, %v2774_v51  ;;  %3056 = vmatpush1.bf16.msra.mxu0 %v3044_v18  ;;  %v3412_v56 = vpop.permute.xlu1 %3411 }
 0x189   : > { %3097 = vmatpush1.bf16.msra.mxu1 %v3050_v50  ;;  %3128 = vmatprep.mubr.bf16.mxu1 %v4391_v61  ;;  %v3418_v48 = vsel %vm2310_vm6, %v3410_v43, %v3412_v56 }
 0x18a   : > { %3171 = vmatprep.subr.bf16.mxu0 %v3163_v34  ;;  %3087 = vmatprep.mubr.bf16.mxu0 %v4391_v61  ;;  %v3428_v24 = vand.u32 %v3418_v48, %v5350_v8 }
 0x18b   : > { %3212 = vmatprep.subr.bf16.mxu1 %v3169_v60  ;;  %v3414_v12 = vpop.permute.xlu0 %3413 }
 0x18c   : > { %v3416_v52 = vpop.permute.xlu1 %3415  ;;  %v3419_v47 = vsel %vm2310_vm6, %v3412_v56, %v3414_v12  ;;  %v4144_v56 = vld [vmem:[%s5689_s1 + $0x20] sm:$0xf] }
 0x18d   : > { %v3420_v39 = vsel %vm2310_vm6, %v3414_v12, %v3416_v52  ;;  %v3431_v21 = vand.u32 %v3419_v47, %v5350_v8 }
 0x18e   : > { %v3434_v45 = vand.u32 %v3420_v39, %v5350_v8 }
 0x18f   : > { %v3408_v33 = vpop.permute.xlu0 %3407 }
 0x190   : > { %v3526_v1 = vpop.permute.xlu1 %3525  ;;  %v3417_v58 = vsel %vm2310_vm6, %v3408_v33, %v3410_v43 }
 0x191   : > { %v3425_v6 = vand.u32 %v3417_v58, %v5350_v8 }
 0x193   : > { %4118 = vmatmul.mubr.msk.bf16.vlgmr.msra.gmra.mrb[4].mxu0 %vm1698_vm12, %v4117_v16 }
 0x194   : > { %4119 = vmatmul.mubr.msk.bf16.vlgmr.msra.gmra.mrb[4].mxu1 %vm1698_vm12, %v4117_v16  ;;  %3172 = vmatpush1.bf16.msra.mxu0 %v3160_v53  ;;  %v3528_v63 = vpop.permute.xlu0 %3527  ;;  %v4141_v16 = vld [vmem:[%s5689_s1 + $0x1c] sm:$0xf] }
 0x195   : > { %3213 = vmatpush1.bf16.msra.mxu1 %v3166_v54  ;;  %3244 = vmatprep.mubr.bf16.mxu1 %v4391_v61  ;;  %v3530_v7 = vpop.permute.xlu1 %3529  ;;  %v3534_v35 = vsel %vm2428_vm2, %v3526_v1, %v3528_v63 }
 0x196   : > { %3203 = vmatprep.mubr.bf16.mxu0 %v4391_v61  ;;  %3293 = vmatprep.subr.bf16.mxu0 %v3285_v0  ;;  %v3544_v28 = vand.u32 %v3534_v35, %v5350_v8  ;;  %v3535_v29 = vsel %vm2428_vm2, %v3528_v63, %v3530_v7 }
 0x197   : > { %3334 = vmatprep.subr.bf16.mxu1 %v3291_v32  ;;  %v3547_v42 = vand.u32 %v3535_v29, %v5350_v8 }
 0x198   : > { %v3532_v27 = vpop.permute.xlu0 %3531 }
 0x199   : > { %v3536_v40 = vsel %vm2428_vm2, %v3530_v7, %v3532_v27  ;;  %v3524_v38 = vpop.permute.xlu1 %3523 }
 0x19a   : > { %v3550_v9 = vand.u32 %v3536_v40, %v5350_v8  ;;  %v3533_v11 = vsel %vm2428_vm2, %v3524_v38, %v3526_v1 }
 0x19b   : > { %v3541_v13 = vand.u32 %v3533_v11, %v5350_v8 }
 0x19c   : > { %v3642_v5 = vpop.permute.xlu0 %3641 }
 0x19d   : > { %v3644_v10 = vpop.permute.xlu1 %3643 }
 0x19e   : > { %v3650_v23 = vsel %vm2546_vm10, %v3642_v5, %v3644_v10 }
 0x19f   : > { %4121 = vmatmul.mubr.msk.bf16.vlgmr.msra.gmra.mrb[4].mxu0 %vm1698_vm12, %v4120_v49  ;;  %v3660_v30 = vand.u32 %v3650_v23, %v5350_v8 }
 0x1a0   : > { %4122 = vmatmul.mubr.msk.bf16.vlgmr.msra.gmra.mrb[4].mxu1 %vm1698_vm12, %v4120_v49  ;;  %3294 = vmatpush1.bf16.msra.mxu0 %v3282_v20 }
 0x1a1   : > { %3335 = vmatpush1.bf16.msra.mxu1 %v3288_v17  ;;  %3366 = vmatprep.mubr.bf16.mxu1 %v4391_v61  ;;  %v3646_v14 = vpop.permute.xlu0 %3645  ;;  %v3648_v36 = vpop.permute.xlu1 %3647 }
 0x1a2   : > { %3436 = vmatprep.subr.bf16.mxu0 %v3428_v24  ;;  %3325 = vmatprep.mubr.bf16.mxu0 %v4391_v61  ;;  %v3652_v26 = vsel %vm2546_vm10, %v3646_v14, %v3648_v36  ;;  %v3651_v3 = vsel %vm2546_vm10, %v3644_v10, %v3646_v14 }
 0x1a3   : > { %3477 = vmatprep.subr.bf16.mxu1 %v3434_v45  ;;  %v3666_v62 = vand.u32 %v3652_v26, %v5350_v8  ;;  %v3663_v60 = vand.u32 %v3651_v3, %v5350_v8 }
 0x1a5   : > { %v3640_v41 = vpop.permute.xlu0 %3639  ;;  %v3758_v51 = vpop.permute.xlu1 %3757 }
 0x1a6   : > { %v3649_v18 = vsel %vm2546_vm10, %v3640_v41, %v3642_v5 }
 0x1a7   : > { %v3657_v59 = vand.u32 %v3649_v18, %v5350_v8 }
 0x1a9   : > { %v3762_v22 = vpop.permute.xlu1 %3761 }
 0x1ab   : > { %4128 = vmatmul.mubr.msk.bf16.vlgmr.msra.gmra.mrb[4].mxu0 %vm1698_vm12, %v4123_v57 }
 0x1ac   : > { %4129 = vmatmul.mubr.msk.bf16.vlgmr.msra.gmra.mrb[4].mxu1 %vm1698_vm12, %v4123_v57  ;;  %3437 = vmatpush1.bf16.msra.mxu0 %v3425_v6 }
 0x1ad   : > { %3478 = vmatpush1.bf16.msra.mxu1 %v3431_v21  ;;  %3509 = vmatprep.mubr.bf16.mxu1 %v4391_v61  ;;  %v3760_v50 = vpop.permute.xlu0 %3759 }
 0x1ae   : > { %3552 = vmatprep.subr.bf16.mxu0 %v3544_v28  ;;  %3468 = vmatprep.mubr.bf16.mxu0 %v4391_v61  ;;  %v3766_v34 = vsel %vm2664_vm5, %v3758_v51, %v3760_v50  ;;  %v3756_v46 = vpop.permute.xlu1 %3755  ;;  %v3767_v25 = vsel %vm2664_vm5, %v3760_v50, %v3762_v22 }
 0x1af   : > { %3593 = vmatprep.subr.bf16.mxu1 %v3550_v9  ;;  %v3776_v2 = vand.u32 %v3766_v34, %v5350_v8  ;;  %v3765_v55 = vsel %vm2664_vm5, %v3756_v46, %v3758_v51  ;;  %v3779_v54 = vand.u32 %v3767_v25, %v5350_v8 }
 0x1b0   : > { %v3773_v53 = vand.u32 %v3765_v55, %v5350_v8 }
 0x1b1   : > { %v3764_v4 = vpop.permute.xlu0 %3763 }
 0x1b2   : > { %v3768_v43 = vsel %vm2664_vm5, %v3762_v22, %v3764_v4 }
 0x1b3   : > { %v3782_v44 = vand.u32 %v3768_v43, %v5350_v8 }
 0x1b7   : > { %4136 = vmatmul.mubr.msk.bf16.vlgmr.msra.gmra.mrb[4].mxu0 %vm1698_vm12, %v4130_v19 }
 0x1b8   : > { %4137 = vmatmul.mubr.msk.bf16.vlgmr.msra.gmra.mrb[4].mxu1 %vm1698_vm12, %v4130_v19  ;;  %3553 = vmatpush1.bf16.msra.mxu0 %v3541_v13 }
 0x1b9   : > { %3594 = vmatpush1.bf16.msra.mxu1 %v3547_v42  ;;  %3625 = vmatprep.mubr.bf16.mxu1 %v4391_v61 }
 0x1ba   : > { %3668 = vmatprep.subr.bf16.mxu0 %v3660_v30  ;;  %3584 = vmatprep.mubr.bf16.mxu0 %v4391_v61 }
 0x1bb   : > { %3709 = vmatprep.subr.bf16.mxu1 %v3666_v62 }
 0x1c3   : > { %4139 = vmatmul.mubr.msk.bf16.vlgmr.msra.gmra.mrb[4].mxu0 %vm1698_vm12, %v4138_v31 }
 0x1c4   : > { %4140 = vmatmul.mubr.msk.bf16.vlgmr.msra.gmra.mrb[4].mxu1 %vm1698_vm12, %v4138_v31  ;;  %3669 = vmatpush1.bf16.msra.mxu0 %v3657_v59 }
 0x1c5   : > { %3710 = vmatpush1.bf16.msra.mxu1 %v3663_v60  ;;  %3741 = vmatprep.mubr.bf16.mxu1 %v4391_v61 }
 0x1c6   : > { %3784 = vmatprep.subr.bf16.mxu0 %v3776_v2  ;;  %3700 = vmatprep.mubr.bf16.mxu0 %v4391_v61 }
 0x1c7   : > { %3825 = vmatprep.subr.bf16.mxu1 %v3782_v44 }
 0x1cf   : > { %4142 = vmatmul.mubr.msk.bf16.vlgmr.msra.gmra.mrb[4].mxu0 %vm1698_vm12, %v4141_v16 }
 0x1d0   : > { %4143 = vmatmul.mubr.msk.bf16.vlgmr.msra.gmra.mrb[4].mxu1 %vm1698_vm12, %v4141_v16  ;;  %3785 = vmatpush1.bf16.msra.mxu0 %v3773_v53 }
 0x1d1   : > { %3826 = vmatpush1.bf16.msra.mxu1 %v3779_v54  ;;  %3857 = vmatprep.mubr.bf16.mxu1 %v4391_v61 }
 0x1d2   : > { %3816 = vmatprep.mubr.bf16.mxu0 %v4391_v61 }
 0x1db   : > { %4145 = vmatmul.mubr.msk.bf16.vlgmr.msra.gmra.mrb[4].mxu0 %vm1698_vm12, %v4144_v56 }
 0x1dc   : > { %4146 = vmatmul.mubr.msk.bf16.vlgmr.msra.gmra.mrb[4].mxu1 %vm1698_vm12, %v4144_v56 }
 0x246   : > { %v2718_v0 = vpop.f32.mrb[0].mxu0 }
 0x247   : > { %v2759_v8 = vpop.f32.mrb[0].mxu1  ;;  %2770 = vst [vmem:[%s142_s8] sm:$0xff] %v2718_v0  ;;  %v2720_v61 = vpop.f32.mrb[1].mxu0 }
 0x248   : > { %2772 = vst [vmem:[%s142_s8 + $0x10] sm:$0xff] %v2759_v8  ;;  %v2761_v12 = vpop.f32.mrb[1].mxu1  ;;  %2771 = vst [vmem:[%s142_s8 + $0x8] sm:$0xff] %v2720_v61  ;;  %v2722_v33 = vpop.f32.mrb[2].mxu0 }
 0x249   : > { %2773 = vst [vmem:[%s142_s8 + $0x18] sm:$0xff] %v2761_v12  ;;  %v2763_v32 = vpop.f32.mrb[2].mxu1  ;;  %v2723_v37 = vpop.f32.mrb[3].mxu0 }
 0x24a   : > { %v2764_v52 = vpop.f32.mrb[3].mxu1 }
 0x2ae   : > { %v3818_v63 = vpop.f32.mrb[4].mxu0 }
 0x2af   : > { %v3859_v15 = vpop.f32.mrb[4].mxu1  ;;  %3870 = vst [vmem:[%s142_s8 + $0x20] sm:$0xff] %v3818_v63  ;;  %v3820_v39 = vpop.f32.mrb[5].mxu0 }
 0x2b0   : > { %3872 = vst [vmem:[%s142_s8 + $0x30] sm:$0xff] %v3859_v15  ;;  %v3861_v48 = vpop.f32.mrb[5].mxu1  ;;  %3871 = vst [vmem:[%s142_s8 + $0x28] sm:$0xff] %v3820_v39  ;;  %v3822_v20 = vpop.f32.mrb[6].mxu0 }
 0x2b1   : > { %3873 = vst [vmem:[%s142_s8 + $0x38] sm:$0xff] %v3861_v48  ;;  %v3863_v49 = vpop.f32.mrb[6].mxu1  ;;  %v3823_v1 = vpop.f32.mrb[7].mxu0 }
 0x2b2   : > { %v3864_v17 = vpop.f32.mrb[7].mxu1 }
 0x2b3 PF: > { %s12_s9 = sadd.s32 1, %s4388_s9  }
 0x2b4   : > { %p9_p4 = scmp.ge.s32.totalorder %s12_s9, 4  }
 0x2b6   :  { %11 = sbr.rel (!%p9_p4) target bundleno = 1 (0x1), region = 66 }

// kernel: mnist_ckan_forward.4
= control target key start
LH: loop header
LB: loop body
LE: loop exit
PB: predicated region body
PF: predicated region fallthrough
CT: control target
= control target key end

     0   :  { %s2126_s9 = smov 0   ;;  %s2128_s10 = smov 0   ;;  %s2983_s0 = inlined_call_operand.vmem [shape: f32[8,512], index: 0, kind: input, shape index: {}]   ;;  %s2984_s1 = inlined_call_operand.vmem [shape: bf16[9,16,72], index: 1, kind: input, shape index: {}]   ;;  %s2985_s2 = inlined_call_operand.vmem [shape: f32[16,512], index: 2, kind: output, shape index: {}]  }
   0x1   :  { %s2130_s11 = smov 0  }
   0x2 LB: > { %s2139_s12 = sadd.s32 4294967295, %s2099_s11   ;;  %s2141_s13 = sadd.s32 1, %s2099_s11   ;;  %s2099_s11 = sphi %s2130_s11, %s3015_s11   ;;  %s2095_s10 = sphi %s2128_s10, %s3014_s10   ;;  %s2091_s9 = sphi %s2126_s9, %s3013_s9  }
   0x3   : > { %s63_s14 = ssub.s32 %s2099_s11, %s2141_s13  ;;  %s66_s15 = sadd.s32 1, %s2095_s10 }
   0x4   : > { %p64_p0 = scmp.eq.s32.totalorder %s63_s14, 0  ;;  %p76_p1 = scmp.ne.s32.totalorder %s2095_s10, %s2091_s9 }
   0x5   : > { %p77_p2 = scmp.eq.s32.totalorder %s2139_s12, 1  ;;  %p1797_p3 = scmp.ge.s32.totalorder %s2099_s11, 1 }
   0x6   : > { %s2149_s16 = scalar_select %p64_p0, %s2095_s10, %s66_s15  }
   0x7   : > { %p2151_p4 = por %p77_p2, %p76_p1  ;;  %p113_p5 = scmp.lt.s32.totalorder %s2099_s11, 3 }
   0x9   : > { %p114_p6 = pnand %p1797_p3, %p113_p5 }
   0xb   : > { %117 = sbr.rel (%p114_p6) target bundleno = 672 (0x2a0), region = 28 }
  0x12   : > { %s1799_s18 = sshll.u32 %s2139_s12, 1  ;;  %v2986_v0 = vmov 0   ;;  %s2102_s23 = smov 127   ;;  %v2988_v18 = vmov 0.0  }
  0x13   : > { %151 = vst [vmem:[#allocation2 + $0xc] sm:$0xf] %v2986_v0  ;;  %152 = vst [vmem:[#allocation2 + $0x1c] sm:$0xf] %v2986_v0  ;;  %p135_p7 = scmp.lt.s32.totalorder %s1799_s18, 3  ;;  %1161 = vmatprep.mubr.bf16.mxu0 %v2986_v0  ;;  %715 = vmatprep.mubr.bf16.mxu1 %v2986_v0  ;;  %s2104_s24 = smov 16  }
  0x14   : > { %142 = vst [vmem:[#allocation2] sm:$0xf] %v2986_v0  ;;  %143 = vst [vmem:[#allocation2 + $0x10] sm:$0xf] %v2986_v0  ;;  %s2105_s25 = smov 17   ;;  %s2106_s28 = smov 113  }
  0x15   : > { %144 = vst [vmem:[#allocation2 + $0x20] sm:$0xf] %v2986_v0  ;;  %145 = vst [vmem:[#allocation2 + $0x30] sm:$0xf] %v2986_v0  ;;  %s3017_s18 = smov (!%p135_p7, %s1799_s18), 3  ;;  %s2107_s29 = smov 15  }
  0x16   : > { %146 = vst [vmem:[#allocation2 + $0x40] sm:$0xf] %v2986_v0  ;;  %147 = vst [vmem:[#allocation2 + $0x50] sm:$0xf] %v2986_v0  ;;  %s1800_s19 = sshll.u32 %s3017_s18, 3  ;;  %s2108_s30 = smov 112  }
  0x17   : > { %148 = vst [vmem:[#allocation2 + $0x60] sm:$0xf] %v2986_v0  ;;  %149 = vst [vmem:[#allocation2 + $0x70] sm:$0xf] %v2986_v0  ;;  %s138_s22 = scalar_lea.vmem %s2983_s0, %s1800_s19  ;;  %s2109_s3 = smov 1  }
  0x18   : > { %150 = vst [vmem:[#allocation2 + $0x80] sm:$0xf] %v2986_v0  ;;  %153 = vst [vmem:[#allocation2 + $0x2c] sm:$0xf] %v2986_v0  ;;  %v2179_v1 = vld [vmem:[%s138_s22] sm:$0xff]  ;;  %v2183_v3 = vld [vmem:[%s138_s22 + $0x8] sm:$0xff] }
  0x19   : > { %154 = vst [vmem:[#allocation2 + $0x3c] sm:$0xf] %v2986_v0  ;;  %155 = vst [vmem:[#allocation2 + $0x4c] sm:$0xf] %v2986_v0  ;;  %v2192_v6 = vadd.f32 1.8, %v2179_v1 }
  0x1a   : > { %156 = vst [vmem:[#allocation2 + $0x5c] sm:$0xf] %v2986_v0  ;;  %157 = vst [vmem:[#allocation2 + $0x6c] sm:$0xf] %v2986_v0  ;;  %v2181_v2 = vld [vmem:[#allocation2 + $0xc] ss:$16 sps:$4 sm:$0xff]  }
  0x1b   : > { %158 = vst [vmem:[#allocation2 + $0x7c] sm:$0xf] %v2986_v0  ;;  %159 = vst [vmem:[#allocation2 + $0x8c] sm:$0xf] %v2986_v0  ;;  %1266 = vrot.lane.b32.xlu1 %v2181_v2, %s2102_s23  ;;  %v2195_v7 = vadd.f32 1.8, %v2183_v3 }
  0x1c   : > { %v2198_v8 = vadd.f32 1.4, %v2179_v1  ;;  %v2201_v9 = vadd.f32 1.4, %v2183_v3  ;;  %v2204_v10 = vadd.f32 1.0, %v2179_v1  ;;  %v2207_v11 = vadd.f32 1.0, %v2183_v3 }
  0x1d   : > { %v2210_v12 = vadd.f32 0.6, %v2179_v1  ;;  %v2215_v13 = vadd.f32 0.6, %v2183_v3  ;;  %v2218_v14 = vadd.f32 0.2, %v2179_v1 }
  0x1e   : > { %v2221_v15 = vadd.f32 0.2, %v2183_v3  ;;  %v2224_v16 = vadd.f32 -0.2, %v2179_v1  ;;  %v2227_v17 = vadd.f32 -0.2, %v2183_v3 }
  0x1f   : > { %vm192_vm0 = vcmp.ge.f32.partialorder %v2192_v6, 0.0  ;;  %vm193_vm1 = vcmp.ge.f32.partialorder %v2195_v7, 0.0  ;;  %vm200_vm2 = vcmp.ge.f32.partialorder %v2198_v8, 0.0  ;;  %vm201_vm3 = vcmp.ge.f32.partialorder %v2201_v9, 0.0  ;;  %s2110_s6 = smov 111   ;;  %s131_s27 = sand.u32 1, %s2091_s9  }
  0x20   : > { %v2187_v4 = vld [vmem:[#allocation2 + $0x2c] ss:$16 sps:$4 sm:$0xff]   ;;  %v2232_v19 = vsel %vm192_vm0, 1.0, %v2988_v18  ;;  %v2235_v20 = vsel %vm193_vm1, 1.0, %v2988_v18  ;;  %v1829_v22 = vsel %vm200_vm2, 1.0, %v2988_v18  ;;  %v1830_v23 = vsel %vm201_vm3, 1.0, %v2988_v18 }
  0x21   : > { %3001 = vst [vmem:[#allocation4_spill] sm:$0xff] %v2187_v4  ;;  %v2189_v5 = vld [vmem:[#allocation2 + $0x4c] ss:$16 sps:$4 sm:$0xff]   ;;  %1272 = vrot.lane.b32.xlu1 %v2187_v4, %s2102_s23  ;;  %vm208_vm4 = vcmp.ge.f32.partialorder %v2204_v10, 0.0  ;;  %vm209_vm5 = vcmp.ge.f32.partialorder %v2207_v11, 0.0  ;;  %v2248_v24 = vsub.f32 %v2232_v19, %v1829_v22  ;;  %v2251_v25 = vsub.f32 %v2235_v20, %v1830_v23  ;;  %s1955_s9 = sshll.u32 (%p2151_p4), %s2139_s12, 4 }
  0x22   : > { %3002 = vst [vmem:[#allocation5_spill] sm:$0xff] %v2189_v5  ;;  %v2239_v21 = vld [vmem:[#allocation2 + $0x6c] ss:$16 sps:$4 sm:$0xff]   ;;  %v1831_v26 = vsel %vm208_vm4, 1.0, %v2988_v18  ;;  %v1832_v27 = vsel %vm209_vm5, 1.0, %v2988_v18  ;;  %vm216_vm6 = vcmp.ge.f32.partialorder %v2210_v12, 0.0  ;;  %s1719_s4 = scalar_lea.vmem (%p2151_p4), %s2985_s2, %s1955_s9 }
  0x23   : > { %3003 = vst [vmem:[#allocation6_spill] sm:$0xff] %v2239_v21  ;;  %v214_v28 = vsub.f32 %v1829_v22, %v1831_v26  ;;  %v215_v29 = vsub.f32 %v1830_v23, %v1832_v27  ;;  %vm217_vm7 = vcmp.ge.f32.partialorder %v2215_v13, 0.0  ;;  %v1833_v30 = vsel %vm216_vm6, 1.0, %v2988_v18 }
  0x24   : > { %v1834_v31 = vsel %vm217_vm7, 1.0, %v2988_v18  ;;  %vm224_vm8 = vcmp.ge.f32.partialorder %v2218_v14, 0.0  ;;  %vm225_vm9 = vcmp.ge.f32.partialorder %v2221_v15, 0.0  ;;  %v222_v32 = vsub.f32 %v1831_v26, %v1833_v30 }
  0x25   : > { %1278 = vrot.lane.b32.xlu1 %v2189_v5, %s2102_s23  ;;  %v223_v33 = vsub.f32 %v1832_v27, %v1834_v31  ;;  %v1835_v34 = vsel %vm224_vm8, 1.0, %v2988_v18  ;;  %v1836_v35 = vsel %vm225_vm9, 1.0, %v2988_v18  ;;  %vm232_vm10 = vcmp.ge.f32.partialorder %v2224_v16, 0.0 }
  0x26   : > { %v230_v36 = vsub.f32 %v1833_v30, %v1835_v34  ;;  %v231_v37 = vsub.f32 %v1834_v31, %v1836_v35  ;;  %vm233_vm11 = vcmp.ge.f32.partialorder %v2227_v17, 0.0  ;;  %v2268_v38 = vsel %vm232_vm10, 1.0, %v2988_v18 }
  0x27   : > { %v2271_v39 = vsel %vm233_vm11, 1.0, %v2988_v18  ;;  %v286_v40 = vmul.f32 %v2192_v6, %v2248_v24  ;;  %v287_v41 = vmul.f32 %v2195_v7, %v2251_v25  ;;  %v2278_v42 = vsub.f32 %v1835_v34, %v2268_v38 }
  0x28   : > { %v2281_v43 = vsub.f32 %v1836_v35, %v2271_v39  ;;  %v288_v44 = vmul.f32 %v2204_v10, %v214_v28  ;;  %v289_v45 = vmul.f32 %v2207_v11, %v215_v29  ;;  %v292_v46 = vmul.f32 %v2198_v8, %v214_v28 }
  0x29   : > { %1284 = vrot.lane.b32.xlu1 %v2239_v21, %s2102_s23  ;;  %v293_v47 = vmul.f32 %v2201_v9, %v215_v29  ;;  %v294_v48 = vmul.f32 %v2210_v12, %v222_v32  ;;  %v295_v49 = vmul.f32 %v2215_v13, %v223_v33  ;;  %v298_v52 = vmul.f32 %v2204_v10, %v222_v32 }
  0x2a   : > { %v2289_v50 = vsub.f32 %v286_v40, %v288_v44  ;;  %v2291_v51 = vsub.f32 %v287_v41, %v289_v45  ;;  %v299_v53 = vmul.f32 %v2207_v11, %v223_v33  ;;  %v300_v56 = vmul.f32 %v2218_v14, %v230_v36 }
  0x2b   : > { %v296_v54 = vsub.f32 %v292_v46, %v294_v48  ;;  %v297_v55 = vsub.f32 %v293_v47, %v295_v49  ;;  %v301_v57 = vmul.f32 %v2221_v15, %v231_v37  ;;  %v304_v58 = vmul.f32 %v2210_v12, %v230_v36 }
  0x2c   : > { %v305_v59 = vmul.f32 %v2215_v13, %v231_v37  ;;  %v306_v60 = vmul.f32 %v2224_v16, %v2278_v42  ;;  %v307_v61 = vmul.f32 %v2227_v17, %v2281_v43  ;;  %v302_v62 = vsub.f32 %v298_v52, %v300_v56 }
  0x2d   : > { %v303_v63 = vsub.f32 %v299_v53, %v301_v57  ;;  %v346_v22 = vmul.f32 %v2192_v6, %v2289_v50  ;;  %v347_v23 = vmul.f32 %v2195_v7, %v2291_v51  ;;  %v348_v28 = vmul.f32 %v2210_v12, %v296_v54 }
  0x2e   : > { %v308_v26 = vsub.f32 %v304_v58, %v306_v60  ;;  %v309_v27 = vsub.f32 %v305_v59, %v307_v61  ;;  %v349_v29 = vmul.f32 %v2215_v13, %v297_v55  ;;  %v352_v30 = vmul.f32 %v2198_v8, %v296_v54 }
  0x2f   : > { %v353_v31 = vmul.f32 %v2201_v9, %v297_v55  ;;  %v354_v32 = vmul.f32 %v2218_v14, %v302_v62  ;;  %v355_v33 = vmul.f32 %v2221_v15, %v303_v63  ;;  %v2313_v34 = vsub.f32 %v346_v22, %v348_v28 }
  0x30   : > { %v2315_v35 = vsub.f32 %v347_v23, %v349_v29  ;;  %v358_v36 = vmul.f32 %v2204_v10, %v302_v62  ;;  %v359_v37 = vmul.f32 %v2207_v11, %v303_v63  ;;  %v360_v44 = vmul.f32 %v2224_v16, %v308_v26 }
  0x31   : > { %v356_v40 = vsub.f32 %v352_v30, %v354_v32  ;;  %v357_v41 = vsub.f32 %v353_v31, %v355_v33  ;;  %v361_v45 = vmul.f32 %v2227_v17, %v309_v27  ;;  %v400_v46 = vmul.f32 %v2192_v6, %v2313_v34 }
  0x32   : > { %v401_v47 = vmul.f32 %v2195_v7, %v2315_v35  ;;  %v2326_v48 = vadd.f32 -0.6, %v2179_v1  ;;  %v2329_v49 = vadd.f32 -0.6, %v2183_v3  ;;  %v362_v52 = vsub.f32 %v358_v36, %v360_v44 }
  0x33   : > { %v363_v53 = vsub.f32 %v359_v37, %v361_v45  ;;  %v402_v54 = vmul.f32 %v2218_v14, %v356_v40  ;;  %v403_v55 = vmul.f32 %v2221_v15, %v357_v41  ;;  %v406_v56 = vmul.f32 %v2198_v8, %v356_v40 }
  0x34   : > { %v407_v57 = vmul.f32 %v2201_v9, %v357_v41  ;;  %v2336_v6 = vadd.f32 -1.0, %v2179_v1  ;;  %v2339_v7 = vadd.f32 -1.0, %v2183_v3  ;;  %v408_v60 = vmul.f32 %v2224_v16, %v362_v52 }
  0x35   : > { %v404_v58 = vsub.f32 %v400_v46, %v402_v54  ;;  %v405_v59 = vsub.f32 %v401_v47, %v403_v55  ;;  %v409_v61 = vmul.f32 %v2227_v17, %v363_v53  ;;  %vm240_vm12 = vcmp.ge.f32.partialorder %v2326_v48, 0.0 }
  0x36   : > { %vm241_vm13 = vcmp.ge.f32.partialorder %v2329_v49, 0.0  ;;  %vm248_vm14 = vcmp.ge.f32.partialorder %v2336_v6, 0.0  ;;  %vm249_vm15 = vcmp.ge.f32.partialorder %v2339_v7, 0.0  ;;  %v410_v62 = vsub.f32 %v406_v56, %v408_v60 }
  0x37   : > { %v411_v63 = vsub.f32 %v407_v57, %v409_v61  ;;  %v1948_v22 = vpack.c.bf16 %v405_v59, %v404_v58  ;;  %v1839_v23 = vsel %vm240_vm12, 1.0, %v2988_v18  ;;  %v1840_v28 = vsel %vm241_vm13, 1.0, %v2988_v18 }
  0x38   : > { %v246_v29 = vsub.f32 %v2268_v38, %v1839_v23  ;;  %v1841_v30 = vsel %vm248_vm14, 1.0, %v2988_v18  ;;  %v1842_v31 = vsel %vm249_vm15, 1.0, %v2988_v18  ;;  %v247_v33 = vsub.f32 %v2271_v39, %v1840_v28 }
  0x39   : > { %480 = vst [vmem:[#allocation2 + $0x24] sm:$0xff] %v1948_v22  ;;  %v1949_v32 = vpack.c.bf16 %v411_v63, %v410_v62  ;;  %v2353_v36 = vsub.f32 %v1839_v23, %v1841_v30  ;;  %v2355_v37 = vsub.f32 %v1840_v28, %v1842_v31  ;;  %v310_v40 = vmul.f32 %v2218_v14, %v2278_v42 }
  0x3a   : > { %v311_v41 = vmul.f32 %v2221_v15, %v2281_v43  ;;  %v312_v38 = vmul.f32 %v2326_v48, %v246_v29  ;;  %v316_v44 = vmul.f32 %v2224_v16, %v246_v29  ;;  %v2363_v45 = vpack.c.bf16 %v410_v62, %v404_v58 }
  0x3b   : > { %489 = vst [vmem:[#allocation2 + $0x34] sm:$0xff] %v1949_v32  ;;  %v2365_v46 = vpack.c.bf16 %v411_v63, %v405_v59  ;;  %v313_v39 = vmul.f32 %v2329_v49, %v247_v33  ;;  %v317_v47 = vmul.f32 %v2227_v17, %v247_v33  ;;  %v318_v42 = vmul.f32 %v2336_v6, %v2353_v36 }
  0x3c   : > { %v314_v54 = vsub.f32 %v310_v40, %v312_v38  ;;  %v319_v43 = vmul.f32 %v2339_v7, %v2355_v37  ;;  %v364_v55 = vmul.f32 %v2210_v12, %v308_v26  ;;  %v365_v57 = vmul.f32 %v2215_v13, %v309_v27 }
  0x3d   : > { %v315_v56 = vsub.f32 %v311_v41, %v313_v39  ;;  %v412_v58 = vmul.f32 %v2204_v10, %v362_v52  ;;  %v413_v59 = vmul.f32 %v2207_v11, %v363_v53  ;;  %v320_v60 = vsub.f32 %v316_v44, %v318_v42 }
  0x3e   : > { %v321_v61 = vsub.f32 %v317_v47, %v319_v43  ;;  %v366_v62 = vmul.f32 %v2326_v48, %v314_v54  ;;  %v370_v63 = vmul.f32 %v2218_v14, %v314_v54  ;;  %v2382_v28 = vadd.f32 -1.4, %v2179_v1 }
  0x3f   : > { %v367_v22 = vmul.f32 %v2329_v49, %v315_v56  ;;  %v371_v23 = vmul.f32 %v2221_v15, %v315_v56  ;;  %v2385_v26 = vadd.f32 -1.4, %v2183_v3  ;;  %v372_v52 = vmul.f32 %v2336_v6, %v320_v60 }
  0x40   : > { %v368_v27 = vsub.f32 %v364_v55, %v366_v62  ;;  %v373_v53 = vmul.f32 %v2339_v7, %v321_v61  ;;  %v2390_v29 = vadd.f32 -1.8, %v2179_v1  ;;  %v2393_v33 = vadd.f32 -1.8, %v2183_v3 }
  0x41   : > { %v369_v32 = vsub.f32 %v365_v57, %v367_v22  ;;  %vm256_vm0 = vcmp.ge.f32.partialorder %v2382_v28, 0.0  ;;  %vm257_vm1 = vcmp.ge.f32.partialorder %v2385_v26, 0.0  ;;  %v374_v41 = vsub.f32 %v370_v63, %v372_v52 }
  0x42   : > { %v2397_v40 = vld [vmem:[#allocation2 + $0x28] ss:$16 sps:$4 sm:$0xff]   ;;  %v375_v38 = vsub.f32 %v371_v23, %v373_v53  ;;  %v414_v44 = vmul.f32 %v2326_v48, %v368_v27  ;;  %v418_v39 = vmul.f32 %v2210_v12, %v368_v27  ;;  %v2401_v47 = vld [vmem:[#allocation2 + $0x24] ss:$16 sps:$4 sm:$0xff]   ;;  %v1843_v43 = vsel %vm256_vm0, 1.0, %v2988_v18 }
  0x43   : > { %3004 = vst [vmem:[#allocation7_spill] sm:$0xff] %v2401_v47  ;;  %v415_v54 = vmul.f32 %v2329_v49, %v369_v32  ;;  %v419_v42 = vmul.f32 %v2215_v13, %v369_v32  ;;  %v1844_v55 = vsel %vm257_vm1, 1.0, %v2988_v18  ;;  %633 = vrot.lane.b32.xlu1 %v2397_v40, %s2104_s24  ;;  %v420_v57 = vmul.f32 %v2336_v6, %v374_v41 }
  0x44   : > { %v416_v56 = vsub.f32 %v412_v58, %v414_v44  ;;  %v421_v62 = vmul.f32 %v2339_v7, %v375_v38  ;;  %v262_v63 = vsub.f32 %v1841_v30, %v1843_v43  ;;  %631 = vrot.lane.b32.xlu0 %v2401_v47, %s2104_s24  ;;  %v263_v23 = vsub.f32 %v1842_v31, %v1844_v55 }
  0x45   : > { %v2413_v22 = vsub.f32 %v413_v59, %v415_v54  ;;  %vm264_vm2 = vcmp.ge.f32.partialorder %v2390_v29, 0.0  ;;  %vm265_vm3 = vcmp.ge.f32.partialorder %v2393_v33, 0.0  ;;  %v422_v27 = vsub.f32 %v418_v39, %v420_v57 }
  0x46   : > { %v2417_v52 = vsub.f32 %v419_v42, %v421_v62  ;;  %v2420_v58 = vsel %vm264_vm2, 1.0, %v2988_v18  ;;  %v2423_v53 = vsel %vm265_vm3, 1.0, %v2988_v18  ;;  %v322_v31 = vmul.f32 %v2326_v48, %v2353_v36 }
  0x47   : > { %v1950_v30 = vpack.c.bf16 %v2413_v22, %v416_v56  ;;  %v270_v32 = vsub.f32 %v1843_v43, %v2420_v58  ;;  %v271_v59 = vsub.f32 %v1844_v55, %v2423_v53  ;;  %1268 = vrot.lane.b32.xlu1 %v2363_v45, %s2102_s23  ;;  %v323_v39 = vmul.f32 %v2329_v49, %v2355_v37  ;;  %v2439_v43 = vld [vmem:[#allocation2 + $0x20] ss:$16 sps:$4 sm:$0xff]  }
  0x48   : > { %v1951_v44 = vpack.c.bf16 %v2417_v52, %v422_v27  ;;  %v324_v54 = vmul.f32 %v2382_v28, %v262_v63  ;;  %v325_v42 = vmul.f32 %v2385_v26, %v263_v23  ;;  %1270 = vrot.lane.b32.xlu0 %v2365_v46, %s2102_s23  ;;  %3005 = vst [vmem:[#allocation8_spill] sm:$0xff] %v2439_v43  ;;  %vm676_vm8 = vcmask 1043456  }
  0x49   : > { %498 = vst [vmem:[#allocation2 + $0x44] sm:$0xff] %v1950_v30  ;;  %v328_v36 = vmul.f32 %v2336_v6, %v262_v63  ;;  %v329_v55 = vmul.f32 %v2339_v7, %v263_v23  ;;  %v330_v57 = vmul.f32 %v2390_v29, %v270_v32  ;;  %v331_v62 = vmul.f32 %v2393_v33, %v271_v59 }
  0x4a   : > { %507 = vst [vmem:[#allocation2 + $0x54] sm:$0xff] %v1951_v44  ;;  %v326_v37 = vsub.f32 %v322_v31, %v324_v54  ;;  %v327_v0 = vsub.f32 %v323_v39, %v325_v42  ;;  %v376_v18 = vmul.f32 %v2224_v16, %v320_v60  ;;  %v377_v47 = vmul.f32 %v2227_v17, %v321_v61 }
  0x4b   : > { %v332_v21 = vsub.f32 %v328_v36, %v330_v57  ;;  %v333_v5 = vsub.f32 %v329_v55, %v331_v62  ;;  %v424_v60 = vmul.f32 %v2218_v14, %v374_v41  ;;  %v425_v39 = vmul.f32 %v2221_v15, %v375_v38 }
  0x4c   : > { %v378_v30 = vmul.f32 %v2382_v28, %v326_v37  ;;  %v379_v4 = vmul.f32 %v2385_v26, %v327_v0  ;;  %v382_v63 = vmul.f32 %v2326_v48, %v326_v37  ;;  %v383_v23 = vmul.f32 %v2329_v49, %v327_v0  ;;  %629 = vrot.lane.b32.xlu0 %v2439_v43, %s2104_s24 }
  0x4d   : > { %v384_v31 = vmul.f32 %v2390_v29, %v332_v21  ;;  %v385_v44 = vmul.f32 %v2393_v33, %v333_v5  ;;  %v1823_v42 = vadd.f32 -2.2, %v2179_v1  ;;  %v2459_v36 = vadd.f32 -2.2, %v2183_v3 }
  0x4e   : > { %v380_v61 = vsub.f32 %v376_v18, %v378_v30  ;;  %v381_v54 = vsub.f32 %v377_v47, %v379_v4  ;;  %v2461_v55 = vpack.c.bf16 %v422_v27, %v416_v56  ;;  %v334_v41 = vmul.f32 %v2382_v28, %v270_v32 }
  0x4f   : > { %v386_v0 = vsub.f32 %v382_v63, %v384_v31  ;;  %v387_v57 = vsub.f32 %v383_v23, %v385_v44  ;;  %vm272_vm4 = vcmp.ge.f32.partialorder %v1823_v42, 0.0  ;;  %vm273_vm5 = vcmp.ge.f32.partialorder %v2459_v36, 0.0 }
  0x50   : > { %v426_v62 = vmul.f32 %v2382_v28, %v380_v61  ;;  %v427_v37 = vmul.f32 %v2385_v26, %v381_v54  ;;  %v430_v43 = vmul.f32 %v2224_v16, %v380_v61  ;;  %v431_v14 = vmul.f32 %v2227_v17, %v381_v54 }
  0x51   : > { %v2467_v15 = vld [vmem:[#allocation2 + $0x48] ss:$16 sps:$4 sm:$0xff]   ;;  %v432_v4 = vmul.f32 %v2390_v29, %v386_v0  ;;  %v433_v18 = vmul.f32 %v2393_v33, %v387_v57  ;;  %v2472_v38 = vld [vmem:[#allocation2 + $0x44] ss:$16 sps:$4 sm:$0xff]   ;;  %v3006_v27 = vmov 0.0   ;;  %v2487_v32 = vpack.c.bf16 %v2417_v52, %v2413_v22 }
  0x52   : > { %v428_v47 = vsub.f32 %v424_v60, %v426_v62  ;;  %v2474_v56 = vsub.f32 %v425_v39, %v427_v37  ;;  %v1847_v16 = vsel %vm272_vm4, 1.0, %v3006_v27  ;;  %639 = vrot.lane.b32.xlu1 %v2467_v15, %s2104_s24  ;;  %v1848_v29 = vsel %vm273_vm5, 1.0, %v3006_v27  ;;  %637 = vrot.lane.b32.xlu0 %v2472_v38, %s2104_s24 }
  0x53   : > { %v434_v17 = vsub.f32 %v430_v43, %v432_v4  ;;  %v435_v30 = vsub.f32 %v431_v14, %v433_v18  ;;  %v278_v33 = vsub.f32 %v2420_v58, %v1847_v16  ;;  %v279_v63 = vsub.f32 %v2423_v53, %v1848_v29 }
  0x54   : > { %v1952_v28 = vpack.c.bf16 %v2474_v56, %v428_v47  ;;  %v335_v23 = vmul.f32 %v2385_v26, %v271_v59  ;;  %v1801_v44 = vadd.f32 2.2, %v2179_v1  ;;  %v1802_v60 = vadd.f32 2.2, %v2183_v3  ;;  %v2499_v26 = vld [vmem:[#allocation2 + $0x40] ss:$16 sps:$4 sm:$0xff]  }
  0x55   : > { %v1953_v31 = vpack.c.bf16 %v435_v30, %v434_v17  ;;  %v336_v43 = vmul.f32 %v1823_v42, %v278_v33  ;;  %v337_v58 = vmul.f32 %v2459_v36, %v279_v63  ;;  %v388_v22 = vmul.f32 %v2336_v6, %v332_v21 }
  0x56   : > { %516 = vst [vmem:[#allocation2 + $0x64] sm:$0xff] %v1952_v28  ;;  %1274 = vrot.lane.b32.xlu1 %v2461_v55, %s2102_s23  ;;  %vm186_vm6 = vcmp.ge.f32.partialorder %v1801_v44, 0.0  ;;  %1276 = vrot.lane.b32.xlu0 %v2487_v32, %s2102_s23  ;;  %v389_v53 = vmul.f32 %v2339_v7, %v333_v5  ;;  %vm187_vm7 = vcmp.ge.f32.partialorder %v1802_v60, 0.0  ;;  %v282_v21 = vmul.f32 %v2198_v8, %v2248_v24 }
  0x57   : > { %525 = vst [vmem:[#allocation2 + $0x74] sm:$0xff] %v1953_v31  ;;  %v338_v39 = vsub.f32 %v334_v41, %v336_v43  ;;  %v339_v52 = vsub.f32 %v335_v23, %v337_v58  ;;  %v1825_v59 = vsel %vm186_vm6, 1.0, %v3006_v27  ;;  %v1826_v54 = vsel %vm187_vm7, 1.0, %v3006_v27 }
  0x58   : > { %v198_v62 = vsub.f32 %v1825_v59, %v2232_v19  ;;  %v436_v37 = vmul.f32 %v2326_v48, %v386_v0  ;;  %v199_v14 = vsub.f32 %v1826_v54, %v2235_v20  ;;  %v283_v5 = vmul.f32 %v2201_v9, %v2251_v25 }
  0x59   : > { %v390_v61 = vmul.f32 %v1823_v42, %v338_v39  ;;  %v391_v6 = vmul.f32 %v2459_v36, %v339_v52  ;;  %v442_v18 = vsub.f32 0.0, %v2179_v1  ;;  %v443_v41 = vsub.f32 0.0, %v2183_v3 }
  0x5a   : > { %v280_v4 = vmul.f32 %v1801_v44, %v198_v62  ;;  %635 = vrot.lane.b32.xlu0 %v2499_v26, %s2104_s24  ;;  %v437_v8 = vmul.f32 %v2329_v49, %v387_v57  ;;  %v281_v24 = vmul.f32 %v1802_v60, %v199_v14  ;;  %v342_v20 = vmul.f32 %v2204_v10, %v2289_v50 }
  0x5b   : > { %v392_v7 = vsub.f32 %v388_v22, %v390_v61  ;;  %v393_v19 = vsub.f32 %v389_v53, %v391_v6  ;;  %v444_v0 = vmul.f32 1.442695, %v442_v18  ;;  %v343_v29 = vmul.f32 %v2207_v11, %v2291_v51  ;;  %v2580_v6 = vld [vmem:[#allocation2 + $0x8c] ss:$0 sps:$4 sm:$0xff]  }
  0x5c   : > { %v284_v48 = vsub.f32 %v280_v4, %v282_v21  ;;  %v285_v16 = vsub.f32 %v281_v24, %v283_v5  ;;  %v446_v49 = vmul.f32 1.442695, %v443_v41  ;;  %v396_v51 = vmul.f32 %v2210_v12, %v2313_v34  ;;  %v2046_v4 = vld [vmem:[%s2984_s1 + $0x20] sm:$0xff]   ;;  %v3008_v41 = vld [vmem:[#allocation4_spill] sm:$0xff] }
  0x5d   : > { %v438_v27 = vmul.f32 %v1823_v42, %v392_v7  ;;  %v439_v25 = vmul.f32 %v2459_v36, %v393_v19  ;;  %2055 = vpow2.f32 %v444_v0  ;;  %v2528_v42 = vpack.c.bf16 %v434_v17, %v428_v47  ;;  %v3009_v19 = vld [vmem:[#allocation7_spill] sm:$0xff]  ;;  %v3011_v24 = vld [vmem:[#allocation8_spill] sm:$0xff] }
  0x5e   : > { %v2519_v9 = vld [vmem:[#allocation2 + $0x68] ss:$16 sps:$4 sm:$0xff]   ;;  %v2524_v28 = vld [vmem:[#allocation2 + $0x64] ss:$16 sps:$4 sm:$0xff]   ;;  %v340_v63 = vmul.f32 %v1801_v44, %v284_v48  ;;  %v341_v50 = vmul.f32 %v1802_v60, %v285_v16  ;;  %v2533_v36 = vpack.c.bf16 %v435_v30, %v2474_v56  ;;  %2057 = vpow2.f32 %v446_v49  ;;  %v2543_v30 = vld [vmem:[#allocation2 + $0x60] ss:$16 sps:$4 sm:$0xff]  }
  0x5f   : > { %v440_v33 = vsub.f32 %v436_v37, %v438_v27  ;;  %645 = vrot.lane.b32.xlu1 %v2519_v9, %s2104_s24  ;;  %v441_v10 = vsub.f32 %v437_v8, %v439_v25  ;;  %643 = vrot.lane.b32.xlu0 %v2524_v28, %s2104_s24  ;;  %v397_v31 = vmul.f32 %v2215_v13, %v2315_v35  ;;  %v2586_v37 = vld [vmem:[#allocation2] ss:$16 sps:$4 sm:$0xff]   ;;  %vm672_vm9 = vcmask 588800   ;;  %v3010_v8 = vld [vmem:[#allocation5_spill] sm:$0xff] }
  0x60   : > { %v344_v11 = vsub.f32 %v340_v63, %v342_v20  ;;  %v345_v23 = vsub.f32 %v341_v50, %v343_v29  ;;  %v3007_v18 = vmov 0   ;;  %v3012_v20 = vld [vmem:[#allocation6_spill] sm:$0xff]  ;;  %vm1292_vm10 = vcmask 1039360  }
  0x61   : > { %v1954_v57 = vpack.c.bf16 %v441_v10, %v440_v33  ;;  %v2590_v14 = vpack.c.bf16 %v441_v10, %v441_v10  ;;  %vm653_vm11 = vcmask 130048   ;;  %vm1405_vm12 = vcmask 924672  }
  0x62   : > { %v394_v47 = vmul.f32 %v1801_v44, %v344_v11  ;;  %v395_v17 = vmul.f32 %v1802_v60, %v345_v23  ;;  %vm761_vm13 = vcmask 138240   ;;  %vm870_vm14 = vcmask 121856  }
  0x63   : > { %1280 = vrot.lane.b32.xlu1 %v2528_v42, %s2102_s23  ;;  %534 = vst [vmem:[#allocation2 + $0x84] sm:$0xff] %v1954_v57  ;;  %1282 = vrot.lane.b32.xlu0 %v2533_v36, %s2102_s23  ;;  %vm1518_vm15 = vcmask 916480   ;;  %vm983_vm0 = vcmask 7168   ;;  %vm1631_vm1 = vcmask 908288  }
  0x64   : > { %v398_v56 = vsub.f32 %v394_v47, %v396_v51  ;;  %v399_v43 = vsub.f32 %v395_v17, %v397_v31 }
  0x66   : > { %v1947_v12 = vpack.c.bf16 %v399_v43, %v398_v56 }
  0x67   : > { %v2056_v34 = vpop.eup %2055  ;;  %641 = vrot.lane.b32.xlu0 %v2543_v30, %s2104_s24 }
  0x68   : > { %v448_v58 = vadd.f32 1.0, %v2056_v34  ;;  %471 = vst [vmem:[#allocation2 + $0x14] sm:$0xff] %v1947_v12  ;;  %v2058_v13 = vpop.eup %2057 }
  0x69   : > { %v449_v39 = vadd.f32 1.0, %v2058_v13 }
  0x6a   : > { %v553_v35 = vld [vmem:[#allocation2 + $0x80] sm:$0xff]  ;;  %2059 = vrcp.f32 %v448_v58  ;;  %v2599_v7 = vld [vmem:[#allocation2 + $0x88] ss:$0 sps:$4 sm:$0xff]  }
  0x6b   : > { %v2547_v44 = vcombine.high %v553_v35, %v553_v35  ;;  %v2549_v60 = vcombine.low %v553_v35, %v553_v35  ;;  %2061 = vrcp.f32 %v449_v39 }
  0x6d   : > { %649 = vrot.lane.b32.xlu1 %v2547_v44, %s2104_s24  ;;  %647 = vrot.lane.b32.xlu0 %v2549_v60, %s2104_s24 }
  0x74   : > { %v2060_v22 = vpop.eup %2059 }
  0x75   : > { %v452_v52 = vmul.f32 %v2060_v22, %v2179_v1  ;;  %v2062_v53 = vpop.eup %2061  ;;  %v2568_v1 = vpack.c.bf16 %v440_v33, %v440_v33 }
  0x76   : > { %v453_v59 = vmul.f32 %v2062_v53, %v2183_v3 }
  0x77   : > { %v2559_v62 = vpack.c.bf16 %v398_v56, %v452_v52  ;;  %v1124_v5 = vsel %vm676_vm8, %v2568_v1, 0 }
  0x78   : > { %v1946_v61 = vpack.c.bf16 %v453_v59, %v452_v52  ;;  %v2557_v54 = vpack.c.bf16 %v399_v43, %v453_v59 }
  0x7a   : > { %462 = vst [vmem:[#allocation2 + $0x4] sm:$0xff] %v1946_v61  ;;  %1264 = vrot.lane.b32.xlu1 %v2557_v54, %s2102_s23  ;;  %1129 = vmatprep.subr.bf16.mxu0 %v2557_v54 }
  0x7b   : > { %1130 = vmatpush1.bf16.msra.mxu0 %v2559_v62 }
  0x7c   : > { %1131 = vmatprep.subr.bf16.mxu0 %v2365_v46 }
  0x7e   : > { %1262 = vrot.lane.b32.xlu1 %v2559_v62, %s2102_s23 }
  0x7f   : > { %1132 = vmatpush1.bf16.msra.mxu0 %v2363_v45 }
  0x80   : > { %1133 = vmatprep.subr.bf16.mxu0 %v2487_v32 }
  0x81   : > { %v2570_v3 = vld [vmem:[#allocation2 + $0x4] ss:$16 sps:$4 sm:$0xff]   ;;  %v2576_v21 = vld [vmem:[#allocation2 + $0x8] ss:$16 sps:$4 sm:$0xff]  }
  0x82   : > { %625 = vrot.lane.b32.xlu0 %v2570_v3, %s2104_s24  ;;  %1286 = vrot.lane.b32.xlu1 %v2568_v1, %s2102_s23 }
  0x83   : > { %1134 = vmatpush1.bf16.msra.mxu0 %v2461_v55 }
  0x84   : > { %1135 = vmatprep.subr.bf16.mxu0 %v2533_v36 }
  0x86   : > { %627 = vrot.lane.b32.xlu0 %v2576_v21, %s2104_s24  ;;  %1290 = vrot.lane.b32.xlu1 %v2580_v6, %s2102_s23 }
  0x87   : > { %1136 = vmatpush1.bf16.msra.mxu0 %v2528_v42 }
  0x88   : > { %1904 = vmatprep.subr.msk.bf16.mxu0 %vm676_vm8, %v2590_v14 }
  0x8a   : > { %623 = vrot.lane.b32.xlu0 %v2586_v37, %s2104_s24  ;;  %735 = vrot.lane.b32.xlu1 %v2576_v21, %s2105_s25 }
  0x8b   : > { %1138 = vmatpush1.bf16.msra.mxu0 %v1124_v5 }
  0x8d   : > { %v1267_v27 = vpop.permute.xlu1 %1266 }
  0x8e   : > { %651 = vrot.lane.b32.xlu0 %v2599_v7, %s2104_s24  ;;  %1379 = vrot.lane.b32.xlu1 %v2181_v2, %s2106_s28 }
  0x8f   : > { %1905 = vmatmul.mubr.msk.bf16.vlgmr.msra.gmra.mrb[0].mxu0 %vm672_vm9, %v2046_v4 }
  0x90   : > { %1352 = vmatprep.mubr.bf16.mxu0 %v3007_v18 }
  0x92   : > { %1288 = vrot.lane.b32.xlu0 %v2590_v14, %s2102_s23  ;;  %1375 = vrot.lane.b32.xlu1 %v2559_v62, %s2106_s28 }
  0x93   : > { %v2644_v48 = vpop.permute.xlu1 %1272 }
  0x96   : > { %733 = vrot.lane.b32.xlu0 %v2570_v3, %s2105_s25  ;;  %741 = vrot.lane.b32.xlu1 %v2397_v40, %s2105_s25 }
  0x97   : > { %v2654_v0 = vpop.permute.xlu1 %1278 }
  0x9a   : > { %1377 = vrot.lane.b32.xlu0 %v2557_v54, %s2106_s28  ;;  %1385 = vrot.lane.b32.xlu1 %v3008_v41, %s2106_s28 }
  0x9b   : > { %v2662_v16 = vpop.permute.xlu1 %1284 }
  0x9e   : > { %731 = vrot.lane.b32.xlu0 %v2586_v37, %s2105_s25  ;;  %1381 = vrot.lane.b32.xlu1 %v2363_v45, %s2106_s28 }
  0xa2   : > { %739 = vrot.lane.b32.xlu0 %v3009_v19, %s2105_s25  ;;  %747 = vrot.lane.b32.xlu1 %v2467_v15, %s2105_s25 }
  0xa6   : > { %1383 = vrot.lane.b32.xlu0 %v2365_v46, %s2106_s28  ;;  %1391 = vrot.lane.b32.xlu1 %v3010_v8, %s2106_s28 }
  0xaa   : > { %737 = vrot.lane.b32.xlu0 %v3011_v24, %s2105_s25  ;;  %1387 = vrot.lane.b32.xlu1 %v2461_v55, %s2106_s28 }
  0xae   : > { %745 = vrot.lane.b32.xlu0 %v2472_v38, %s2105_s25  ;;  %753 = vrot.lane.b32.xlu1 %v2519_v9, %s2105_s25 }
  0xb2   : > { %1389 = vrot.lane.b32.xlu0 %v2487_v32, %s2106_s28  ;;  %1397 = vrot.lane.b32.xlu1 %v3012_v20, %s2106_s28 }
  0xb5   : > { %v2672_v33 = vpop.permute.xlu1 %633 }
  0xb6   : > { %743 = vrot.lane.b32.xlu0 %v2499_v26, %s2105_s25  ;;  %1393 = vrot.lane.b32.xlu1 %v2528_v42, %s2106_s28  ;;  %v2656_v25 = vpop.permute.xlu0 %631 }
  0xb9   : > { %v1269_v49 = vpop.permute.xlu1 %1268 }
  0xba   : > { %751 = vrot.lane.b32.xlu0 %v2524_v28, %s2105_s25  ;;  %757 = vrot.lane.b32.xlu1 %v2547_v44, %s2105_s25  ;;  %v1271_v29 = vpop.permute.xlu0 %1270 }
  0xbb   : > { %v1296_v35 = vsel %vm1292_vm10, %v1271_v29, %v2644_v48  ;;  %v1295_v52 = vsel %vm1292_vm10, %v1269_v49, %v1271_v29 }
  0xbe   : > { %1395 = vrot.lane.b32.xlu0 %v2533_v36, %s2106_s28  ;;  %1399 = vrot.lane.b32.xlu1 %v2568_v1, %s2106_s28  ;;  %v2674_v63 = vpop.permute.xlu0 %629 }
  0xbf   : > { %v656_v29 = vsel %vm653_vm11, %v2674_v63, %v2656_v25 }
  0xc2   : > { %749 = vrot.lane.b32.xlu0 %v2543_v30, %s2105_s25  ;;  %1403 = vrot.lane.b32.xlu1 %v2580_v6, %s2106_s28 }
  0xc4   : > { %v2682_v10 = vpop.permute.xlu0 %637  ;;  %v2688_v50 = vpop.permute.xlu1 %639 }
  0xc6   : > { %755 = vrot.lane.b32.xlu0 %v2549_v60, %s2105_s25  ;;  %844 = vrot.lane.b32.xlu1 %v2576_v21, %s2107_s29 }
  0xc8   : > { %v1277_v11 = vpop.permute.xlu0 %1276  ;;  %v1275_v51 = vpop.permute.xlu1 %1274 }
  0xc9   : > { %v1298_v53 = vsel %vm1292_vm10, %v1277_v11, %v2654_v0  ;;  %v1297_v4 = vsel %vm1292_vm10, %v1275_v51, %v1277_v11  ;;  %v657_v0 = vsel %vm653_vm11, %v2656_v25, %v2672_v33  ;;  %v659_v11 = vsel %vm653_vm11, %v2682_v10, %v2688_v50 }
  0xca   : > { %759 = vrot.lane.b32.xlu0 %v2599_v7, %s2105_s25  ;;  %1492 = vrot.lane.b32.xlu1 %v2181_v2, %s2108_s30 }
  0xcc   : > { %v2698_v2 = vpop.permute.xlu0 %635 }
  0xcd   : > { %v658_v25 = vsel %vm653_vm11, %v2698_v2, %v2682_v10  ;;  %v2063_v2 = vld [vmem:[#allocation2 + $0xc] ss:$16 sps:$4 sm:$0xff]  }
  0xce   : > { %1401 = vrot.lane.b32.xlu0 %v2590_v14, %s2106_s28  ;;  %1488 = vrot.lane.b32.xlu1 %v2559_v62, %s2108_s30  ;;  %s1798_s28 = sshll.u32 %s131_s27, 5 }
  0xd1   : > { %v2704_v57 = vpop.permute.xlu1 %645  ;;  %v2708_v23 = vpop.permute.xlu0 %643 }
  0xd2   : > { %842 = vrot.lane.b32.xlu0 %v2570_v3, %s2107_s29  ;;  %850 = vrot.lane.b32.xlu1 %v2397_v40, %s2107_s29  ;;  %v661_v50 = vsel %vm653_vm11, %v2708_v23, %v2704_v57 }
  0xd5   : > { %v1281_v31 = vpop.permute.xlu1 %1280  ;;  %v1283_v47 = vpop.permute.xlu0 %1282 }
  0xd6   : > { %1490 = vrot.lane.b32.xlu0 %v2557_v54, %s2108_s30  ;;  %1498 = vrot.lane.b32.xlu1 %v3008_v41, %s2108_s30  ;;  %v1300_v41 = vsel %vm1292_vm10, %v1283_v47, %v2662_v16 }
  0xd9   : > { %v2724_v56 = vpop.permute.xlu0 %641 }
  0xda   : > { %840 = vrot.lane.b32.xlu0 %v2586_v37, %s2107_s29  ;;  %1494 = vrot.lane.b32.xlu1 %v2363_v45, %s2108_s30 }
  0xde   : > { %848 = vrot.lane.b32.xlu0 %v3009_v19, %s2107_s29  ;;  %856 = vrot.lane.b32.xlu1 %v2467_v15, %s2107_s29 }
  0xdf   : > { %v2720_v17 = vpop.permute.xlu1 %649  ;;  %v2733_v34 = vpop.permute.xlu0 %647 }
  0xe0   : > { %v662_v57 = vsel %vm653_vm11, %v2733_v34, %v2720_v17  ;;  %v2048_v34 = vld [vmem:[%s2984_s1 + $0x8] sm:$0xff]  }
  0xe2   : > { %1496 = vrot.lane.b32.xlu0 %v2365_v46, %s2108_s30  ;;  %1504 = vrot.lane.b32.xlu1 %v3010_v8, %s2108_s30 }
  0xe6   : > { %846 = vrot.lane.b32.xlu0 %v3011_v24, %s2107_s29  ;;  %1500 = vrot.lane.b32.xlu1 %v2461_v55, %s2108_s30 }
  0xea   : > { %854 = vrot.lane.b32.xlu0 %v2472_v38, %s2107_s29  ;;  %862 = vrot.lane.b32.xlu1 %v2519_v9, %s2107_s29 }
  0xec   : > { %v1265_v43 = vpop.permute.xlu1 %1264 }
  0xed   : > { %v1294_v12 = vsel %vm1292_vm10, %v1265_v43, %v1267_v27 }
  0xee   : > { %1502 = vrot.lane.b32.xlu0 %v2487_v32, %s2108_s30  ;;  %1320 = vmatprep.subr.bf16.mxu0 %v1294_v12 }
  0xef   : > { %1510 = vrot.lane.b32.xlu1 %v3012_v20, %s2108_s30  ;;  %v1299_v20 = vsel %vm1292_vm10, %v1281_v31, %v1283_v47 }
  0xf0   : > { %v1263_v58 = vpop.permute.xlu1 %1262 }
  0xf1   : > { %v1293_v13 = vsel %vm1292_vm10, %v1263_v58, %v1265_v43  ;;  %v660_v43 = vsel %vm653_vm11, %v2724_v56, %v2708_v23 }
  0xf2   : > { %852 = vrot.lane.b32.xlu0 %v2499_v26, %s2107_s29  ;;  %1321 = vmatpush1.bf16.msra.mxu0 %v1293_v13 }
  0xf3   : > { %1506 = vrot.lane.b32.xlu1 %v2528_v42, %s2108_s30  ;;  %1322 = vmatprep.subr.bf16.mxu0 %v1296_v35 }
  0xf4   : > { %v626_v39 = vpop.permute.xlu0 %625  ;;  %v1287_v22 = vpop.permute.xlu1 %1286 }
  0xf6   : > { %860 = vrot.lane.b32.xlu0 %v2524_v28, %s2107_s29  ;;  %1323 = vmatpush1.bf16.msra.mxu0 %v1295_v52 }
  0xf7   : > { %866 = vrot.lane.b32.xlu1 %v2547_v44, %s2107_s29  ;;  %1324 = vmatprep.subr.bf16.mxu0 %v1298_v53  ;;  %v2064_v53 = vld [vmem:[#allocation2 + $0x2c] ss:$16 sps:$4 sm:$0xff]  }
  0xf8   : > { %v628_v59 = vpop.permute.xlu0 %627  ;;  %v1291_v5 = vpop.permute.xlu1 %1290 }
  0xf9   : > { %v655_v61 = vsel %vm653_vm11, %v626_v39, %v628_v59 }
  0xfa   : > { %683 = vmatprep.subr.bf16.mxu1 %v655_v61  ;;  %1508 = vrot.lane.b32.xlu0 %v2533_v36, %s2108_s30 }
  0xfb   : > { %1325 = vmatpush1.bf16.msra.mxu0 %v1297_v4  ;;  %1512 = vrot.lane.b32.xlu1 %v2568_v1, %s2108_s30 }
  0xfc   : > { %1326 = vmatprep.subr.bf16.mxu0 %v1300_v41  ;;  %v624_v8 = vpop.permute.xlu0 %623  ;;  %v736_v48 = vpop.permute.xlu1 %735 }
  0xfd   : > { %v654_v27 = vsel %vm653_vm11, %v624_v8, %v626_v39 }
  0xfe   : > { %858 = vrot.lane.b32.xlu0 %v2543_v30, %s2107_s29  ;;  %684 = vmatpush1.bf16.msra.mxu1 %v654_v27  ;;  %v2065_v27 = vld [vmem:[#allocation2 + $0x4c] ss:$16 sps:$4 sm:$0xff]  }
  0xff   : > { %1327 = vmatpush1.bf16.msra.mxu0 %v1299_v20  ;;  %685 = vmatprep.subr.bf16.mxu1 %v657_v0 }
 0x100   : > { %v652_v16 = vpop.permute.xlu0 %651  ;;  %1516 = vrot.lane.b32.xlu1 %v2580_v6, %s2108_s30  ;;  %v1380_v49 = vpop.permute.xlu1 %1379 }
 0x101   : > { %v663_v58 = vsel %vm653_vm11, %v2720_v17, %v652_v16  ;;  %v678_v17 = vsel %vm676_vm8, %v662_v57, 0 }
 0x102   : > { %864 = vrot.lane.b32.xlu0 %v2549_v60, %s2107_s29  ;;  %686 = vmatpush1.bf16.msra.mxu1 %v656_v29 }
 0x103   : > { %687 = vmatprep.subr.bf16.mxu1 %v659_v11 }
 0x104   : > { %v1289_v33 = vpop.permute.xlu0 %1288  ;;  %957 = vrot.lane.b32.xlu1 %v2576_v21, %s2109_s3  ;;  %v1376_v63 = vpop.permute.xlu1 %1375  ;;  %v2047_v21 = vld [vmem:[%s2984_s1 + $0x28] sm:$0xff]  }
 0x105   : > { %v1301_v51 = vsel %vm1292_vm10, %v1287_v22, %v1289_v33  ;;  %v1302_v31 = vsel %vm1292_vm10, %v1289_v33, %v1291_v5 }
 0x106   : > { %v1315_v47 = vsel %vm676_vm8, %v1301_v51, 0  ;;  %868 = vrot.lane.b32.xlu0 %v2599_v7, %s2107_s29  ;;  %688 = vmatpush1.bf16.msra.mxu1 %v658_v25  ;;  %s133_s29 = scalar_lea.vmem [#allocation3], %s1798_s28 }
 0x107   : > { %1924 = vmatprep.subr.msk.bf16.mxu0 %vm676_vm8, %v1302_v31  ;;  %689 = vmatprep.subr.bf16.mxu1 %v661_v50 }
 0x108   : > { %1329 = vmatpush1.bf16.msra.mxu0 %v1315_v47  ;;  %v734_v10 = vpop.permute.xlu0 %733  ;;  %1605 = vrot.lane.b32.xlu1 %v2063_v2, %s2110_s6  ;;  %v742_v12 = vpop.permute.xlu1 %741 }
 0x109   : > { %v763_v39 = vsel %vm761_vm13, %v734_v10, %v736_v48 }
 0x10a   : > { %1514 = vrot.lane.b32.xlu0 %v2590_v14, %s2108_s30  ;;  %690 = vmatpush1.bf16.msra.mxu1 %v660_v43 }
 0x10b   : > { %1876 = vmatprep.subr.msk.bf16.mxu1 %vm676_vm8, %v663_v58  ;;  %1925 = vmatmul.mubr.msk.bf16.vlgmr.msra.gmra.mrb[0].mxu0 %vm672_vm9, %v2047_v21 }
 0x10c   : > { %v1378_v13 = vpop.permute.xlu0 %1377  ;;  %1601 = vrot.lane.b32.xlu1 %v2559_v62, %s2110_s6  ;;  %1465 = vmatprep.mubr.bf16.mxu0 %v3007_v18  ;;  %v1386_v35 = vpop.permute.xlu1 %1385 }
 0x10d   : > { %v1406_v23 = vsel %vm1405_vm12, %v1376_v63, %v1378_v13  ;;  %v1407_v56 = vsel %vm1405_vm12, %v1378_v13, %v1380_v49  ;;  %v2066_v49 = vld [vmem:[#allocation2 + $0x6c] ss:$16 sps:$4 sm:$0xff]  }
 0x10e   : > { %955 = vrot.lane.b32.xlu0 %v2570_v3, %s2109_s3  ;;  %692 = vmatpush1.bf16.msra.mxu1 %v678_v17 }
 0x10f   : > { %1433 = vmatprep.subr.bf16.mxu0 %v1407_v56  ;;  %789 = vmatprep.subr.bf16.mxu1 %v763_v39 }
 0x110   : > { %1434 = vmatpush1.bf16.msra.mxu0 %v1406_v23  ;;  %v732_v62 = vpop.permute.xlu0 %731  ;;  %963 = vrot.lane.b32.xlu1 %v2397_v40, %s2109_s3  ;;  %v1382_v52 = vpop.permute.xlu1 %1381 }
 0x111   : > { %v762_v22 = vsel %vm761_vm13, %v732_v62, %v734_v10  ;;  %1877 = vmatmul.mubr.msk.bf16.vlgmr.msra.gmra.mrb[0].mxu1 %vm672_vm9, %v2048_v34 }
 0x112   : > { %1603 = vrot.lane.b32.xlu0 %v2557_v54, %s2110_s6  ;;  %790 = vmatpush1.bf16.msra.mxu1 %v762_v22 }
 0x113   : > { %821 = vmatprep.mubr.bf16.mxu1 %v3007_v18 }
 0x114   : > { %v740_v3 = vpop.permute.xlu0 %739  ;;  %1611 = vrot.lane.b32.xlu1 %v2064_v53, %s2110_s6  ;;  %v748_v61 = vpop.permute.xlu1 %747 }
 0x115   : > { %v765_v59 = vsel %vm761_vm13, %v740_v3, %v742_v12 }
 0x116   : > { %953 = vrot.lane.b32.xlu0 %v2586_v37, %s2109_s3  ;;  %791 = vmatprep.subr.bf16.mxu1 %v765_v59 }
 0x118   : > { %v1384_v40 = vpop.permute.xlu0 %1383  ;;  %1607 = vrot.lane.b32.xlu1 %v2363_v45, %s2110_s6  ;;  %v1392_v4 = vpop.permute.xlu1 %1391 }
 0x119   : > { %v1408_v54 = vsel %vm1405_vm12, %v1382_v52, %v1384_v40  ;;  %v1409_v5 = vsel %vm1405_vm12, %v1384_v40, %v1386_v35 }
 0x11a   : > { %961 = vrot.lane.b32.xlu0 %v3009_v19, %s2109_s3  ;;  %1435 = vmatprep.subr.bf16.mxu0 %v1409_v5 }
 0x11b   : > { %1436 = vmatpush1.bf16.msra.mxu0 %v1408_v54 }
 0x11c   : > { %v738_v41 = vpop.permute.xlu0 %737  ;;  %969 = vrot.lane.b32.xlu1 %v2467_v15, %s2109_s3  ;;  %v1388_v8 = vpop.permute.xlu1 %1387 }
 0x11d   : > { %v764_v37 = vsel %vm761_vm13, %v738_v41, %v740_v3 }
 0x11e   : > { %1609 = vrot.lane.b32.xlu0 %v2365_v46, %s2110_s6  ;;  %792 = vmatpush1.bf16.msra.mxu1 %v764_v37 }
 0x120   : > { %v746_v45 = vpop.permute.xlu0 %745  ;;  %1617 = vrot.lane.b32.xlu1 %v2065_v27, %s2110_s6  ;;  %v754_v19 = vpop.permute.xlu1 %753 }
 0x121   : > { %v767_v48 = vsel %vm761_vm13, %v746_v45, %v748_v61 }
 0x122   : > { %959 = vrot.lane.b32.xlu0 %v3011_v24, %s2109_s3  ;;  %793 = vmatprep.subr.bf16.mxu1 %v767_v48 }
 0x124   : > { %v1390_v20 = vpop.permute.xlu0 %1389  ;;  %1613 = vrot.lane.b32.xlu1 %v2461_v55, %s2110_s6  ;;  %v1398_v0 = vpop.permute.xlu1 %1397 }
 0x125   : > { %v1410_v15 = vsel %vm1405_vm12, %v1388_v8, %v1390_v20  ;;  %v1411_v46 = vsel %vm1405_vm12, %v1390_v20, %v1392_v4 }
 0x126   : > { %967 = vrot.lane.b32.xlu0 %v2472_v38, %s2109_s3  ;;  %1437 = vmatprep.subr.bf16.mxu0 %v1411_v46 }
 0x127   : > { %1438 = vmatpush1.bf16.msra.mxu0 %v1410_v15 }
 0x128   : > { %v744_v16 = vpop.permute.xlu0 %743  ;;  %975 = vrot.lane.b32.xlu1 %v2519_v9, %s2109_s3  ;;  %v1394_v29 = vpop.permute.xlu1 %1393 }
 0x129   : > { %v766_v24 = vsel %vm761_vm13, %v744_v16, %v746_v45 }
 0x12a   : > { %1615 = vrot.lane.b32.xlu0 %v2487_v32, %s2110_s6  ;;  %794 = vmatpush1.bf16.msra.mxu1 %v766_v24 }
 0x12c   : > { %v752_v55 = vpop.permute.xlu0 %751  ;;  %1623 = vrot.lane.b32.xlu1 %v2066_v49, %s2110_s6  ;;  %v758_v38 = vpop.permute.xlu1 %757 }
 0x12d   : > { %v769_v11 = vsel %vm761_vm13, %v752_v55, %v754_v19 }
 0x12e   : > { %965 = vrot.lane.b32.xlu0 %v2499_v26, %s2109_s3  ;;  %795 = vmatprep.subr.bf16.mxu1 %v769_v11 }
 0x130   : > { %v1396_v33 = vpop.permute.xlu0 %1395  ;;  %1619 = vrot.lane.b32.xlu1 %v2528_v42, %s2110_s6  ;;  %v1400_v51 = vpop.permute.xlu1 %1399 }
 0x131   : > { %v1412_v9 = vsel %vm1405_vm12, %v1394_v29, %v1396_v33  ;;  %v1413_v32 = vsel %vm1405_vm12, %v1396_v33, %v1398_v0 }
 0x132   : > { %973 = vrot.lane.b32.xlu0 %v2524_v28, %s2109_s3  ;;  %1439 = vmatprep.subr.bf16.mxu0 %v1413_v32 }
 0x133   : > { %1440 = vmatpush1.bf16.msra.mxu0 %v1412_v9 }
 0x134   : > { %v750_v31 = vpop.permute.xlu0 %749  ;;  %979 = vrot.lane.b32.xlu1 %v2547_v44, %s2109_s3  ;;  %v1404_v25 = vpop.permute.xlu1 %1403 }
 0x135   : > { %v768_v26 = vsel %vm761_vm13, %v750_v31, %v752_v55 }
 0x136   : > { %1621 = vrot.lane.b32.xlu0 %v2533_v36, %s2110_s6  ;;  %796 = vmatpush1.bf16.msra.mxu1 %v768_v26  ;;  %v2052_v26 = vld [vmem:[%s2984_s1 + $0x10] sm:$0xff]  }
 0x138   : > { %v756_v42 = vpop.permute.xlu0 %755  ;;  %1625 = vrot.lane.b32.xlu1 %v2568_v1, %s2110_s6  ;;  %v845_v63 = vpop.permute.xlu1 %844 }
 0x139   : > { %v770_v28 = vsel %vm761_vm13, %v756_v42, %v758_v38 }
 0x13a   : > { %971 = vrot.lane.b32.xlu0 %v2543_v30, %s2109_s3  ;;  %v784_v36 = vsel %vm676_vm8, %v770_v28, 0  ;;  %v2050_v30 = vld [vmem:[%s2984_s1] sm:$0xff]  }
 0x13c   : > { %v760_v47 = vpop.permute.xlu0 %759  ;;  %1629 = vrot.lane.b32.xlu1 %v2580_v6, %s2110_s6  ;;  %v1493_v50 = vpop.permute.xlu1 %1492 }
 0x13d   : > { %v771_v44 = vsel %vm761_vm13, %v758_v38, %v760_v47 }
 0x13e   : > { %977 = vrot.lane.b32.xlu0 %v2549_v60, %s2109_s3  ;;  %1879 = vmatprep.subr.msk.bf16.mxu1 %vm676_vm8, %v771_v44  ;;  %v2049_v60 = vld [vmem:[%s2984_s1 + $0x30] sm:$0xff]   ;;  %v2051_v44 = vld [vmem:[%s2984_s1 + $0x38] sm:$0xff]  }
 0x13f   : > { %798 = vmatpush1.bf16.msra.mxu1 %v784_v36 }
 0x140   : > { %v1402_v1 = vpop.permute.xlu0 %1401  ;;  %v1489_v10 = vpop.permute.xlu1 %1488 }
 0x141   : > { %v1414_v21 = vsel %vm1405_vm12, %v1400_v51, %v1402_v1  ;;  %v1415_v6 = vsel %vm1405_vm12, %v1402_v1, %v1404_v25 }
 0x142   : > { %v1428_v2 = vsel %vm676_vm8, %v1414_v21, 0  ;;  %981 = vrot.lane.b32.xlu0 %v2599_v7, %s2109_s3  ;;  %1929 = vmatprep.subr.msk.bf16.mxu0 %vm676_vm8, %v1415_v6 }
 0x143   : > { %1442 = vmatpush1.bf16.msra.mxu0 %v1428_v2  ;;  %1880 = vmatmul.mubr.msk.bf16.vlgmr.msra.gmra.mrb[0].mxu1 %vm672_vm9, %v2050_v30 }
 0x144   : > { %v843_v43 = vpop.permute.xlu0 %842  ;;  %930 = vmatprep.mubr.bf16.mxu1 %v3007_v18  ;;  %v851_v57 = vpop.permute.xlu1 %850 }
 0x145   : > { %v872_v12 = vsel %vm870_vm14, %v843_v43, %v845_v63 }
 0x146   : > { %1627 = vrot.lane.b32.xlu0 %v2590_v14, %s2110_s6  ;;  %898 = vmatprep.subr.bf16.mxu1 %v872_v12 }
 0x147   : > { %1930 = vmatmul.mubr.msk.bf16.vlgmr.msra.gmra.mrb[0].mxu0 %vm672_vm9, %v2049_v60 }
 0x148   : > { %v1491_v7 = vpop.permute.xlu0 %1490  ;;  %1578 = vmatprep.mubr.bf16.mxu0 %v3007_v18  ;;  %v1499_v23 = vpop.permute.xlu1 %1498 }
 0x149   : > { %v1519_v58 = vsel %vm1518_vm15, %v1489_v10, %v1491_v7  ;;  %v1520_v13 = vsel %vm1518_vm15, %v1491_v7, %v1493_v50 }
 0x14a   : > { %1546 = vmatprep.subr.bf16.mxu0 %v1520_v13 }
 0x14b   : > { %1547 = vmatpush1.bf16.msra.mxu0 %v1519_v58 }
 0x14c   : > { %v841_v17 = vpop.permute.xlu0 %840  ;;  %v1495_v34 = vpop.permute.xlu1 %1494 }
 0x14d   : > { %v871_v56 = vsel %vm870_vm14, %v841_v17, %v843_v43 }
 0x14e   : > { %899 = vmatpush1.bf16.msra.mxu1 %v871_v56 }
 0x150   : > { %v849_v14 = vpop.permute.xlu0 %848  ;;  %v857_v39 = vpop.permute.xlu1 %856 }
 0x151   : > { %v874_v35 = vsel %vm870_vm14, %v849_v14, %v851_v57 }
 0x152   : > { %900 = vmatprep.subr.bf16.mxu1 %v874_v35 }
 0x154   : > { %v1497_v62 = vpop.permute.xlu0 %1496  ;;  %v1505_v3 = vpop.permute.xlu1 %1504 }
 0x155   : > { %v1521_v22 = vsel %vm1518_vm15, %v1495_v34, %v1497_v62  ;;  %v1522_v52 = vsel %vm1518_vm15, %v1497_v62, %v1499_v23 }
 0x156   : > { %1548 = vmatprep.subr.bf16.mxu0 %v1522_v52 }
 0x157   : > { %1549 = vmatpush1.bf16.msra.mxu0 %v1521_v22 }
 0x158   : > { %v847_v53 = vpop.permute.xlu0 %846  ;;  %v1501_v61 = vpop.permute.xlu1 %1500 }
 0x159   : > { %v873_v59 = vsel %vm870_vm14, %v847_v53, %v849_v14 }
 0x15a   : > { %901 = vmatpush1.bf16.msra.mxu1 %v873_v59 }
 0x15c   : > { %v855_v40 = vpop.permute.xlu0 %854  ;;  %v863_v5 = vpop.permute.xlu1 %862 }
 0x15d   : > { %v876_v54 = vsel %vm870_vm14, %v855_v40, %v857_v39 }
 0x15e   : > { %902 = vmatprep.subr.bf16.mxu1 %v876_v54 }
 0x160   : > { %v1503_v4 = vpop.permute.xlu0 %1502 }
 0x161   : > { %v1523_v41 = vsel %vm1518_vm15, %v1501_v61, %v1503_v4  ;;  %v1524_v37 = vsel %vm1518_vm15, %v1503_v4, %v1505_v3  ;;  %v1511_v8 = vpop.permute.xlu1 %1510 }
 0x162   : > { %1550 = vmatprep.subr.bf16.mxu0 %v1524_v37 }
 0x163   : > { %1551 = vmatpush1.bf16.msra.mxu0 %v1523_v41 }
 0x164   : > { %v853_v45 = vpop.permute.xlu0 %852 }
 0x165   : > { %v875_v27 = vsel %vm870_vm14, %v853_v45, %v855_v40  ;;  %v1507_v48 = vpop.permute.xlu1 %1506 }
 0x166   : > { %903 = vmatpush1.bf16.msra.mxu1 %v875_v27 }
 0x168   : > { %v861_v19 = vpop.permute.xlu0 %860 }
 0x169   : > { %v878_v20 = vsel %vm870_vm14, %v861_v19, %v863_v5  ;;  %v867_v15 = vpop.permute.xlu1 %866 }
 0x16a   : > { %904 = vmatprep.subr.bf16.mxu1 %v878_v20 }
 0x16c   : > { %v1509_v46 = vpop.permute.xlu0 %1508 }
 0x16d   : > { %v1525_v0 = vsel %vm1518_vm15, %v1507_v48, %v1509_v46  ;;  %v1526_v16 = vsel %vm1518_vm15, %v1509_v46, %v1511_v8  ;;  %v1513_v24 = vpop.permute.xlu1 %1512 }
 0x16e   : > { %1552 = vmatprep.subr.bf16.mxu0 %v1526_v16  ;;  %v2053_v16 = vld [vmem:[%s2984_s1 + $0x18] sm:$0xff]  }
 0x16f   : > { %1553 = vmatpush1.bf16.msra.mxu0 %v1525_v0 }
 0x170   : > { %v859_v29 = vpop.permute.xlu0 %858 }
 0x171   : > { %v877_v55 = vsel %vm870_vm14, %v859_v29, %v861_v19 }
 0x172   : > { %905 = vmatpush1.bf16.msra.mxu1 %v877_v55  ;;  %v1517_v49 = vpop.permute.xlu1 %1516 }
 0x174   : > { %v865_v11 = vpop.permute.xlu0 %864 }
 0x175   : > { %v879_v33 = vsel %vm870_vm14, %v865_v11, %v867_v15  ;;  %v2054_v11 = vld [vmem:[%s2984_s1 + $0x40] sm:$0xff]  }
 0x176   : > { %v958_v38 = vpop.permute.xlu1 %957  ;;  %v893_v51 = vsel %vm676_vm8, %v879_v33, 0 }
 0x178   : > { %v869_v9 = vpop.permute.xlu0 %868 }
 0x179   : > { %v880_v32 = vsel %vm870_vm14, %v867_v15, %v869_v9 }
 0x17a   : > { %1884 = vmatprep.subr.msk.bf16.mxu1 %vm676_vm8, %v880_v32  ;;  %v1606_v31 = vpop.permute.xlu1 %1605 }
 0x17b   : > { %907 = vmatpush1.bf16.msra.mxu1 %v893_v51 }
 0x17c   : > { %v1515_v25 = vpop.permute.xlu0 %1514 }
 0x17d   : > { %v1527_v42 = vsel %vm1518_vm15, %v1513_v24, %v1515_v25  ;;  %v1528_v63 = vsel %vm1518_vm15, %v1515_v25, %v1517_v49 }
 0x17e   : > { %v1541_v28 = vsel %vm676_vm8, %v1527_v42, 0  ;;  %1934 = vmatprep.subr.msk.bf16.mxu0 %vm676_vm8, %v1528_v63  ;;  %v1602_v47 = vpop.permute.xlu1 %1601  ;;  %1885 = vmatmul.mubr.msk.bf16.vlgmr.msra.gmra.mrb[0].mxu1 %vm672_vm9, %v2052_v26 }
 0x17f   : > { %1555 = vmatpush1.bf16.msra.mxu0 %v1541_v28  ;;  %1043 = vmatprep.mubr.bf16.mxu1 %v3007_v18 }
 0x180   : > { %v956_v50 = vpop.permute.xlu0 %955 }
 0x181   : > { %v985_v36 = vsel %vm983_vm0, %v956_v50, %v958_v38 }
 0x182   : > { %1011 = vmatprep.subr.bf16.mxu1 %v985_v36  ;;  %1935 = vmatmul.mubr.msk.bf16.vlgmr.msra.gmra.mrb[0].mxu0 %vm672_vm9, %v2051_v44  ;;  %v964_v30 = vpop.permute.xlu1 %963 }
 0x183   : > { %1691 = vmatprep.mubr.bf16.mxu0 %v3007_v18 }
 0x184   : > { %v1604_v1 = vpop.permute.xlu0 %1603 }
 0x185   : > { %v1632_v21 = vsel %vm1631_vm1, %v1602_v47, %v1604_v1  ;;  %v1633_v6 = vsel %vm1631_vm1, %v1604_v1, %v1606_v31 }
 0x186   : > { %1659 = vmatprep.subr.bf16.mxu0 %v1633_v6  ;;  %v1612_v10 = vpop.permute.xlu1 %1611 }
 0x187   : > { %1660 = vmatpush1.bf16.msra.mxu0 %v1632_v21 }
 0x188   : > { %v954_v2 = vpop.permute.xlu0 %953 }
 0x189   : > { %v984_v60 = vsel %vm983_vm0, %v954_v2, %v956_v50 }
 0x18a   : > { %1012 = vmatpush1.bf16.msra.mxu1 %v984_v60  ;;  %v1608_v43 = vpop.permute.xlu1 %1607 }
 0x18c   : > { %v962_v12 = vpop.permute.xlu0 %961 }
 0x18d   : > { %v987_v57 = vsel %vm983_vm0, %v962_v12, %v964_v30 }
 0x18e   : > { %1013 = vmatprep.subr.bf16.mxu1 %v987_v57  ;;  %v970_v7 = vpop.permute.xlu1 %969 }
 0x190   : > { %v1610_v58 = vpop.permute.xlu0 %1609 }
 0x191   : > { %v1634_v18 = vsel %vm1631_vm1, %v1608_v43, %v1610_v58  ;;  %v1635_v13 = vsel %vm1631_vm1, %v1610_v58, %v1612_v10 }
 0x192   : > { %1661 = vmatprep.subr.bf16.mxu0 %v1635_v13  ;;  %v1618_v23 = vpop.permute.xlu1 %1617 }
 0x193   : > { %1662 = vmatpush1.bf16.msra.mxu0 %v1634_v18 }
 0x194   : > { %v960_v17 = vpop.permute.xlu0 %959 }
 0x195   : > { %v986_v56 = vsel %vm983_vm0, %v960_v17, %v962_v12 }
 0x196   : > { %1014 = vmatpush1.bf16.msra.mxu1 %v986_v56  ;;  %v1614_v34 = vpop.permute.xlu1 %1613 }
 0x198   : > { %v968_v14 = vpop.permute.xlu0 %967 }
 0x199   : > { %v989_v35 = vsel %vm983_vm0, %v968_v14, %v970_v7 }
 0x19a   : > { %1015 = vmatprep.subr.bf16.mxu1 %v989_v35  ;;  %v976_v39 = vpop.permute.xlu1 %975 }
 0x19c   : > { %v1616_v62 = vpop.permute.xlu0 %1615 }
 0x19d   : > { %v1636_v22 = vsel %vm1631_vm1, %v1614_v34, %v1616_v62  ;;  %v1637_v52 = vsel %vm1631_vm1, %v1616_v62, %v1618_v23 }
 0x19e   : > { %1663 = vmatprep.subr.bf16.mxu0 %v1637_v52  ;;  %v1624_v53 = vpop.permute.xlu1 %1623 }
 0x19f   : > { %1664 = vmatpush1.bf16.msra.mxu0 %v1636_v22 }
 0x1a0   : > { %v966_v3 = vpop.permute.xlu0 %965 }
 0x1a1   : > { %v988_v59 = vsel %vm983_vm0, %v966_v3, %v968_v14 }
 0x1a2   : > { %1016 = vmatpush1.bf16.msra.mxu1 %v988_v59  ;;  %v1620_v54 = vpop.permute.xlu1 %1619 }
 0x1a4   : > { %v974_v61 = vpop.permute.xlu0 %973 }
 0x1a5   : > { %v991_v40 = vsel %vm983_vm0, %v974_v61, %v976_v39 }
 0x1a6   : > { %1017 = vmatprep.subr.bf16.mxu1 %v991_v40  ;;  %v980_v37 = vpop.permute.xlu1 %979 }
 0x1a8   : > { %v1622_v5 = vpop.permute.xlu0 %1621 }
 0x1a9   : > { %v1638_v4 = vsel %vm1631_vm1, %v1620_v54, %v1622_v5  ;;  %v1639_v41 = vsel %vm1631_vm1, %v1622_v5, %v1624_v53 }
 0x1aa   : > { %1665 = vmatprep.subr.bf16.mxu0 %v1639_v41  ;;  %v1626_v48 = vpop.permute.xlu1 %1625 }
 0x1ab   : > { %1666 = vmatpush1.bf16.msra.mxu0 %v1638_v4 }
 0x1ac   : > { %v972_v8 = vpop.permute.xlu0 %971 }
 0x1ad   : > { %v990_v45 = vsel %vm983_vm0, %v972_v8, %v974_v61 }
 0x1ae   : > { %1018 = vmatpush1.bf16.msra.mxu1 %v990_v45  ;;  %v1630_v0 = vpop.permute.xlu1 %1629 }
 0x1b0   : > { %v978_v27 = vpop.permute.xlu0 %977 }
 0x1b1   : > { %v992_v19 = vsel %vm983_vm0, %v978_v27, %v980_v37 }
 0x1b2   : > { %v1006_v46 = vsel %vm676_vm8, %v992_v19, 0 }
 0x1b4   : > { %v982_v20 = vpop.permute.xlu0 %981 }
 0x1b5   : > { %v993_v15 = vsel %vm983_vm0, %v980_v37, %v982_v20 }
 0x1b6   : > { %1889 = vmatprep.subr.msk.bf16.mxu1 %vm676_vm8, %v993_v15 }
 0x1b7   : > { %1020 = vmatpush1.bf16.msra.mxu1 %v1006_v46 }
 0x1b8   : > { %v1628_v24 = vpop.permute.xlu0 %1627 }
 0x1b9   : > { %v1640_v29 = vsel %vm1631_vm1, %v1626_v48, %v1628_v24  ;;  %v1641_v55 = vsel %vm1631_vm1, %v1628_v24, %v1630_v0 }
 0x1ba   : > { %v1654_v49 = vsel %vm676_vm8, %v1640_v29, 0  ;;  %1890 = vmatmul.mubr.msk.bf16.vlgmr.msra.gmra.mrb[0].mxu1 %vm672_vm9, %v2053_v16  ;;  %1939 = vmatprep.subr.msk.bf16.mxu0 %vm676_vm8, %v1641_v55 }
 0x1bb   : > { %1668 = vmatpush1.bf16.msra.mxu0 %v1654_v49 }
 0x1be   : > { %1940 = vmatmul.mubr.msk.bf16.vlgmr.msra.gmra.mrb[0].mxu0 %vm672_vm9, %v2054_v11 }
 0x28d   : > { %v1045_v38 = vpop.f32.mrb[0].mxu1 }
 0x28e   : > { %v1047_v33 = vpop.f32.mrb[1].mxu1 }
 0x28f   : > { %v1049_v9 = vpop.f32.mrb[2].mxu1 }
 0x290   : > { %v1051_v32 = vpop.f32.mrb[3].mxu1 }
 0x291   : > { %v1693_v51 = vpop.f32.mrb[0].mxu0  ;;  %1716 = sbr.rel (!%p2151_p4) target bundleno = 672 (0x2a0), region = 32 }
 0x292   : > { %v1956_v31 = vadd.f32 %v1693_v51, %v1045_v38  ;;  %v1695_v26 = vpop.f32.mrb[1].mxu0 }
 0x293   : > { %v1957_v25 = vadd.f32 %v1695_v26, %v1047_v33  ;;  %v1697_v42 = vpop.f32.mrb[2].mxu0 }
 0x294   : > { %1706 = vst [vmem:[%s133_s29] sm:$0xff] %v1956_v31  ;;  %v1958_v63 = vadd.f32 %v1697_v42, %v1049_v9  ;;  %v1699_v28 = vpop.f32.mrb[3].mxu0 }
 0x295   : > { %1707 = vst [vmem:[%s133_s29 + $0x8] sm:$0xff] %v1957_v25  ;;  %v1959_v47 = vadd.f32 %v1699_v28, %v1051_v32 }
 0x296   : > { %1708 = vst [vmem:[%s133_s29 + $0x10] sm:$0xff] %v1958_v63 }
 0x297   : > { %1709 = vst [vmem:[%s133_s29 + $0x18] sm:$0xff] %v1959_v47 }
 0x29b   : > { %v1732_v44 = vld [vmem:[%s133_s29] sm:$0xff] }
 0x29c   : > { %v1734_v50 = vld [vmem:[%s133_s29 + $0x8] sm:$0xff]  ;;  %1733 = vst [vmem:[%s1719_s4] sm:$0xff] %v1732_v44 }
 0x29d   : > { %v1736_v36 = vld [vmem:[%s133_s29 + $0x10] sm:$0xff]  ;;  %1735 = vst [vmem:[%s1719_s4 + $0x8] sm:$0xff] %v1734_v50 }
 0x29e   : > { %v1738_v30 = vld [vmem:[%s133_s29 + $0x18] sm:$0xff]  ;;  %1737 = vst [vmem:[%s1719_s4 + $0x20] sm:$0xff] %v1736_v36 }
 0x29f   : > { %1739 = vst [vmem:[%s1719_s4 + $0x28] sm:$0xff] %v1738_v30 }
 0x2a0 PF: > { %p9_p8 = scmp.ge.s32.totalorder %s2141_s13, 4   ;;  %s3013_s9 = smov %s2095_s10 }
 0x2a1   : > { %s3014_s10 = smov %s2149_s16  ;;  %s3015_s11 = smov %s2141_s13 }
 0x2a2   :  { %11 = sbr.rel (!%p9_p8) target bundleno = 2 (0x2), region = 89 }

// kernel: mnist_ckan_forward.5
= control target key start
LH: loop header
LB: loop body
LE: loop exit
PB: predicated region body
PF: predicated region fallthrough
CT: control target
= control target key end

     0   :  { %v884_v43 = vmov 1983009808   ;;  %v134_v45 = vlaneseq  ;;  %s1305_s0 = inlined_call_operand.vmem [shape: f32[2,784], index: 0, kind: input, shape index: {}]   ;;  %s1306_s1 = inlined_call_operand.vmem [shape: f32[784,128], index: 1, kind: input, shape index: {}]   ;;  %s1307_s2 = inlined_call_operand.vmem [shape: f32[1,128], index: 2, kind: input, shape index: {}]   ;;  %s1308_s3 = inlined_call_operand.vmem [shape: f32[128,128], index: 3, kind: input, shape index: {}]   ;;  %s1309_s4 = inlined_call_operand.vmem [shape: f32[1,128], index: 4, kind: input, shape index: {}]   ;;  %s1310_s5 = inlined_call_operand.hbm [shape: f32[2,128], index: 5, kind: output, shape index: {}]  }
   0x1   :  { %v39_v0 = vld [vmem:[%s1306_s1 + $0x80] sm:$0xff]  ;;  %v40_v1 = vld [vmem:[%s1306_s1 + $0x88] sm:$0xff]  ;;  %v41_v11 = vld [vmem:[%s1306_s1 + $0x90] sm:$0xff]  ;;  %v132_v44 = vunpack.c.l.s4 %v884_v43 }
   0x2   :  { %v23_v2 = vld [vmem:[%s1306_s1] sm:$0xff]  ;;  %v730_v3 = vpack.c.bf16 %v40_v1, %v39_v0  ;;  %v24_v4 = vld [vmem:[%s1306_s1 + $0x8] sm:$0xff]  ;;  %v42_v13 = vld [vmem:[%s1306_s1 + $0x98] sm:$0xff]  ;;  %v135_v60 = vshrl.u32 %v134_v45, 7 }
   0x3   :  { %v71_v5 = vld [vmem:[%s1306_s1 + $0x180] sm:$0xff]  ;;  %v72_v6 = vld [vmem:[%s1306_s1 + $0x188] sm:$0xff]  ;;  %v732_v7 = vpack.c.bf16 %v24_v4, %v23_v2  ;;  %v25_v14 = vld [vmem:[%s1306_s1 + $0x10] sm:$0xff]  ;;  %v734_v16 = vpack.c.bf16 %v42_v13, %v41_v11  ;;  %v133_v59 = vunpack.c.0.s8 %v132_v44 }
   0x4   :  { %v762_v8 = vpack.c.bf16 %v72_v6, %v71_v5  ;;  %v55_v9 = vld [vmem:[%s1306_s1 + $0x100] sm:$0xff]  ;;  %v56_v10 = vld [vmem:[%s1306_s1 + $0x108] sm:$0xff]  ;;  %731 = vmatprep.subr.bf16.mxu0 %v730_v3  ;;  %v26_v15 = vld [vmem:[%s1306_s1 + $0x18] sm:$0xff] }
   0x5   :  { %v764_v12 = vpack.c.bf16 %v56_v10, %v55_v9  ;;  %733 = vmatpush3.bf16.msra.mxu0 %v732_v7  ;;  %v736_v17 = vpack.c.bf16 %v26_v15, %v25_v14  ;;  %v73_v18 = vld [vmem:[%s1306_s1 + $0x190] sm:$0xff]  ;;  %v74_v19 = vld [vmem:[%s1306_s1 + $0x198] sm:$0xff]  ;;  %v43_v23 = vld [vmem:[%s1306_s1 + $0xa0] sm:$0xff]  ;;  %v1063_v10 = vsub.s32 %v133_v59, %v135_v60 }
   0x6   :  { %763 = vmatprep.subr.bf16.mxu1 %v762_v8  ;;  %v57_v20 = vld [vmem:[%s1306_s1 + $0x110] sm:$0xff]  ;;  %v766_v21 = vpack.c.bf16 %v74_v19, %v73_v18  ;;  %v58_v22 = vld [vmem:[%s1306_s1 + $0x118] sm:$0xff]  ;;  %v44_v24 = vld [vmem:[%s1306_s1 + $0xa8] sm:$0xff]  ;;  %735 = vmatprep.subr.bf16.mxu0 %v734_v16 }
   0x7   :  { %765 = vmatpush3.bf16.msra.mxu1 %v764_v12  ;;  %v768_v25 = vpack.c.bf16 %v58_v22, %v57_v20  ;;  %v738_v26 = vpack.c.bf16 %v44_v24, %v43_v23  ;;  %v27_v27 = vld [vmem:[%s1306_s1 + $0x20] sm:$0xff]  ;;  %v28_v28 = vld [vmem:[%s1306_s1 + $0x28] sm:$0xff]  ;;  %v45_v35 = vld [vmem:[%s1306_s1 + $0xb0] sm:$0xff] }
   0x8   :  { %v75_v29 = vld [vmem:[%s1306_s1 + $0x1a0] sm:$0xff]  ;;  %767 = vmatprep.subr.bf16.mxu1 %v766_v21  ;;  %v76_v30 = vld [vmem:[%s1306_s1 + $0x1a8] sm:$0xff]  ;;  %v740_v33 = vpack.c.bf16 %v28_v28, %v27_v27  ;;  %v46_v36 = vld [vmem:[%s1306_s1 + $0xb8] sm:$0xff] }
   0x9   :  { %v59_v31 = vld [vmem:[%s1306_s1 + $0x120] sm:$0xff]  ;;  %v60_v32 = vld [vmem:[%s1306_s1 + $0x128] sm:$0xff]  ;;  %737 = vmatpush3.bf16.msra.mxu0 %v736_v17  ;;  %v770_v34 = vpack.c.bf16 %v76_v30, %v75_v29  ;;  %v29_v37 = vld [vmem:[%s1306_s1 + $0x30] sm:$0xff]  ;;  %v742_v39 = vpack.c.bf16 %v46_v36, %v45_v35 }
   0xa   :  { %739 = vmatprep.subr.bf16.mxu0 %v738_v26  ;;  %v772_v38 = vpack.c.bf16 %v60_v32, %v59_v31  ;;  %v30_v40 = vld [vmem:[%s1306_s1 + $0x38] sm:$0xff]  ;;  %v77_v41 = vld [vmem:[%s1306_s1 + $0x1b0] sm:$0xff]  ;;  %v47_v49 = vld [vmem:[%s1306_s1 + $0xc0] sm:$0xff] }
   0xb   :  { %769 = vmatpush3.bf16.msra.mxu1 %v768_v25  ;;  %v78_v42 = vld [vmem:[%s1306_s1 + $0x1b8] sm:$0xff]  ;;  %v61_v47 = vld [vmem:[%s1306_s1 + $0x130] sm:$0xff]  ;;  %v48_v50 = vld [vmem:[%s1306_s1 + $0xc8] sm:$0xff]  ;;  %v744_v51 = vpack.c.bf16 %v30_v40, %v29_v37 }
   0xc   :  { %771 = vmatprep.subr.bf16.mxu1 %v770_v34  ;;  %v774_v46 = vpack.c.bf16 %v78_v42, %v77_v41  ;;  %v62_v48 = vld [vmem:[%s1306_s1 + $0x138] sm:$0xff]  ;;  %v79_v52 = vld [vmem:[%s1306_s1 + $0x1c0] sm:$0xff]  ;;  %v80_v53 = vld [vmem:[%s1306_s1 + $0x1c8] sm:$0xff]  ;;  %v746_v55 = vpack.c.bf16 %v48_v50, %v47_v49 }
   0xd   :  { %741 = vmatpush3.bf16.msra.mxu0 %v740_v33  ;;  %v776_v54 = vpack.c.bf16 %v62_v48, %v61_v47  ;;  %v31_v56 = vld [vmem:[%s1306_s1 + $0x40] sm:$0xff]  ;;  %v32_v57 = vld [vmem:[%s1306_s1 + $0x48] sm:$0xff]  ;;  %v778_v61 = vpack.c.bf16 %v80_v53, %v79_v52  ;;  %v49_v63 = vld [vmem:[%s1306_s1 + $0xd0] sm:$0xff] }
   0xe   :  { %743 = vmatprep.subr.bf16.mxu0 %v742_v39  ;;  %v63_v58 = vld [vmem:[%s1306_s1 + $0x140] sm:$0xff]  ;;  %v64_v62 = vld [vmem:[%s1306_s1 + $0x148] sm:$0xff]  ;;  %v50_v0 = vld [vmem:[%s1306_s1 + $0xd8] sm:$0xff]  ;;  %v748_v3 = vpack.c.bf16 %v32_v57, %v31_v56 }
   0xf   :  { %773 = vmatpush3.bf16.msra.mxu1 %v772_v38  ;;  %v81_v1 = vld [vmem:[%s1306_s1 + $0x1d0] sm:$0xff]  ;;  %v82_v2 = vld [vmem:[%s1306_s1 + $0x1d8] sm:$0xff]  ;;  %v780_v5 = vpack.c.bf16 %v64_v62, %v63_v58  ;;  %v750_v6 = vpack.c.bf16 %v50_v0, %v49_v63  ;;  %v51_v12 = vld [vmem:[%s1306_s1 + $0xe0] sm:$0xff] }
  0x10   :  { %775 = vmatprep.subr.bf16.mxu1 %v774_v46  ;;  %v33_v4 = vld [vmem:[%s1306_s1 + $0x50] sm:$0xff]  ;;  %v34_v7 = vld [vmem:[%s1306_s1 + $0x58] sm:$0xff]  ;;  %v782_v11 = vpack.c.bf16 %v82_v2, %v81_v1  ;;  %v52_v13 = vld [vmem:[%s1306_s1 + $0xe8] sm:$0xff] }
  0x11   :  { %745 = vmatpush3.bf16.msra.mxu0 %v744_v51  ;;  %v65_v8 = vld [vmem:[%s1306_s1 + $0x150] sm:$0xff]  ;;  %v66_v9 = vld [vmem:[%s1306_s1 + $0x158] sm:$0xff]  ;;  %v83_v14 = vld [vmem:[%s1306_s1 + $0x1e0] sm:$0xff]  ;;  %v752_v16 = vpack.c.bf16 %v34_v7, %v33_v4  ;;  %v754_v19 = vpack.c.bf16 %v52_v13, %v51_v12 }
  0x12   :  { %747 = vmatprep.subr.bf16.mxu0 %v746_v55  ;;  %v84_v15 = vld [vmem:[%s1306_s1 + $0x1e8] sm:$0xff]  ;;  %v784_v17 = vpack.c.bf16 %v66_v9, %v65_v8  ;;  %v21_v18 = vld [vmem:[%s1305_s0] sm:$0xff]  ;;  %v53_v27 = vld [vmem:[%s1306_s1 + $0xf0] sm:$0xff] }
  0x13   :  { %777 = vmatpush3.bf16.msra.mxu1 %v776_v54  ;;  %v35_v20 = vld [vmem:[%s1306_s1 + $0x60] sm:$0xff]  ;;  %v36_v21 = vld [vmem:[%s1306_s1 + $0x68] sm:$0xff]  ;;  %v137_v23 = vrot.slane %v21_v18, %v1063_v10  ;;  %v130_v24 = vcombine.high %v21_v18, %v21_v18  ;;  %v786_v25 = vpack.c.bf16 %v84_v15, %v83_v14  ;;  %v54_v28 = vld [vmem:[%s1306_s1 + $0xf8] sm:$0xff] }
  0x14   :  { %779 = vmatprep.subr.bf16.mxu1 %v778_v61  ;;  %v67_v22 = vld [vmem:[%s1306_s1 + $0x160] sm:$0xff]  ;;  %v68_v26 = vld [vmem:[%s1306_s1 + $0x168] sm:$0xff]  ;;  %v85_v29 = vld [vmem:[%s1306_s1 + $0x1f0] sm:$0xff]  ;;  %v756_v33 = vpack.c.bf16 %v36_v21, %v35_v20  ;;  %v758_v35 = vpack.c.bf16 %v54_v28, %v53_v27 }
  0x15   :  { %749 = vmatpush3.bf16.msra.mxu0 %v748_v3  ;;  %v86_v30 = vld [vmem:[%s1306_s1 + $0x1f8] sm:$0xff]  ;;  %v145_v31 = vcombine.high %v137_v23, %v137_v23  ;;  %v144_v32 = vrot.slane %v130_v24, %v1063_v10  ;;  %v788_v34 = vpack.c.bf16 %v68_v26, %v67_v22  ;;  %v37_v36 = vld [vmem:[%s1306_s1 + $0x70] sm:$0xff]  ;;  %v103_v42 = vld [vmem:[%s1306_s1 + $0x280] sm:$0xff] }
  0x16   :  { %751 = vmatprep.subr.bf16.mxu0 %v750_v6  ;;  %v38_v37 = vld [vmem:[%s1306_s1 + $0x78] sm:$0xff]  ;;  %v69_v38 = vld [vmem:[%s1306_s1 + $0x170] sm:$0xff]  ;;  %v790_v40 = vpack.c.bf16 %v86_v30, %v85_v29  ;;  %v104_v43 = vld [vmem:[%s1306_s1 + $0x288] sm:$0xff] }
  0x17   :  { %781 = vmatpush3.bf16.msra.mxu1 %v780_v5  ;;  %v146_v39 = vcombine.high %v144_v32, %v144_v32  ;;  %236 = vmatprep.mubr.f32.mxu0 %v145_v31  ;;  %v70_v41 = vld [vmem:[%s1306_s1 + $0x178] sm:$0xff]  ;;  %v760_v44 = vpack.c.bf16 %v38_v37, %v37_v36  ;;  %v794_v46 = vpack.c.bf16 %v104_v43, %v103_v42  ;;  %v87_v47 = vld [vmem:[%s1306_s1 + $0x200] sm:$0xff]  ;;  %v88_v48 = vld [vmem:[%s1306_s1 + $0x208] sm:$0xff] }
  0x18   :  { %783 = vmatprep.subr.bf16.mxu1 %v782_v11  ;;  %v792_v45 = vpack.c.bf16 %v70_v41, %v69_v38  ;;  %v105_v49 = vld [vmem:[%s1306_s1 + $0x290] sm:$0xff]  ;;  %v106_v50 = vld [vmem:[%s1306_s1 + $0x298] sm:$0xff]  ;;  %v796_v51 = vpack.c.bf16 %v88_v48, %v87_v47  ;;  %v22_v53 = vld [vmem:[%s1305_s0 + $0x8] sm:$0x3f] }
  0x19   :  { %753 = vmatpush3.bf16.msra.mxu0 %v752_v16  ;;  %306 = vmatprep.mubr.f32.mxu1 %v146_v39  ;;  %v89_v52 = vld [vmem:[%s1306_s1 + $0x210] sm:$0xff]  ;;  %v119_v54 = vld [vmem:[%s1306_s1 + $0x300] sm:$0xff]  ;;  %v798_v55 = vpack.c.bf16 %v106_v50, %v105_v49  ;;  %v90_v56 = vld [vmem:[%s1306_s1 + $0x218] sm:$0xff]  ;;  %v147_v57 = vcombine.high %v22_v53, %v22_v53  ;;  %v1149_v58 = vrot.slane %v22_v53, %v1063_v10 }
  0x1a   :  { %755 = vmatprep.subr.bf16.mxu0 %v754_v19  ;;  %v120_v59 = vld [vmem:[%s1306_s1 + $0x308] sm:$0xff] }
  0x1b   :  { %785 = vmatpush3.bf16.msra.mxu1 %v784_v17 }
  0x1c   :  { %787 = vmatprep.subr.bf16.mxu1 %v786_v25 }
  0x1d   :  { %757 = vmatpush3.bf16.msra.mxu0 %v756_v33 }
  0x1e   :  { %759 = vmatprep.subr.bf16.mxu0 %v758_v35 }
  0x1f   :  { %789 = vmatpush3.bf16.msra.mxu1 %v788_v34 }
  0x20   :  { %791 = vmatprep.subr.bf16.mxu1 %v790_v40 }
  0x21   :  { %761 = vmatpush3.bf16.msra.mxu0 %v760_v44 }
  0x22   :  { %795 = vmatprep.subr.bf16.mxu0 %v794_v46 }
  0x23   :  { %793 = vmatpush3.bf16.msra.mxu1 %v792_v45 }
  0x24   :  { %10 = vsyncpa [#allocation3], 0  ;;  %v107_v60 = vld [vmem:[%s1306_s1 + $0x2a0] sm:$0xff]  ;;  %v108_v61 = vld [vmem:[%s1306_s1 + $0x2a8] sm:$0xff]  ;;  %v885_v62 = vmov 0.0|0.0   ;;  %v827_v63 = vpack.c.bf16 %v120_v59, %v119_v54  ;;  %237 = vmatmul.mubr.f32.vlgmr.msra.gmra.mrb[0].mxu0 %v137_v23  ;;  %v162_v0 = vcombine.high %v1149_v58, %v1149_v58  ;;  %v800_v1 = vpack.c.bf16 %v90_v56, %v89_v52 }
  0x25   :  { %826 = vmatprep.subr.bf16.mxu1 %v885_v62  ;;  %797 = vmatpush3.bf16.msra.mxu0 %v796_v51  ;;  %v802_v2 = vpack.c.bf16 %v108_v61, %v107_v60  ;;  %v91_v3 = vld [vmem:[%s1306_s1 + $0x220] sm:$0xff]  ;;  %v92_v4 = vld [vmem:[%s1306_s1 + $0x228] sm:$0xff]  ;;  %v161_v5 = vrot.slane %v147_v57, %v1063_v10  ;;  %v109_v6 = vld [vmem:[%s1306_s1 + $0x2b0] sm:$0xff]  ;;  %vm886_vm0 = vmmov 0   ;;  %v887_v8 = vmov 0.0  }
  0x26   :  { %307 = vmatmul.mubr.f32.vlgmr.msra.gmra.mrb[0].mxu1 %v144_v32  ;;  %799 = vmatprep.subr.bf16.mxu0 %v798_v55  ;;  %v110_v7 = vld [vmem:[%s1306_s1 + $0x2b8] sm:$0xff]  ;;  %vm169_vm1 = vcmask 130048   ;;  %v804_v9 = vpack.c.bf16 %v92_v4, %v91_v3  ;;  %v93_v11 = vld [vmem:[%s1306_s1 + $0x230] sm:$0xff]  ;;  %v111_v13 = vld [vmem:[%s1306_s1 + $0x2c0] sm:$0xff] }
  0x27   :  { %376 = vmatprep.mubr.f32.mxu0 %v162_v0  ;;  %828 = vmatpush3.bf16.msra.mxu1 %v827_v63  ;;  %v806_v10 = vpack.c.bf16 %v110_v7, %v109_v6  ;;  %v94_v12 = vld [vmem:[%s1306_s1 + $0x238] sm:$0xff]  ;;  %v112_v14 = vld [vmem:[%s1306_s1 + $0x2c8] sm:$0xff]  ;;  %v95_v17 = vld [vmem:[%s1306_s1 + $0x240] sm:$0xff] }
  0x28   :  { %692 = vmatprep.mubr.msk.f32.mxu1 %vm886_vm0, %v887_v8  ;;  %829 = vmatprep.subr.bf16.mxu1 %v885_v62  ;;  %v808_v15 = vpack.c.bf16 %v94_v12, %v93_v11  ;;  %v810_v16 = vpack.c.bf16 %v112_v14, %v111_v13  ;;  %v96_v18 = vld [vmem:[%s1306_s1 + $0x248] sm:$0xff]  ;;  %v113_v19 = vld [vmem:[%s1306_s1 + $0x2d0] sm:$0xff]  ;;  %v114_v20 = vld [vmem:[%s1306_s1 + $0x2d8] sm:$0xff] }
  0x29   :  { %801 = vmatpush3.bf16.msra.mxu0 %v800_v1  ;;  %v812_v21 = vpack.c.bf16 %v96_v18, %v95_v17  ;;  %v814_v22 = vpack.c.bf16 %v114_v20, %v113_v19  ;;  %v97_v23 = vld [vmem:[%s1306_s1 + $0x250] sm:$0xff]  ;;  %v98_v24 = vld [vmem:[%s1306_s1 + $0x258] sm:$0xff]  ;;  %v115_v25 = vld [vmem:[%s1306_s1 + $0x2e0] sm:$0xff] }
  0x2a   :  { %803 = vmatprep.subr.bf16.mxu0 %v802_v2  ;;  %693 = vmatmul.mubr.msk.f32.vlgmr.msra.gmra.mrb[2].mxu1 %vm169_vm1, %v161_v5  ;;  %v116_v26 = vld [vmem:[%s1306_s1 + $0x2e8] sm:$0xff]  ;;  %v816_v27 = vpack.c.bf16 %v98_v24, %v97_v23  ;;  %v99_v29 = vld [vmem:[%s1306_s1 + $0x260] sm:$0xff]  ;;  %v117_v31 = vld [vmem:[%s1306_s1 + $0x2f0] sm:$0xff] }
  0x2b   :  { %727 = vmatprep.mubr.msk.f32.mxu1 %vm886_vm0, %v887_v8  ;;  %v818_v28 = vpack.c.bf16 %v116_v26, %v115_v25  ;;  %v100_v30 = vld [vmem:[%s1306_s1 + $0x268] sm:$0xff]  ;;  %v118_v32 = vld [vmem:[%s1306_s1 + $0x2f8] sm:$0xff]  ;;  %v101_v35 = vld [vmem:[%s1306_s1 + $0x270] sm:$0xff] }
  0x2c   :  { %v820_v33 = vpack.c.bf16 %v100_v30, %v99_v29  ;;  %v822_v34 = vpack.c.bf16 %v118_v32, %v117_v31  ;;  %v102_v36 = vld [vmem:[%s1306_s1 + $0x278] sm:$0xff]  ;;  %v452_v38 = vld [vmem:[%s1308_s3] sm:$0xff]  ;;  %v453_v39 = vld [vmem:[%s1308_s3 + $0x8] sm:$0xff] }
  0x2d   :  { %805 = vmatpush3.bf16.msra.mxu0 %v804_v9  ;;  %v824_v37 = vpack.c.bf16 %v102_v36, %v101_v35  ;;  %v454_v40 = vld [vmem:[%s1308_s3 + $0x10] sm:$0xff]  ;;  %v830_v41 = vpack.c.bf16 %v453_v39, %v452_v38  ;;  %v455_v42 = vld [vmem:[%s1308_s3 + $0x18] sm:$0xff]  ;;  %v456_v44 = vld [vmem:[%s1308_s3 + $0x20] sm:$0xff] }
  0x2e   :  { %807 = vmatprep.subr.bf16.mxu0 %v806_v10  ;;  %v833_v43 = vpack.c.bf16 %v455_v42, %v454_v40  ;;  %v457_v45 = vld [vmem:[%s1308_s3 + $0x28] sm:$0xff]  ;;  %v458_v47 = vld [vmem:[%s1308_s3 + $0x30] sm:$0xff]  ;;  %v459_v48 = vld [vmem:[%s1308_s3 + $0x38] sm:$0xff] }
  0x2f   :  { %831 = vmatpush3.bf16.msra.mxu1 %v830_v41  ;;  %v836_v46 = vpack.c.bf16 %v457_v45, %v456_v44  ;;  %v839_v49 = vpack.c.bf16 %v459_v48, %v458_v47  ;;  %v460_v50 = vld [vmem:[%s1308_s3 + $0x40] sm:$0xff]  ;;  %v461_v51 = vld [vmem:[%s1308_s3 + $0x48] sm:$0xff]  ;;  %v462_v53 = vld [vmem:[%s1308_s3 + $0x50] sm:$0xff] }
  0x30   :  { %832 = vmatprep.subr.bf16.mxu1 %v885_v62  ;;  %v842_v52 = vpack.c.bf16 %v461_v51, %v460_v50  ;;  %v463_v54 = vld [vmem:[%s1308_s3 + $0x58] sm:$0xff]  ;;  %v464_v56 = vld [vmem:[%s1308_s3 + $0x60] sm:$0xff]  ;;  %v465_v57 = vld [vmem:[%s1308_s3 + $0x68] sm:$0xff] }
  0x31   :  { %809 = vmatpush3.bf16.msra.mxu0 %v808_v15  ;;  %v845_v55 = vpack.c.bf16 %v463_v54, %v462_v53  ;;  %v466_v59 = vld [vmem:[%s1308_s3 + $0x70] sm:$0xff]  ;;  %v467_v60 = vld [vmem:[%s1308_s3 + $0x78] sm:$0xff]  ;;  %v560_v0 = vld [vmem:[%s1307_s2] ss:$0 sm:$0xff]  ;;  %s888_s2 = smov [#allocation2]  }
  0x32   :  { %811 = vmatprep.subr.bf16.mxu0 %v810_v16  ;;  %v851_v61 = vpack.c.bf16 %v467_v60, %v466_v59  ;;  %v562_v14 = vld [vmem:[%s1309_s4] ss:$0 sm:$0xff]  ;;  %s552_s22 = sshll.u32 %s888_s2, 4  ;;  %s553_s22 = int_to_ptr.vmem [resolvable:$true] %s552_s22 }
  0x33   :  { %834 = vmatpush3.bf16.msra.mxu1 %v833_v43  ;;  %s860_s23 = scalar_lea.vmem %s553_s22, 32  ;;  %p865_p1 = scmp.lt.s32.totalorder %s553_s22, %s553_s22 }
  0x34   :  { %835 = vmatprep.subr.bf16.mxu1 %v885_v62  ;;  %p861_p0 = scmp.ne.s32.totalorder %s553_s22, %s860_s23  ;;  %p866_p2 = scmp.lt.s32.totalorder %s860_s23, %s860_s23 }
  0x35   :  { %813 = vmatpush3.bf16.msra.mxu0 %v812_v21 }
  0x36   :  { %815 = vmatprep.subr.bf16.mxu0 %v814_v22  ;;  %p867_p3 = por %p866_p2, %p865_p1 }
  0x37   :  { %837 = vmatpush3.bf16.msra.mxu1 %v836_v46 }
  0x38   :  { %838 = vmatprep.subr.bf16.mxu1 %v885_v62  ;;  %p868_p4 = pnand %p867_p3, %p861_p0 }
  0x39   :  { %817 = vmatpush3.bf16.msra.mxu0 %v816_v27 }
  0x3a   :  { %819 = vmatprep.subr.bf16.mxu0 %v818_v28 }
  0x3b   :  { %840 = vmatpush3.bf16.msra.mxu1 %v839_v49 }
  0x3c   :  { %841 = vmatprep.subr.bf16.mxu1 %v885_v62 }
  0x3d   :  { %821 = vmatpush3.bf16.msra.mxu0 %v820_v33 }
  0x3e   :  { %823 = vmatprep.subr.bf16.mxu0 %v822_v34 }
  0x3f   :  { %843 = vmatpush3.bf16.msra.mxu1 %v842_v52 }
  0x40   :  { %844 = vmatprep.subr.bf16.mxu1 %v885_v62 }
  0x41   :  { %825 = vmatpush3.bf16.msra.mxu0 %v824_v37 }
  0x43   :  { %846 = vmatpush3.bf16.msra.mxu1 %v845_v55 }
  0x44   :  { %377 = vmatmul.mubr.f32.vlgmr.msra.gmra.mrb[2].mxu0 %v1149_v58  ;;  %847 = vmatprep.subr.bf16.mxu1 %v885_v62  ;;  %v848_v58 = vpack.c.bf16 %v465_v57, %v464_v56 }
  0x47   :  { %849 = vmatpush3.bf16.msra.mxu1 %v848_v58 }
  0x48   :  { %850 = vmatprep.subr.bf16.mxu1 %v885_v62 }
  0x4b   :  { %852 = vmatpush3.bf16.msra.mxu1 %v851_v61 }
  0xf7   :  { %v595_v63 = vpop.f32.mrb[0].mxu0 }
  0xf8   :  { %v596_v1 = vpop.f32.mrb[1].mxu0 }
  0xf9   :  { %v630_v2 = vpop.f32.mrb[0].mxu1  ;;  %v597_v3 = vadd.f32 %v596_v1, %v595_v63 }
  0xfa   :  { %v631_v4 = vpop.f32.mrb[1].mxu1 }
  0xfb   :  { %v632_v62 = vadd.f32 %v631_v4, %v630_v2  ;;  %v239_v5 = vadd.f32 %v597_v3, %v560_v0 }
  0xfd   :  { %v309_v6 = vadd.f32 %v632_v62, %v239_v5  ;;  %v448_v7 = vpop.f32.mrb[2].mxu1 }
  0xfe   :  { %v694_v8 = vpop.f32.mrb[3].mxu1 }
 0x117   :  { %v665_v9 = vpop.f32.mrb[2].mxu0 }
 0x118   :  { %v666_v10 = vpop.f32.mrb[3].mxu0 }
 0x119   :  { %v667_v11 = vadd.f32 %v666_v10, %v665_v9 }
 0x11b   :  { %v379_v12 = vadd.f32 %v667_v11, %v309_v6 }
 0x11d   :  { %v449_v13 = vadd.f32 %v448_v7, %v379_v12 }
 0x11f   :  { %728 = vmatmul.mubr.f32.vlgmr.msra.gmra.mrb[4].mxu1 %v449_v13 }
 0x1f2   :  { %v541_v15 = vpop.f32.mrb[4].mxu1 }
 0x1f3   :  { %v542_v16 = vadd.f32 %v562_v14, %v541_v15  ;;  %v729_v17 = vpop.f32.mrb[5].mxu1 }
 0x1f5   :  { %545 = vst [vmem:[#allocation2] sm:$0x3] %v542_v16 }
 0x1f6   :  { %871 = shalt.err (!%p868_p4)
}
 0x1f7   :  { %s872_s26 = scalar_lea.hbm %s1310_s5, 32 }
 0x1f8   :  { %p873_p5 = scmp.ne.s32.totalorder %s1310_s5, %s872_s26  ;;  %p876_p6 = scmp.lt.u32.totalorder %s872_s26, %s1310_s5 }
 0x1fa   :  { %p878_p7 = pnand %p876_p6, %p873_p5 }
 0x1fc   :  { %881 = shalt.err (!%p878_p7)
}
 0x1fd   :  { %555 = dma.vmem_to_hbm [thread:$0]  %s553_s22, 32, %s1310_s5, [#allocation3]  }
 0x1fe   :  { %882 = dma.done.wait [#allocation3], 32  }
 0x1ff   :  { %883 = vsyncadd [#allocation3], 4294967264 }
 0x200   :  { %559 = vsyncpa [#allocation3], 1 }

</bundles_post_ra>
